<compile_context>
chip_gen: v7x
topology: tpu7x:2x2x1
jax: 0.10.0
libtpu: 0.0.40
codegen_flags: <defaults>
</compile_context>

<pallas_src>
import functools
import math

import jax
import jax.numpy as jnp
from jax.experimental import pallas as pl
from jax.experimental.pallas import tpu as pltpu


_INV_SQRT2 = 0.7071067811865476


def _gelu_exact(x):
    # PyTorch nn.GELU() default == exact (erf) formulation, kept in f32.
    return 0.5 * x * (1.0 + jax.lax.erf(x * _INV_SQRT2))


# ---------------------------------------------------------------------------
# Fused Pallas kernel: conv1 -> conv2 -> deconv2_1 -> deconv2_2 -> 1x1 softmax
# ---------------------------------------------------------------------------
def _ssgnet_kernel(x_ref, m_ref, w1_ref, w2_ref, w3_ref, w4_ref, w5_ref, o_ref,
                   *, Wp, L):
    """One (batch, row-tile) step of the fused SSGNet forward pass.

    Layout: every activation is channels-first with a flattened, zero-padded
    spatial axis, shape (C, Np), Np = L * Wp, L = TH + 8 local rows (TH owned
    rows plus a 4-row halo on each side, one row per stacked 3x3 conv) and
    Wp = W + 2 padded columns.  The flat spatial axis sits on the TPU lane
    dimension; channels sit on sublanes.
    """
    Np = L * Wp
    mask = m_ref[0]                       # (1, Np) f32: 1 inside image, else 0

    def rolled(v, off):
        # result[:, p] = v[:, p + off] as a static lane rotation (XLU).
        # Wrap-around lands only in halo edge rows / padding columns.
        s = (-off) % Np
        if s == 0:
            return v
        return pltpu.roll(v, shift=s, axis=1)

    def conv3x3(p, w_ref, cout):
        # p: (Cin, Np) f32, already zero at padding / out-of-image positions.
        # w_ref: (3*cout, 3*Cin) bf16 with row = dy*cout + co, col = dx*Cin + ci.
        stack = jnp.concatenate(
            [rolled(p, -1), p, rolled(p, 1)], axis=0).astype(jnp.bfloat16)
        r = jnp.dot(w_ref[...], stack, preferred_element_type=jnp.float32)
        # out[co, p] = sum_dy r[dy*cout + co, p + (dy - 1) * Wp]
        return (rolled(r[0:cout, :], -Wp)
                + r[cout:2 * cout, :]
                + rolled(r[2 * cout:3 * cout, :], Wp))

    def act(v):
        # Exact GELU, then re-impose the zero padding / out-of-image rows so
        # the next conv sees the same zeros the reference padding provides.
        return _gelu_exact(v) * mask

    x0 = x_ref[0, 0]                                   # (8, Np) f32, zero-padded
    p1 = act(conv3x3(x0, w1_ref, 32))                  # conv1      (32, Np)
    p2 = act(conv3x3(p1, w2_ref, 64))                  # conv2      (64, Np)
    p3 = act(conv3x3(p2, w3_ref, 32))                  # deconv2_1  (32, Np)
    cat = jnp.concatenate([p3, p1], axis=0)            # torch.cat order (64, Np)
    p4 = _gelu_exact(conv3x3(cat, w4_ref, 32))         # deconv2_2  (32, Np)

    # deconv1: 1x1 conv + softmax over the 3 output channels (sublane rows).
    logits = jnp.dot(w5_ref[...], p4.astype(jnp.bfloat16),
                     preferred_element_type=jnp.float32)       # (3, Np)
    mx = jnp.maximum(jnp.maximum(logits[0:1, :], logits[1:2, :]),
                     logits[2:3, :])
    e = jnp.exp(logits - mx)
    denom = e[0:1, :] + e[1:2, :] + e[2:3, :]
    probs = e * pl.reciprocal(denom, approx=True)

    # Full lane-dense store from offset 0; the wrapper drops halo rows and
    # padding columns (output is only 3 channels, so the extra HBM is noise).
    o_ref[0, 0] = probs.astype(o_ref.dtype)


# ---------------------------------------------------------------------------
# Wrapper
# ---------------------------------------------------------------------------
def _fold_w3x3(w_hwio):
    # HWIO (3, 3, cin, cout) -> (3*cout, 3*cin); row = dy*cout+co, col = dx*cin+ci
    cin, cout = w_hwio.shape[2], w_hwio.shape[3]
    return jnp.transpose(w_hwio, (0, 3, 1, 2)).reshape(3 * cout, 3 * cin)


def _vmem_limit_bytes():
    try:
        cap = int(pltpu.get_tpu_info().vmem_capacity_bytes)
    except Exception:                       # pragma: no cover - older jax / CPU
        cap = 64 * 1024 * 1024              # v7x-safe fallback
    return max(32 * 1024 * 1024, min((cap * 3) // 4, 96 * 1024 * 1024))


@functools.partial(jax.jit, static_argnames=("row_tile",))
def ssgnet_forward(x_nchw, params, row_tile=None):
    """SSGNet forward (NCHW in, NCHW out) as one fused Pallas TPU kernel."""
    B, C, H, W = x_nchw.shape
    assert C == 3, "SSGNet expects 3 input channels"
    Wp = W + 2
    vmem_limit = _vmem_limit_bytes()

    if row_tile is None:
        # Largest row tile whose fused f32 working set (~512 live channel-rows
        # incl. stacks / matmul results / transients) fits the VMEM budget.
        per_row_bytes = 4 * Wp * 512
        row_tile = max(8, int(vmem_limit * 0.75) // per_row_bytes - 8)
    TH = max(1, min(int(row_tile), H))
    T = -(-H // TH)
    if B * T < 2 and H > 1:
        # Expose >=2 parallel grid steps so both v7x TensorCores get work.
        TH = -(-H // 2)
        T = -(-H // TH)
    L = TH + 8                  # tile rows incl. 4-row halo on each side
    Np = L * Wp
    Hpad = T * TH + 8

    # --- input: pad channels 3->8 and add zero borders; gather row tiles ---
    x = x_nchw.astype(jnp.float32)
    xpad = jnp.pad(x, ((0, 0), (0, 5), (4, Hpad - 4 - H), (1, 1)))
    rows = jnp.arange(T)[:, None] * TH + jnp.arange(L)[None, :]      # (T, L)
    xt = xpad[:, :, rows, :]                                         # (B,8,T,L,Wp)
    xt = jnp.transpose(xt, (0, 2, 1, 3, 4)).reshape(B, T, 8, Np)

    # {0,1} mask of in-image positions per row tile (re-imposes the per-layer
    # zero padding inside the kernel; also handles a ragged last tile).
    g = jnp.arange(T)[:, None] * TH - 4 + jnp.arange(L)[None, :]     # global row
    row_ok = (g >= 0) & (g < H)
    col_ok = (jnp.arange(Wp) >= 1) & (jnp.arange(Wp) <= W)
    mask = (row_ok[:, :, None] & col_ok[None, None, :]).astype(jnp.float32)
    mask = mask.reshape(T, 1, Np)

    # --- weights: dy folded into output rows, dx into K; bf16 for the MXU ---
    bf16 = jnp.bfloat16
    w1 = _fold_w3x3(jnp.pad(params["conv1"],
                            ((0, 0), (0, 0), (0, 5), (0, 0)))).astype(bf16)  # (96, 24)
    w2 = _fold_w3x3(params["conv2"]).astype(bf16)                            # (192, 96)
    w3 = _fold_w3x3(params["deconv2_1"]).astype(bf16)                        # (96, 192)
    w4 = _fold_w3x3(params["deconv2_2"]).astype(bf16)                        # (96, 192)
    w5 = jnp.transpose(params["deconv1"][0, 0], (1, 0)).astype(bf16)         # (3, 32)

    kernel = functools.partial(_ssgnet_kernel, Wp=Wp, L=L)
    out = pl.pallas_call(
        kernel,
        out_shape=jax.ShapeDtypeStruct((B, T, 3, Np), jnp.float32),
        grid_spec=pltpu.PrefetchScalarGridSpec(
            num_scalar_prefetch=0,
            grid=(B, T),
            in_specs=[
                pl.BlockSpec((1, 1, 8, Np), lambda b, t: (b, t, 0, 0)),
                pl.BlockSpec((1, 1, Np), lambda b, t: (t, 0, 0)),
                pl.BlockSpec(w1.shape, lambda b, t: (0, 0)),
                pl.BlockSpec(w2.shape, lambda b, t: (0, 0)),
                pl.BlockSpec(w3.shape, lambda b, t: (0, 0)),
                pl.BlockSpec(w4.shape, lambda b, t: (0, 0)),
                pl.BlockSpec(w5.shape, lambda b, t: (0, 0)),
            ],
            out_specs=pl.BlockSpec((1, 1, 3, Np), lambda b, t: (b, t, 0, 0)),
        ),
        compiler_params=pltpu.CompilerParams(
            dimension_semantics=("parallel", "parallel"),
            vmem_limit_bytes=vmem_limit),
    )(xt, mask, w1, w2, w3, w4, w5)

    # (B, T, 3, Np) -> NCHW, dropping the halo rows, width padding and any
    # ragged rows of the last tile.
    out = out.reshape(B, T, 3, L, Wp)[:, :, :, 4:4 + TH, 1:W + 1]
    out = jnp.transpose(out, (0, 2, 1, 3, 4)).reshape(B, 3, T * TH, W)
    return out[:, :, :H, :]


# ---------------------------------------------------------------------------
# Params + pure-XLA reference (mirrors the PyTorch module exactly)
# ---------------------------------------------------------------------------
def init_params(key):
    """Deterministic kaiming-like init; conv weights stored as HWIO."""
    def conv_w(k, kh, kw, cin, cout):
        fan_in = kh * kw * cin
        scale = 1.0 / math.sqrt(fan_in)
        return jax.random.uniform(k, (kh, kw, cin, cout), jnp.float32,
                                  minval=-scale, maxval=scale)

    k1, k2, k3, k4, k5 = jax.random.split(key, 5)
    return {
        "conv1":     conv_w(k1, 3, 3, 3, 32),
        "conv2":     conv_w(k2, 3, 3, 32, 64),
        "deconv2_1": conv_w(k3, 3, 3, 64, 32),
        "deconv2_2": conv_w(k4, 3, 3, 64, 32),
        "deconv1":   conv_w(k5, 1, 1, 32, 3),
    }


def _conv_ref(x_nchw, w_hwio, pad):
    return jax.lax.conv_general_dilated(
        x_nchw, w_hwio, window_strides=(1, 1),
        padding=[(pad, pad), (pad, pad)],
        dimension_numbers=("NCHW", "HWIO", "NCHW"),
        precision=jax.lax.Precision.HIGHEST)


def ssgnet_ref(x_nchw, params):
    g = lambda v: jax.nn.gelu(v, approximate=False)
    c1 = g(_conv_ref(x_nchw, params["conv1"], 1))
    c2 = g(_conv_ref(c1, params["conv2"], 1))
    d2 = g(_conv_ref(c2, params["deconv2_1"], 1))
    d2 = g(_conv_ref(jnp.concatenate([d2, c1], axis=1),
                     params["deconv2_2"], 1))
    return jax.nn.softmax(_conv_ref(d2, params["deconv1"], 0), axis=1)


if __name__ == "__main__":
    key = jax.random.PRNGKey(0)
    kx, kp = jax.random.split(key)
    x = jax.random.normal(kx, (2, 3, 16, 16), jnp.float32)   # NCHW, 3 channels
    params = init_params(kp)

    ref = ssgnet_ref(x, params)

    # Default tiling (single row tile of the full image at this size).
    out = jax.block_until_ready(ssgnet_forward(x, params))
    assert out.shape == (2, 3, 16, 16)
    err = float(jnp.max(jnp.abs(out - ref)))
    assert jnp.allclose(out, ref, atol=3e-3, rtol=3e-3), err

    # Multi-tile path: two row tiles of 8 rows, exercising the 4-row halo.
    out_tiled = jax.block_until_ready(ssgnet_forward(x, params, row_tile=8))
    err_t = float(jnp.max(jnp.abs(out_tiled - ref)))
    assert jnp.allclose(out_tiled, ref, atol=3e-3, rtol=3e-3), err_t

    print("KERNEL_OK")
</pallas_src>

<mosaic_0001>
module attributes {stable_mosaic.version = 11 : i64} {
  func.func @_ssgnet_kernel(%arg0: i32, %arg1: i32, %arg2: memref<1x1x8x432xf32, #tpu.memory_space<vmem>>, %arg3: memref<1x1x432xf32, #tpu.memory_space<vmem>>, %arg4: memref<96x24xbf16, #tpu.memory_space<vmem>>, %arg5: memref<192x96xbf16, #tpu.memory_space<vmem>>, %arg6: memref<96x192xbf16, #tpu.memory_space<vmem>>, %arg7: memref<96x192xbf16, #tpu.memory_space<vmem>>, %arg8: memref<3x32xbf16, #tpu.memory_space<vmem>>, %arg9: memref<1x1x3x432xf32, #tpu.memory_space<vmem>>) attributes {dimension_semantics = [#tpu.dimension_semantics<parallel>, #tpu.dimension_semantics<parallel>], iteration_bounds = array<i64: 2, 1>, scalar_prefetch = 0 : i64, scratch_operands = 0 : i64, tpu.core_type = #tpu.core_type<tc>, window_params = [{transform_indices = @transform_0, window_bounds = array<i64: 1, 1, 8, 432>}, {transform_indices = @transform_1, window_bounds = array<i64: 1, 1, 432>}, {pipeline_mode = #tpu.pipeline_mode<synchronous>, transform_indices = @transform_2, window_bounds = array<i64: 96, 24>}, {pipeline_mode = #tpu.pipeline_mode<synchronous>, transform_indices = @transform_3, window_bounds = array<i64: 192, 96>}, {pipeline_mode = #tpu.pipeline_mode<synchronous>, transform_indices = @transform_4, window_bounds = array<i64: 96, 192>}, {pipeline_mode = #tpu.pipeline_mode<synchronous>, transform_indices = @transform_5, window_bounds = array<i64: 96, 192>}, {pipeline_mode = #tpu.pipeline_mode<synchronous>, transform_indices = @transform_6, window_bounds = array<i64: 3, 32>}, {transform_indices = @transform_7, window_bounds = array<i64: 1, 1, 3, 432>}]} {
    %c0 = arith.constant 0 : index
    %c0_0 = arith.constant 0 : index
    %c0_1 = arith.constant 0 : index
    %0 = vector.load %arg3[%c0, %c0_0, %c0_1] : memref<1x1x432xf32, #tpu.memory_space<vmem>>, vector<1x1x432xf32>
    %1 = vector.shape_cast %0 : vector<1x1x432xf32> to vector<1x432xf32>
    %c0_2 = arith.constant 0 : index
    %c0_3 = arith.constant 0 : index
    %c0_4 = arith.constant 0 : index
    %c0_5 = arith.constant 0 : index
    %2 = vector.load %arg2[%c0_2, %c0_3, %c0_4, %c0_5] : memref<1x1x8x432xf32, #tpu.memory_space<vmem>>, vector<1x1x8x432xf32>
    %3 = vector.shape_cast %2 : vector<1x1x8x432xf32> to vector<8x432xf32>
    %c1_i32 = arith.constant 1 : i32
    %4 = tpu.dynamic_rotate %3 by %c1_i32 dim 1 : vector<8x432xf32>, i32 -> vector<8x432xf32>
    %c431_i32 = arith.constant 431 : i32
    %5 = tpu.dynamic_rotate %3 by %c431_i32 dim 1 : vector<8x432xf32>, i32 -> vector<8x432xf32>
    %6 = tpu.concatenate %4, %3, %5 in 0 : vector<8x432xf32>, vector<8x432xf32>, vector<8x432xf32> -> vector<24x432xf32>
    %7 = arith.truncf %6 : vector<24x432xf32> to vector<24x432xbf16>
    %c0_6 = arith.constant 0 : index
    %c0_7 = arith.constant 0 : index
    %8 = vector.load %arg4[%c0_6, %c0_7] : memref<96x24xbf16, #tpu.memory_space<vmem>>, vector<96x24xbf16>
    %cst = arith.constant dense<0.000000e+00> : vector<96x432xf32>
    %9 = tpu.matmul %8, %7, %cst {dimension_numbers = #tpu.dot_dimension_numbers<[1], [0], [0], [1], [0, 0, 1, 1], [], []>} : vector<96x24xbf16>, vector<24x432xbf16>, vector<96x432xf32> -> vector<96x432xf32>
    %10 = vector.extract_strided_slice %9 {offsets = [0, 0], sizes = [32, 432], strides = [1, 1]} : vector<96x432xf32> to vector<32x432xf32>
    %c18_i32 = arith.constant 18 : i32
    %11 = tpu.dynamic_rotate %10 by %c18_i32 dim 1 : vector<32x432xf32>, i32 -> vector<32x432xf32>
    %12 = vector.extract_strided_slice %9 {offsets = [32, 0], sizes = [32, 432], strides = [1, 1]} : vector<96x432xf32> to vector<32x432xf32>
    %13 = arith.addf %11, %12 : vector<32x432xf32>
    %14 = vector.extract_strided_slice %9 {offsets = [64, 0], sizes = [32, 432], strides = [1, 1]} : vector<96x432xf32> to vector<32x432xf32>
    %c414_i32 = arith.constant 414 : i32
    %15 = tpu.dynamic_rotate %14 by %c414_i32 dim 1 : vector<32x432xf32>, i32 -> vector<32x432xf32>
    %16 = arith.addf %13, %15 : vector<32x432xf32>
    %cst_8 = arith.constant 5.000000e-01 : f32
    %17 = vector.broadcast %cst_8 : f32 to vector<32x432xf32>
    %18 = arith.mulf %17, %16 : vector<32x432xf32>
    %cst_9 = arith.constant 0.707106769 : f32
    %19 = vector.broadcast %cst_9 : f32 to vector<32x432xf32>
    %20 = arith.mulf %16, %19 : vector<32x432xf32>
    %21 = math.erf %20 : vector<32x432xf32>
    %cst_10 = arith.constant 1.000000e+00 : f32
    %22 = vector.broadcast %cst_10 : f32 to vector<32x432xf32>
    %23 = arith.addf %22, %21 : vector<32x432xf32>
    %24 = arith.mulf %18, %23 : vector<32x432xf32>
    %25 = vector.broadcast %1 : vector<1x432xf32> to vector<32x432xf32>
    %26 = arith.mulf %24, %25 : vector<32x432xf32>
    %c1_i32_11 = arith.constant 1 : i32
    %27 = tpu.dynamic_rotate %26 by %c1_i32_11 dim 1 : vector<32x432xf32>, i32 -> vector<32x432xf32>
    %c431_i32_12 = arith.constant 431 : i32
    %28 = tpu.dynamic_rotate %26 by %c431_i32_12 dim 1 : vector<32x432xf32>, i32 -> vector<32x432xf32>
    %29 = tpu.concatenate %27, %26, %28 in 0 : vector<32x432xf32>, vector<32x432xf32>, vector<32x432xf32> -> vector<96x432xf32>
    %30 = arith.truncf %29 : vector<96x432xf32> to vector<96x432xbf16>
    %c0_13 = arith.constant 0 : index
    %c0_14 = arith.constant 0 : index
    %31 = vector.load %arg5[%c0_13, %c0_14] : memref<192x96xbf16, #tpu.memory_space<vmem>>, vector<192x96xbf16>
    %cst_15 = arith.constant dense<0.000000e+00> : vector<192x432xf32>
    %32 = tpu.matmul %31, %30, %cst_15 {dimension_numbers = #tpu.dot_dimension_numbers<[1], [0], [0], [1], [0, 0, 1, 1], [], []>} : vector<192x96xbf16>, vector<96x432xbf16>, vector<192x432xf32> -> vector<192x432xf32>
    %33 = vector.extract_strided_slice %32 {offsets = [0, 0], sizes = [64, 432], strides = [1, 1]} : vector<192x432xf32> to vector<64x432xf32>
    %c18_i32_16 = arith.constant 18 : i32
    %34 = tpu.dynamic_rotate %33 by %c18_i32_16 dim 1 : vector<64x432xf32>, i32 -> vector<64x432xf32>
    %35 = vector.extract_strided_slice %32 {offsets = [64, 0], sizes = [64, 432], strides = [1, 1]} : vector<192x432xf32> to vector<64x432xf32>
    %36 = arith.addf %34, %35 : vector<64x432xf32>
    %37 = vector.extract_strided_slice %32 {offsets = [128, 0], sizes = [64, 432], strides = [1, 1]} : vector<192x432xf32> to vector<64x432xf32>
    %c414_i32_17 = arith.constant 414 : i32
    %38 = tpu.dynamic_rotate %37 by %c414_i32_17 dim 1 : vector<64x432xf32>, i32 -> vector<64x432xf32>
    %39 = arith.addf %36, %38 : vector<64x432xf32>
    %cst_18 = arith.constant 5.000000e-01 : f32
    %40 = vector.broadcast %cst_18 : f32 to vector<64x432xf32>
    %41 = arith.mulf %40, %39 : vector<64x432xf32>
    %cst_19 = arith.constant 0.707106769 : f32
    %42 = vector.broadcast %cst_19 : f32 to vector<64x432xf32>
    %43 = arith.mulf %39, %42 : vector<64x432xf32>
    %44 = math.erf %43 : vector<64x432xf32>
    %cst_20 = arith.constant 1.000000e+00 : f32
    %45 = vector.broadcast %cst_20 : f32 to vector<64x432xf32>
    %46 = arith.addf %45, %44 : vector<64x432xf32>
    %47 = arith.mulf %41, %46 : vector<64x432xf32>
    %48 = vector.broadcast %1 : vector<1x432xf32> to vector<64x432xf32>
    %49 = arith.mulf %47, %48 : vector<64x432xf32>
    %c1_i32_21 = arith.constant 1 : i32
    %50 = tpu.dynamic_rotate %49 by %c1_i32_21 dim 1 : vector<64x432xf32>, i32 -> vector<64x432xf32>
    %c431_i32_22 = arith.constant 431 : i32
    %51 = tpu.dynamic_rotate %49 by %c431_i32_22 dim 1 : vector<64x432xf32>, i32 -> vector<64x432xf32>
    %52 = tpu.concatenate %50, %49, %51 in 0 : vector<64x432xf32>, vector<64x432xf32>, vector<64x432xf32> -> vector<192x432xf32>
    %53 = arith.truncf %52 : vector<192x432xf32> to vector<192x432xbf16>
    %c0_23 = arith.constant 0 : index
    %c0_24 = arith.constant 0 : index
    %54 = vector.load %arg6[%c0_23, %c0_24] : memref<96x192xbf16, #tpu.memory_space<vmem>>, vector<96x192xbf16>
    %cst_25 = arith.constant dense<0.000000e+00> : vector<96x432xf32>
    %55 = tpu.matmul %54, %53, %cst_25 {dimension_numbers = #tpu.dot_dimension_numbers<[1], [0], [0], [1], [0, 0, 1, 1], [], []>} : vector<96x192xbf16>, vector<192x432xbf16>, vector<96x432xf32> -> vector<96x432xf32>
    %56 = vector.extract_strided_slice %55 {offsets = [0, 0], sizes = [32, 432], strides = [1, 1]} : vector<96x432xf32> to vector<32x432xf32>
    %c18_i32_26 = arith.constant 18 : i32
    %57 = tpu.dynamic_rotate %56 by %c18_i32_26 dim 1 : vector<32x432xf32>, i32 -> vector<32x432xf32>
    %58 = vector.extract_strided_slice %55 {offsets = [32, 0], sizes = [32, 432], strides = [1, 1]} : vector<96x432xf32> to vector<32x432xf32>
    %59 = arith.addf %57, %58 : vector<32x432xf32>
    %60 = vector.extract_strided_slice %55 {offsets = [64, 0], sizes = [32, 432], strides = [1, 1]} : vector<96x432xf32> to vector<32x432xf32>
    %c414_i32_27 = arith.constant 414 : i32
    %61 = tpu.dynamic_rotate %60 by %c414_i32_27 dim 1 : vector<32x432xf32>, i32 -> vector<32x432xf32>
    %62 = arith.addf %59, %61 : vector<32x432xf32>
    %cst_28 = arith.constant 5.000000e-01 : f32
    %63 = vector.broadcast %cst_28 : f32 to vector<32x432xf32>
    %64 = arith.mulf %63, %62 : vector<32x432xf32>
    %cst_29 = arith.constant 0.707106769 : f32
    %65 = vector.broadcast %cst_29 : f32 to vector<32x432xf32>
    %66 = arith.mulf %62, %65 : vector<32x432xf32>
    %67 = math.erf %66 : vector<32x432xf32>
    %cst_30 = arith.constant 1.000000e+00 : f32
    %68 = vector.broadcast %cst_30 : f32 to vector<32x432xf32>
    %69 = arith.addf %68, %67 : vector<32x432xf32>
    %70 = arith.mulf %64, %69 : vector<32x432xf32>
    %71 = vector.broadcast %1 : vector<1x432xf32> to vector<32x432xf32>
    %72 = arith.mulf %70, %71 : vector<32x432xf32>
    %73 = tpu.concatenate %72, %26 in 0 : vector<32x432xf32>, vector<32x432xf32> -> vector<64x432xf32>
    %c1_i32_31 = arith.constant 1 : i32
    %74 = tpu.dynamic_rotate %73 by %c1_i32_31 dim 1 : vector<64x432xf32>, i32 -> vector<64x432xf32>
    %c431_i32_32 = arith.constant 431 : i32
    %75 = tpu.dynamic_rotate %73 by %c431_i32_32 dim 1 : vector<64x432xf32>, i32 -> vector<64x432xf32>
    %76 = tpu.concatenate %74, %73, %75 in 0 : vector<64x432xf32>, vector<64x432xf32>, vector<64x432xf32> -> vector<192x432xf32>
    %77 = arith.truncf %76 : vector<192x432xf32> to vector<192x432xbf16>
    %c0_33 = arith.constant 0 : index
    %c0_34 = arith.constant 0 : index
    %78 = vector.load %arg7[%c0_33, %c0_34] : memref<96x192xbf16, #tpu.memory_space<vmem>>, vector<96x192xbf16>
    %cst_35 = arith.constant dense<0.000000e+00> : vector<96x432xf32>
    %79 = tpu.matmul %78, %77, %cst_35 {dimension_numbers = #tpu.dot_dimension_numbers<[1], [0], [0], [1], [0, 0, 1, 1], [], []>} : vector<96x192xbf16>, vector<192x432xbf16>, vector<96x432xf32> -> vector<96x432xf32>
    %80 = vector.extract_strided_slice %79 {offsets = [0, 0], sizes = [32, 432], strides = [1, 1]} : vector<96x432xf32> to vector<32x432xf32>
    %c18_i32_36 = arith.constant 18 : i32
    %81 = tpu.dynamic_rotate %80 by %c18_i32_36 dim 1 : vector<32x432xf32>, i32 -> vector<32x432xf32>
    %82 = vector.extract_strided_slice %79 {offsets = [32, 0], sizes = [32, 432], strides = [1, 1]} : vector<96x432xf32> to vector<32x432xf32>
    %83 = arith.addf %81, %82 : vector<32x432xf32>
    %84 = vector.extract_strided_slice %79 {offsets = [64, 0], sizes = [32, 432], strides = [1, 1]} : vector<96x432xf32> to vector<32x432xf32>
    %c414_i32_37 = arith.constant 414 : i32
    %85 = tpu.dynamic_rotate %84 by %c414_i32_37 dim 1 : vector<32x432xf32>, i32 -> vector<32x432xf32>
    %86 = arith.addf %83, %85 : vector<32x432xf32>
    %cst_38 = arith.constant 5.000000e-01 : f32
    %87 = vector.broadcast %cst_38 : f32 to vector<32x432xf32>
    %88 = arith.mulf %87, %86 : vector<32x432xf32>
    %cst_39 = arith.constant 0.707106769 : f32
    %89 = vector.broadcast %cst_39 : f32 to vector<32x432xf32>
    %90 = arith.mulf %86, %89 : vector<32x432xf32>
    %91 = math.erf %90 : vector<32x432xf32>
    %cst_40 = arith.constant 1.000000e+00 : f32
    %92 = vector.broadcast %cst_40 : f32 to vector<32x432xf32>
    %93 = arith.addf %92, %91 : vector<32x432xf32>
    %94 = arith.mulf %88, %93 : vector<32x432xf32>
    %c0_41 = arith.constant 0 : index
    %c0_42 = arith.constant 0 : index
    %95 = vector.load %arg8[%c0_41, %c0_42] : memref<3x32xbf16, #tpu.memory_space<vmem>>, vector<3x32xbf16>
    %96 = arith.truncf %94 : vector<32x432xf32> to vector<32x432xbf16>
    %cst_43 = arith.constant dense<0.000000e+00> : vector<3x432xf32>
    %97 = tpu.matmul %95, %96, %cst_43 {dimension_numbers = #tpu.dot_dimension_numbers<[1], [0], [0], [1], [0, 0, 1, 1], [], []>} : vector<3x32xbf16>, vector<32x432xbf16>, vector<3x432xf32> -> vector<3x432xf32>
    %98 = vector.extract_strided_slice %97 {offsets = [0, 0], sizes = [1, 432], strides = [1, 1]} : vector<3x432xf32> to vector<1x432xf32>
    %99 = vector.extract_strided_slice %97 {offsets = [1, 0], sizes = [1, 432], strides = [1, 1]} : vector<3x432xf32> to vector<1x432xf32>
    %100 = arith.maximumf %98, %99 : vector<1x432xf32>
    %101 = vector.extract_strided_slice %97 {offsets = [2, 0], sizes = [1, 432], strides = [1, 1]} : vector<3x432xf32> to vector<1x432xf32>
    %102 = arith.maximumf %100, %101 : vector<1x432xf32>
    %103 = vector.broadcast %102 : vector<1x432xf32> to vector<3x432xf32>
    %104 = arith.subf %97, %103 : vector<3x432xf32>
    %105 = math.exp %104 : vector<3x432xf32>
    %106 = vector.extract_strided_slice %105 {offsets = [0, 0], sizes = [1, 432], strides = [1, 1]} : vector<3x432xf32> to vector<1x432xf32>
    %107 = vector.extract_strided_slice %105 {offsets = [1, 0], sizes = [1, 432], strides = [1, 1]} : vector<3x432xf32> to vector<1x432xf32>
    %108 = arith.addf %106, %107 : vector<1x432xf32>
    %109 = vector.extract_strided_slice %105 {offsets = [2, 0], sizes = [1, 432], strides = [1, 1]} : vector<3x432xf32> to vector<1x432xf32>
    %110 = arith.addf %108, %109 : vector<1x432xf32>
    %111 = tpu.reciprocal %110 {approx = true} : vector<1x432xf32> -> vector<1x432xf32>
    %112 = vector.broadcast %111 : vector<1x432xf32> to vector<3x432xf32>
    %113 = arith.mulf %105, %112 : vector<3x432xf32>
    %c0_44 = arith.constant 0 : index
    %c0_45 = arith.constant 0 : index
    %c0_46 = arith.constant 0 : index
    %c0_47 = arith.constant 0 : index
    %114 = vector.load %arg9[%c0_44, %c0_45, %c0_46, %c0_47] : memref<1x1x3x432xf32, #tpu.memory_space<vmem>>, vector<1x1x3x432xf32>
    %115 = vector.shape_cast %114 : vector<1x1x3x432xf32> to vector<3x432xf32>
    %116 = vector.shape_cast %113 : vector<3x432xf32> to vector<1x1x3x432xf32>
    tpu.vector_store %arg9[%c0_44, %c0_45, %c0_46, %c0_47], %116 {strides = array<i32>} : memref<1x1x3x432xf32, #tpu.memory_space<vmem>>, vector<1x1x3x432xf32>,
    return
  }
  func.func @transform_0(%arg0: i32, %arg1: i32) -> (i32, i32, i32, i32) {
    %c0_i32 = arith.constant 0 : i32
    %c0_i32_0 = arith.constant 0 : i32
    %c0_i32_1 = arith.constant 0 : i32
    return %arg0, %arg1, %c0_i32, %c0_i32_0 : i32, i32, i32, i32
  }
  func.func @transform_1(%arg0: i32, %arg1: i32) -> (i32, i32, i32) {
    %c0_i32 = arith.constant 0 : i32
    %c0_i32_0 = arith.constant 0 : i32
    %c0_i32_1 = arith.constant 0 : i32
    return %arg1, %c0_i32, %c0_i32_0 : i32, i32, i32
  }
  func.func @transform_2(%arg0: i32, %arg1: i32) -> (i32, i32) {
    %c0_i32 = arith.constant 0 : i32
    %c0_i32_0 = arith.constant 0 : i32
    %c0_i32_1 = arith.constant 0 : i32
    return %c0_i32, %c0_i32_0 : i32, i32
  }
  func.func @transform_3(%arg0: i32, %arg1: i32) -> (i32, i32) {
    %c0_i32 = arith.constant 0 : i32
    %c0_i32_0 = arith.constant 0 : i32
    %c0_i32_1 = arith.constant 0 : i32
    return %c0_i32, %c0_i32_0 : i32, i32
  }
  func.func @transform_4(%arg0: i32, %arg1: i32) -> (i32, i32) {
    %c0_i32 = arith.constant 0 : i32
    %c0_i32_0 = arith.constant 0 : i32
    %c0_i32_1 = arith.constant 0 : i32
    return %c0_i32, %c0_i32_0 : i32, i32
  }
  func.func @transform_5(%arg0: i32, %arg1: i32) -> (i32, i32) {
    %c0_i32 = arith.constant 0 : i32
    %c0_i32_0 = arith.constant 0 : i32
    %c0_i32_1 = arith.constant 0 : i32
    return %c0_i32, %c0_i32_0 : i32, i32
  }
  func.func @transform_6(%arg0: i32, %arg1: i32) -> (i32, i32) {
    %c0_i32 = arith.constant 0 : i32
    %c0_i32_0 = arith.constant 0 : i32
    %c0_i32_1 = arith.constant 0 : i32
    return %c0_i32, %c0_i32_0 : i32, i32
  }
  func.func @transform_7(%arg0: i32, %arg1: i32) -> (i32, i32, i32, i32) {
    %c0_i32 = arith.constant 0 : i32
    %c0_i32_0 = arith.constant 0 : i32
    %c0_i32_1 = arith.constant 0 : i32
    return %arg0, %arg1, %c0_i32, %c0_i32_0 : i32, i32, i32, i32
  }
}

</mosaic_0001>

<bundles_post_ra>
// kernel: ssgnet_forward.1
= control target key start
LH: loop header
LB: loop body
LE: loop exit
PB: predicated region body
PF: predicated region fallthrough
CT: control target
= control target key end

     0   :  { %s6397_s24 = smov 0   ;;  %s6399_s25 = smov 0   ;;  %s10050_s0 = inlined_call_operand.vmem [shape: f32[2,1,8,432], index: 0, kind: input, shape index: {}]   ;;  %s10051_s1 = inlined_call_operand.vmem [shape: f32[1,1,432], index: 1, kind: input, shape index: {}]   ;;  %s10052_s2 = inlined_call_operand.vmem [shape: bf16[96,24], index: 2, kind: input, shape index: {}]   ;;  %s10053_s3 = inlined_call_operand.vmem [shape: bf16[192,96], index: 3, kind: input, shape index: {}]   ;;  %s10054_s4 = inlined_call_operand.vmem [shape: bf16[96,192], index: 4, kind: input, shape index: {}]   ;;  %s10055_s5 = inlined_call_operand.vmem [shape: bf16[96,192], index: 5, kind: input, shape index: {}]   ;;  %s10056_s6 = inlined_call_operand.vmem [shape: bf16[3,32], index: 6, kind: input, shape index: {}]   ;;  %s10057_s7 = inlined_call_operand.vmem [shape: f32[2,1,3,432], index: 7, kind: output, shape index: {}]  }
   0x1   :  { %s6401_s26 = smov 0  }
   0x2 LB: > { %s29_s27 = sadd.s32 1, %s6342_s25  ;;  %p5291_p0 = scmp.ge.s32.totalorder %s6346_s26, 1  ;;  %s6346_s26 = sphi %s6401_s26, %s17_s26   ;;  %s6342_s25 = sphi %s6399_s25, %s10280_s25   ;;  %s6338_s24 = sphi %s6397_s24, %s10279_s24  }
   0x3   : > { %p31_p1 = scmp.ge.s32.totalorder %s29_s27, 2  ;;  %p266_p2 = scmp.lt.s32.totalorder %s6346_s26, 3 }
   0x5   : > { %s10282_s27 = smov (%p31_p1, %s29_s27), 0  ;;  %p267_p3 = pnand %p5291_p0, %p266_p2 }
   0x7   : > { %270 = sbr.rel (%p267_p3) target bundleno = 4648 (0x1228), region = 48 }
   0xe   : > { %p310_p4 = scmp.lt.s32.totalorder %s6338_s24, 1  ;;  %s6348_s9 = smov 47   ;;  %vm363_vm0 = vcmask 384000   ;;  %vm338_vm1 = vcmask 1047936   ;;  %vm380_vm2 = vcmask 375808   ;;  %v10058_v23 = vmov 0  }
   0xf   : > { %s6349_s10 = smov 48   ;;  %s6350_s11 = smov 46   ;;  %537 = vmatprep.mubr.bf16.mxu0 %v10058_v23  ;;  %630 = vmatprep.mubr.bf16.mxu1 %v10058_v23  ;;  %vm462_vm3 = vcmask 662528   ;;  %vm492_vm4 = vcmask 1043456   ;;  %v6094_v50 = vld [vmem:[%s10052_s2] sm:$0xff]   ;;  %vm473_vm5 = vcmask 195584  }
  0x10   : > { %s10284_s24 = smov (!%p310_p4, %s6338_s24), 1  ;;  %s6351_s12 = smov 81   ;;  %v6095_v51 = vld [vmem:[%s10052_s2 + $0x8] sm:$0xff]   ;;  %v6096_v52 = vld [vmem:[%s10052_s2 + $0x10] sm:$0xff]   ;;  %v6097_v53 = vld [vmem:[%s10052_s2 + $0x18] sm:$0xff]   ;;  %vm787_vm6 = vcmask 244736  }
  0x11   : > { %s5404_s28 = sshll.u32 %s10284_s24, 5  ;;  %v6098_v54 = vld [vmem:[%s10052_s2 + $0x20] sm:$0xff]   ;;  %v6099_v55 = vld [vmem:[%s10052_s2 + $0x28] sm:$0xff]   ;;  %s6353_s29 = smov 30   ;;  %vm892_vm7 = vcmask 97280   ;;  %vm1113_vm8 = vcmask 801792  }
  0x12   : > { %s318_s8 = scalar_lea.vmem %s10050_s0, %s5404_s28  ;;  %s6354_s30 = smov 12   ;;  %vm1222_vm9 = vcmask 138240   ;;  %vm1537_vm10 = vcmask 785408   ;;  %vm3398_vm11 = vcmask 523264   ;;  %vm4971_vm12 = vcmask 261120  }
  0x13   : > { %v334_v0 = vld [vmem:[%s318_s8] sm:$0xff]  ;;  %v335_v1 = vld [vmem:[%s318_s8 + $0x8] sm:$0xff]  ;;  %v336_v3 = vld [vmem:[%s318_s8 + $0x10] sm:$0xff]  ;;  %s6355_s13 = smov 98   ;;  %s6356_s14 = smov 17   ;;  %vm5174_vm13 = vcmask 1042432  }
  0x14   : > { %v5444_v2 = vpack.i.bf16 %v335_v1, %v334_v0  ;;  %v337_v4 = vld [vmem:[%s318_s8 + $0x18] sm:$0xff]  ;;  %vm5175_vm14 = vcmask 391172  }
  0x15   : > { %vm5176_vm15 = vmor %vm5175_vm14, %vm5174_vm13 }
  0x16   : > { %5445 = vrot.lane.b32.xlu1 %v5444_v2, %s6348_s9  ;;  %5440 = vrot.lane.b32.xlu0 %v5444_v2, %s6349_s10 }
  0x1a   : > { %359 = vrot.lane.b32.xlu1 %v336_v3, %s6348_s9  ;;  %344 = vrot.lane.b32.xlu0 %v336_v3, %s6349_s10 }
  0x1e   : > { %5450 = vrot.lane.b32.xlu0 %v5444_v2, %s6350_s11  ;;  %376 = vrot.lane.b32.xlu1 %v336_v3, %s6350_s11 }
  0x22   : > { %361 = vrot.lane.b32.xlu1 %v337_v4, %s6348_s9 }
  0x88   : > { %v5446_v5 = vpop.permute.xlu1 %5445  ;;  %v5441_v6 = vpop.permute.xlu0 %5440 }
  0x89   : > { %v5448_v7 = vunpack.i.h.bf16 %v5446_v5  ;;  %v5447_v8 = vunpack.i.l.bf16 %v5446_v5  ;;  %v5443_v9 = vunpack.i.h.bf16 %v5441_v6  ;;  %v5442_v10 = vunpack.i.l.bf16 %v5441_v6 }
  0x8b   : > { %v341_v11 = vsel %vm338_vm1, %v5442_v10, %v337_v4  ;;  %v348_v12 = vsel %vm338_vm1, %v5443_v9, %v5442_v10  ;;  %v364_v13 = vsel %vm363_vm0, %v5447_v8, %v5448_v7 }
  0x8c   : > { %v345_v14 = vpop.permute.xlu0 %344  ;;  %346 = vrot.lane.b32.xlu0 %v341_v11, %s6349_s10  ;;  %v389_v15 = vpack.c.bf16 %v364_v13, %v348_v12  ;;  %v360_v16 = vpop.permute.xlu1 %359  ;;  %v388_v18 = vpack.c.bf16 %v5447_v8, %v341_v11 }
  0x8d   : > { %v365_v24 = vsel %vm363_vm0, %v5448_v7, %v360_v16  ;;  %v349_v25 = vsel %vm338_vm1, %v345_v14, %v5443_v9 }
  0x8e   : > { %448 = vrot.lane.b32.xlu1 %v389_v15, %s6351_s12  ;;  %v390_v28 = vpack.c.bf16 %v365_v24, %v349_v25 }
  0x90   : > { %v5451_v17 = vpop.permute.xlu0 %5450  ;;  %378 = vrot.lane.b32.xlu0 %v341_v11, %s6350_s11  ;;  %v377_v27 = vpop.permute.xlu1 %376 }
  0x91   : > { %v5453_v19 = vunpack.i.h.bf16 %v5451_v17  ;;  %v5452_v20 = vunpack.i.l.bf16 %v5451_v17 }
  0x92   : > { %446 = vrot.lane.b32.xlu1 %v388_v18, %s6351_s12 }
  0x93   : > { %v392_v21 = vpack.c.bf16 %v5452_v20, %v5452_v20  ;;  %v381_v22 = vsel %vm380_vm2, %v5452_v20, %v5453_v19  ;;  %v382_v29 = vsel %vm380_vm2, %v5453_v19, %v377_v27 }
  0x94   : > { %v393_v26 = vpack.c.bf16 %v381_v22, %v381_v22  ;;  %v394_v30 = vpack.c.bf16 %v382_v29, %v382_v29  ;;  %v362_v31 = vpop.permute.xlu1 %361 }
  0x95   : > { %454 = vrot.lane.b32.xlu0 %v392_v21, %s6351_s12  ;;  %v366_v33 = vsel %vm363_vm0, %v360_v16, %v362_v31 }
  0x96   : > { %456 = vrot.lane.b32.xlu1 %v393_v26, %s6351_s12 }
  0x99   : > { %450 = vrot.lane.b32.xlu0 %v390_v28, %s6351_s12 }
  0x9d   : > { %458 = vrot.lane.b32.xlu0 %v394_v30, %s6351_s12 }
  0xfe   : > { %v347_v32 = vpop.permute.xlu0 %346 }
  0xff   : > { %v350_v34 = vsel %vm338_vm1, %v347_v32, %v345_v14 }
 0x100   : > { %v391_v35 = vpack.c.bf16 %v366_v33, %v350_v34  ;;  %v449_v36 = vpop.permute.xlu1 %448 }
 0x102   : > { %v379_v37 = vpop.permute.xlu0 %378  ;;  %452 = vrot.lane.b32.xlu1 %v391_v35, %s6351_s12 }
 0x103   : > { %v383_v38 = vsel %vm380_vm2, %v377_v27, %v379_v37 }
 0x104   : > { %v395_v39 = vpack.c.bf16 %v383_v38, %v383_v38  ;;  %v447_v40 = vpop.permute.xlu1 %446 }
 0x105   : > { %v463_v45 = vsel %vm462_vm3, %v447_v40, %v449_v36 }
 0x106   : > { %460 = vrot.lane.b32.xlu0 %v395_v39, %s6351_s12 }
 0x107   : > { %v455_v41 = vpop.permute.xlu0 %454 }
 0x108   : > { %v457_v42 = vpop.permute.xlu1 %456 }
 0x109   : > { %v466_v46 = vsel %vm462_vm3, %v455_v41, %v457_v42 }
 0x10a   : > { %v494_v49 = vsel %vm492_vm4, %v466_v46, 0 }
 0x10b   : > { %v451_v43 = vpop.permute.xlu0 %450 }
 0x10c   : > { %v464_v44 = vsel %vm462_vm3, %v449_v36, %v451_v43 }
 0x10d   : > { %505 = vmatprep.subr.bf16.mxu0 %v464_v44 }
 0x10e   : > { %506 = vmatpush1.bf16.msra.mxu0 %v463_v45 }
 0x10f   : > { %v459_v47 = vpop.permute.xlu0 %458 }
 0x110   : > { %v467_v48 = vsel %vm462_vm3, %v457_v42, %v459_v47 }
 0x111   : > { %5302 = vmatprep.subr.msk.bf16.mxu0 %vm492_vm4, %v467_v48 }
 0x112   : > { %508 = vmatpush1.bf16.msra.mxu0 %v494_v49 }
 0x115   : > { %5303 = vmatmul.mubr.msk.bf16.vlgmr.msra.gmra.mrb[0].mxu0 %vm473_vm5, %v6094_v50 }
 0x116   : > { %547 = vmatprep.mubr.bf16.mxu0 %v10058_v23 }
 0x11d   : > { %5304 = vmatmul.mubr.msk.bf16.gmra.mrb[4].mxu0 %vm473_vm5, %v6095_v51 }
 0x11e   : > { %557 = vmatprep.mubr.bf16.mxu0 %v10058_v23 }
 0x125   : > { %5305 = vmatmul.mubr.msk.bf16.gmra.mrb[8].mxu0 %vm473_vm5, %v6096_v52 }
 0x126   : > { %567 = vmatprep.mubr.bf16.mxu0 %v10058_v23 }
 0x12d   : > { %5306 = vmatmul.mubr.msk.bf16.gmra.mrb[12].mxu0 %vm473_vm5, %v6097_v53 }
 0x12e   : > { %577 = vmatprep.mubr.bf16.mxu0 %v10058_v23 }
 0x135   : > { %5307 = vmatmul.mubr.msk.bf16.gmra.mrb[16].mxu0 %vm473_vm5, %v6098_v54 }
 0x136   : > { %587 = vmatprep.mubr.bf16.mxu0 %v10058_v23 }
 0x13d   : > { %5308 = vmatmul.mubr.msk.bf16.gmra.mrb[20].mxu0 %vm473_vm5, %v6099_v55 }
 0x13e   : > { %1606 = vmatprep.mubr.bf16.mxu0 %v10058_v23 }
 0x174   : > { %v453_v56 = vpop.permute.xlu1 %452 }
 0x175   : > { %598 = vmatprep.subr.bf16.mxu1 %v453_v56  ;;  %v465_v57 = vsel %vm462_vm3, %v451_v43, %v453_v56 }
 0x176   : > { %599 = vmatpush1.bf16.msra.mxu1 %v465_v57 }
 0x178   : > { %v461_v58 = vpop.permute.xlu0 %460 }
 0x179   : > { %5309 = vmatprep.subr.msk.bf16.mxu1 %vm492_vm4, %v461_v58  ;;  %v468_v59 = vsel %vm462_vm3, %v459_v47, %v461_v58 }
 0x17a   : > { %v500_v60 = vsel %vm492_vm4, %v468_v59, 0 }
 0x17b   : > { %601 = vmatpush1.bf16.msra.mxu1 %v500_v60 }
 0x17e   : > { %5310 = vmatmul.mubr.msk.bf16.vlgmr.msra.gmra.mrb[0].mxu1 %vm473_vm5, %v6094_v50 }
 0x17f   : > { %640 = vmatprep.mubr.bf16.mxu1 %v10058_v23 }
 0x186   : > { %5311 = vmatmul.mubr.msk.bf16.gmra.mrb[4].mxu1 %vm473_vm5, %v6095_v51 }
 0x187   : > { %650 = vmatprep.mubr.bf16.mxu1 %v10058_v23 }
 0x18e   : > { %5312 = vmatmul.mubr.msk.bf16.gmra.mrb[8].mxu1 %vm473_vm5, %v6096_v52 }
 0x18f   : > { %660 = vmatprep.mubr.bf16.mxu1 %v10058_v23 }
 0x196   : > { %5313 = vmatmul.mubr.msk.bf16.gmra.mrb[12].mxu1 %vm473_vm5, %v6097_v53 }
 0x197   : > { %670 = vmatprep.mubr.bf16.mxu1 %v10058_v23 }
 0x19e   : > { %5314 = vmatmul.mubr.msk.bf16.gmra.mrb[16].mxu1 %vm473_vm5, %v6098_v54 }
 0x19f   : > { %680 = vmatprep.mubr.bf16.mxu1 %v10058_v23 }
 0x1a6   : > { %5315 = vmatmul.mubr.msk.bf16.gmra.mrb[20].mxu1 %vm473_vm5, %v6099_v55 }
 0x1a7   : > { %1759 = vmatprep.mubr.bf16.mxu1 %v10058_v23 }
 0x1e8   : > { %v539_v61 = vpop.f32.mrb[0].mxu0 }
 0x1e9   : > { %691 = vrot.lane.b32.xlu1 %v539_v61, %s6349_s10  ;;  %v541_v62 = vpop.f32.mrb[1].mxu0  ;;  %v1018_v61 = vlaneseq }
 0x1ea   : > { %v543_v63 = vpop.f32.mrb[2].mxu0 }
 0x1eb   : > { %694 = vrot.lane.b32.xlu0 %v543_v63, %s6349_s10  ;;  %v545_v0 = vpop.f32.mrb[3].mxu0 }
 0x1ed   : > { %703 = vrot.lane.b32.xlu1 %v541_v62, %s6349_s10 }
 0x1ef   : > { %705 = vrot.lane.b32.xlu0 %v545_v0, %s6349_s10 }
 0x1f0   : > { %v549_v1 = vpop.f32.mrb[4].mxu0 }
 0x1f1   : > { %697 = vrot.lane.b32.xlu1 %v549_v1, %s6349_s10  ;;  %v551_v2 = vpop.f32.mrb[5].mxu0 }
 0x1f2   : > { %v553_v3 = vpop.f32.mrb[6].mxu0 }
 0x1f3   : > { %700 = vrot.lane.b32.xlu0 %v553_v3, %s6349_s10  ;;  %v555_v4 = vpop.f32.mrb[7].mxu0 }
 0x1f5   : > { %707 = vrot.lane.b32.xlu1 %v551_v2, %s6349_s10 }
 0x1f7   : > { %709 = vrot.lane.b32.xlu0 %v555_v4, %s6349_s10  ;;  %v1019_v4 = vshrl.u32 %v1018_v61, 7 }
 0x1f8   : > { %v559_v5 = vpop.f32.mrb[8].mxu0 }
 0x1f9   : > { %755 = vrot.lane.b32.xlu1 %v559_v5, %s6353_s29  ;;  %v561_v6 = vpop.f32.mrb[9].mxu0 }
 0x1fa   : > { %v563_v7 = vpop.f32.mrb[10].mxu0 }
 0x1fb   : > { %757 = vrot.lane.b32.xlu0 %v561_v6, %s6353_s29  ;;  %v565_v8 = vpop.f32.mrb[11].mxu0 }
 0x1fd   : > { %763 = vrot.lane.b32.xlu1 %v563_v7, %s6353_s29 }
 0x1ff   : > { %765 = vrot.lane.b32.xlu0 %v565_v8, %s6353_s29  ;;  %v6599_v8 = vsub.s32 0, %v1019_v4 }
 0x200   : > { %v569_v9 = vpop.f32.mrb[12].mxu0 }
 0x201   : > { %771 = vrot.lane.b32.xlu1 %v569_v9, %s6353_s29  ;;  %v571_v10 = vpop.f32.mrb[13].mxu0  ;;  %10137 = vst [vmem:[#allocation2_spill] sm:$0xff] %v6599_v8  ;;  %v333_v9 = vld [vmem:[%s10051_s1] sm:$0xf] }
 0x202   : > { %v573_v11 = vpop.f32.mrb[14].mxu0 }
 0x203   : > { %773 = vrot.lane.b32.xlu0 %v571_v10, %s6353_s29  ;;  %v575_v12 = vpop.f32.mrb[15].mxu0 }
 0x208   : > { %v579_v13 = vpop.f32.mrb[16].mxu0 }
 0x209   : > { %832 = vrot.lane.b32.xlu1 %v579_v13, %s6349_s10  ;;  %v581_v14 = vpop.f32.mrb[17].mxu0 }
 0x20a   : > { %862 = vrot.lane.b32.xlu0 %v581_v14, %s6354_s30  ;;  %v583_v15 = vpop.f32.mrb[18].mxu0 }
 0x20b   : > { %v585_v16 = vpop.f32.mrb[19].mxu0 }
 0x20d   : > { %860 = vrot.lane.b32.xlu1 %v579_v13, %s6354_s30  ;;  %v1028_v13 = vsub.s32 2, %v1019_v4 }
 0x20e   : > { %834 = vrot.lane.b32.xlu0 %v583_v15, %s6349_s10 }
 0x210   : > { %v589_v17 = vpop.f32.mrb[20].mxu0 }
 0x211   : > { %868 = vrot.lane.b32.xlu1 %v583_v15, %s6354_s30  ;;  %v591_v18 = vpop.f32.mrb[21].mxu0 }
 0x212   : > { %870 = vrot.lane.b32.xlu0 %v585_v16, %s6354_s30  ;;  %v593_v19 = vpop.f32.mrb[22].mxu0 }
 0x213   : > { %v595_v20 = vpop.f32.mrb[23].mxu0 }
 0x215   : > { %836 = vrot.lane.b32.xlu1 %v589_v17, %s6349_s10 }
 0x216   : > { %838 = vrot.lane.b32.xlu0 %v593_v19, %s6349_s10 }
 0x219   : > { %779 = vrot.lane.b32.xlu1 %v573_v11, %s6353_s29 }
 0x21a   : > { %781 = vrot.lane.b32.xlu0 %v575_v12, %s6353_s29  ;;  %v1021_v12 = vrot.slane %v333_v9, %v6599_v8 }
 0x21d   : > { %876 = vrot.lane.b32.xlu1 %v589_v17, %s6354_s30  ;;  %v1029_v17 = vrot.slane %v333_v9, %v1028_v13 }
 0x21e   : > { %878 = vrot.lane.b32.xlu0 %v591_v18, %s6354_s30  ;;  %v1024_v18 = vsub.s32 1, %v1019_v4 }
 0x221   : > { %884 = vrot.lane.b32.xlu1 %v593_v19, %s6354_s30 }
 0x222   : > { %886 = vrot.lane.b32.xlu0 %v595_v20, %s6354_s30  ;;  %v1025_v20 = vrot.slane %v333_v9, %v1024_v18 }
 0x251   : > { %v632_v21 = vpop.f32.mrb[0].mxu1 }
 0x252   : > { %711 = vrot.lane.b32.xlu1 %v632_v21, %s6349_s10  ;;  %v634_v22 = vpop.f32.mrb[1].mxu1  ;;  %v1032_v21 = vsub.s32 3, %v1019_v4 }
 0x253   : > { %v636_v24 = vpop.f32.mrb[2].mxu1 }
 0x254   : > { %713 = vrot.lane.b32.xlu0 %v636_v24, %s6349_s10  ;;  %v638_v25 = vpop.f32.mrb[3].mxu1 }
 0x259   : > { %v642_v26 = vpop.f32.mrb[4].mxu1 }
 0x25a   : > { %v644_v27 = vpop.f32.mrb[5].mxu1 }
 0x25b   : > { %v6529_v28 = vpop.permute.xlu1 %691  ;;  %v646_v29 = vpop.f32.mrb[6].mxu1 }
 0x25c   : > { %v6533_v30 = vsel %vm338_vm1, %v6529_v28, %v634_v22  ;;  %v648_v31 = vpop.f32.mrb[7].mxu1  ;;  %v1033_v22 = vrot.slane %v333_v9, %v1032_v21 }
 0x25d   : > { %v6535_v32 = vpop.permute.xlu0 %694  ;;  %719 = vrot.lane.b32.xlu1 %v6533_v30, %s6349_s10 }
 0x25e   : > { %v6541_v33 = vsel %vm338_vm1, %v6535_v32, %v638_v25 }
 0x25f   : > { %721 = vrot.lane.b32.xlu0 %v6541_v33, %s6349_s10  ;;  %v6545_v34 = vpop.permute.xlu1 %703 }
 0x261   : > { %v6547_v35 = vpop.permute.xlu0 %705  ;;  %715 = vrot.lane.b32.xlu1 %v642_v26, %s6349_s10  ;;  %v652_v36 = vpop.f32.mrb[8].mxu1 }
 0x262   : > { %v654_v37 = vpop.f32.mrb[9].mxu1 }
 0x263   : > { %717 = vrot.lane.b32.xlu0 %v646_v29, %s6349_s10  ;;  %v6551_v38 = vpop.permute.xlu1 %697  ;;  %v656_v39 = vpop.f32.mrb[10].mxu1 }
 0x264   : > { %v6555_v40 = vsel %vm338_vm1, %v6551_v38, %v644_v27  ;;  %v658_v41 = vpop.f32.mrb[11].mxu1 }
 0x265   : > { %v6557_v42 = vpop.permute.xlu0 %700  ;;  %723 = vrot.lane.b32.xlu1 %v6555_v40, %s6349_s10 }
 0x266   : > { %v6563_v43 = vsel %vm338_vm1, %v6557_v42, %v648_v31 }
 0x267   : > { %725 = vrot.lane.b32.xlu0 %v6563_v43, %s6349_s10  ;;  %v6567_v44 = vpop.permute.xlu1 %707 }
 0x269   : > { %v6569_v45 = vpop.permute.xlu0 %709  ;;  %759 = vrot.lane.b32.xlu1 %v652_v36, %s6353_s29  ;;  %v662_v46 = vpop.f32.mrb[12].mxu1 }
 0x26a   : > { %v664_v47 = vpop.f32.mrb[13].mxu1  ;;  %v730_v13 = vsel %vm338_vm1, %v6569_v45, %v6557_v42 }
 0x26b   : > { %761 = vrot.lane.b32.xlu0 %v654_v37, %s6353_s29  ;;  %v6573_v48 = vpop.permute.xlu1 %755  ;;  %v666_v49 = vpop.f32.mrb[14].mxu1 }
 0x26c   : > { %v668_v50 = vpop.f32.mrb[15].mxu1 }
 0x26d   : > { %v6575_v51 = vpop.permute.xlu0 %757  ;;  %767 = vrot.lane.b32.xlu1 %v656_v39, %s6353_s29 }
 0x26f   : > { %769 = vrot.lane.b32.xlu0 %v658_v41, %s6353_s29  ;;  %v6579_v52 = vpop.permute.xlu1 %763 }
 0x271   : > { %775 = vrot.lane.b32.xlu1 %v662_v46, %s6353_s29  ;;  %v672_v53 = vpop.f32.mrb[16].mxu1  ;;  %v6582_v54 = vpop.permute.xlu0 %765 }
 0x272   : > { %v674_v55 = vpop.f32.mrb[17].mxu1 }
 0x273   : > { %777 = vrot.lane.b32.xlu0 %v664_v47, %s6353_s29  ;;  %v676_v56 = vpop.f32.mrb[18].mxu1  ;;  %v6586_v58 = vpop.permute.xlu1 %771 }
 0x274   : > { %v678_v57 = vpop.f32.mrb[19].mxu1  ;;  %v824_v9 = vadd.f32 %v6586_v58, %v6555_v40 }
 0x275   : > { %783 = vrot.lane.b32.xlu1 %v666_v49, %s6353_s29  ;;  %v6589_v59 = vpop.permute.xlu0 %773 }
 0x277   : > { %785 = vrot.lane.b32.xlu0 %v668_v50, %s6353_s29 }
 0x279   : > { %864 = vrot.lane.b32.xlu1 %v672_v53, %s6354_s30  ;;  %v682_v60 = vpop.f32.mrb[20].mxu1  ;;  %v816_v53 = vadd.f32 %v6573_v48, %v6533_v30  ;;  %v791_v30 = vsel %vm787_vm6, %v6579_v52, %v6582_v54 }
 0x27a   : > { %v684_v62 = vpop.f32.mrb[21].mxu1 }
 0x27b   : > { %v833_v63 = vpop.permute.xlu1 %832  ;;  %v686_v0 = vpop.f32.mrb[22].mxu1 }
 0x27c   : > { %v6592_v1 = vpop.permute.xlu0 %862  ;;  %v840_v2 = vsel %vm338_vm1, %v833_v63, %v674_v55  ;;  %v688_v3 = vpop.f32.mrb[23].mxu1  ;;  %v788_v55 = vsel %vm787_vm6, %v6573_v48, %v6575_v51  ;;  %v728_v48 = vsel %vm338_vm1, %v6547_v35, %v6535_v32 }
 0x27d   : > { %872 = vrot.lane.b32.xlu1 %v676_v56, %s6354_s30  ;;  %866 = vrot.lane.b32.xlu0 %v840_v2, %s6354_s30  ;;  %v820_v2 = vadd.f32 %v6579_v52, %v6541_v33 }
 0x27f   : > { %v861_v5 = vpop.permute.xlu1 %860 }
 0x280   : > { %v835_v6 = vpop.permute.xlu0 %834  ;;  %v6649_v61 = vadd.f32 %v861_v5, %v816_v53 }
 0x281   : > { %880 = vrot.lane.b32.xlu1 %v682_v60, %s6354_s30  ;;  %v841_v7 = vsel %vm338_vm1, %v835_v6, %v678_v57  ;;  %v727_v57 = vsel %vm338_vm1, %v6545_v34, %v6529_v28  ;;  %v893_v60 = vsel %vm892_vm7, %v861_v5, %v6592_v1  ;;  %v794_v28 = vsel %vm787_vm6, %v6586_v58, %v6589_v59 }
 0x282   : > { %874 = vrot.lane.b32.xlu0 %v841_v7, %s6354_s30  ;;  %v817_v63 = vadd.f32 %v788_v55, %v727_v57  ;;  %v729_v5 = vsel %vm338_vm1, %v6567_v44, %v6551_v38  ;;  %v821_v6 = vadd.f32 %v791_v30, %v728_v48  ;;  %v953_v7 = vmul.f32 0.70710677, %v6649_v61 }
 0x283   : > { %v869_v10 = vpop.permute.xlu1 %868  ;;  %v825_v38 = vadd.f32 %v794_v28, %v729_v5 }
 0x284   : > { %v6605_v11 = vpop.permute.xlu0 %870  ;;  %v6670_v33 = vadd.f32 %v869_v10, %v820_v2  ;;  %6148 = verf.f32 %v953_v7 }
 0x285   : > { %888 = vrot.lane.b32.xlu1 %v686_v0, %s6354_s30  ;;  %v896_v4 = vsel %vm892_vm7, %v869_v10, %v6605_v11 }
 0x286   : > { %v957_v42 = vmul.f32 0.70710677, %v6670_v33 }
 0x287   : > { %v837_v14 = vpop.permute.xlu1 %836 }
 0x288   : > { %v842_v15 = vsel %vm338_vm1, %v837_v14, %v684_v62  ;;  %v839_v16 = vpop.permute.xlu0 %838  ;;  %v6679_v14 = vadd.f32 %v896_v4, %v821_v6 }
 0x289   : > { %1034 = vrot.lane.b32.xlu1 %v1021_v12, %s6353_s29  ;;  %882 = vrot.lane.b32.xlu0 %v842_v15, %s6354_s30  ;;  %v843_v19 = vsel %vm338_vm1, %v839_v16, %v688_v3  ;;  %v922_v3 = vadd.f32 %v893_v60, %v817_v63 }
 0x28a   : > { %v958_v21 = vmul.f32 0.70710677, %v6679_v14 }
 0x28b   : > { %v780_v24 = vpop.permute.xlu1 %779  ;;  %v954_v16 = vmul.f32 0.70710677, %v922_v3 }
 0x28c   : > { %v6617_v25 = vpop.permute.xlu0 %781  ;;  %v828_v40 = vadd.f32 %v780_v24, %v6563_v43 }
 0x28d   : > { %890 = vrot.lane.b32.xlu0 %v843_v19, %s6354_s30  ;;  %1038 = vrot.lane.b32.xlu1 %v1029_v17, %s6353_s29  ;;  %v797_v52 = vsel %vm787_vm6, %v780_v24, %v6617_v25  ;;  %6150 = verf.f32 %v954_v16 }
 0x28e   : > { %v829_v17 = vadd.f32 %v797_v52, %v730_v13  ;;  %6152 = verf.f32 %v957_v42  ;;  %v6149_v5 = vpop.eup %6148  ;;  %v937_v13 = vmul.f32 0.5, %v6649_v61 }
 0x28f   : > { %v877_v26 = vpop.permute.xlu1 %876  ;;  %6154 = verf.f32 %v958_v21  ;;  %v985_v16 = vadd.f32 1.0, %v6149_v5 }
 0x290   : > { %v6619_v27 = vpop.permute.xlu0 %878  ;;  %v6684_v58 = vadd.f32 %v877_v26, %v824_v9 }
 0x291   : > { %1036 = vrot.lane.b32.xlu0 %v1025_v20, %s6353_s29  ;;  %v899_v12 = vsel %vm892_vm7, %v877_v26, %v6619_v27 }
 0x292   : > { %v6688_v18 = vadd.f32 %v899_v12, %v825_v38  ;;  %v961_v24 = vmul.f32 0.70710677, %v6684_v58  ;;  %v938_v38 = vmul.f32 0.5, %v922_v3 }
 0x293   : > { %v885_v29 = vpop.permute.xlu1 %884 }
 0x294   : > { %v6621_v31 = vpop.permute.xlu0 %886  ;;  %v6693_v20 = vadd.f32 %v885_v29, %v828_v40  ;;  %v962_v53 = vmul.f32 0.70710677, %v6688_v18  ;;  %6156 = verf.f32 %v961_v24 }
 0x295   : > { %1040 = vrot.lane.b32.xlu0 %v1033_v22, %s6353_s29  ;;  %v902_v10 = vsel %vm892_vm7, %v885_v29, %v6621_v31 }
 0x296   : > { %v6696_v22 = vadd.f32 %v902_v10, %v829_v17  ;;  %v965_v55 = vmul.f32 0.70710677, %v6693_v20  ;;  %6158 = verf.f32 %v962_v53  ;;  %v941_v53 = vmul.f32 0.5, %v6670_v33 }
 0x297   : > { %v6151_v12 = vpop.eup %6150 }
 0x298   : > { %v966_v57 = vmul.f32 0.70710677, %v6696_v22  ;;  %6160 = verf.f32 %v965_v55  ;;  %v6153_v17 = vpop.eup %6152  ;;  %v986_v24 = vadd.f32 1.0, %v6151_v12 }
 0x299   : > { %v6155_v21 = vpop.eup %6154  ;;  %v989_v5 = vadd.f32 1.0, %v6153_v17 }
 0x29a   : > { %6162 = verf.f32 %v966_v57  ;;  %v6755_v57 = vmul.f32 %v985_v16, %v937_v13  ;;  %v949_v13 = vmul.f32 0.5, %v6693_v20 }
 0x29b   : > { %v1005_v12 = vmul.f32 %v989_v5, %v941_v53 }
 0x2c4   : > { %v6623_v36 = vpop.permute.xlu1 %711 }
 0x2c5   : > { %v731_v29 = vsel %vm338_vm1, %v6623_v36, %v6545_v34 }
 0x2c6   : > { %v6625_v37 = vpop.permute.xlu0 %713 }
 0x2c7   : > { %v732_v34 = vsel %vm338_vm1, %v6625_v37, %v6547_v35 }
 0x2cf   : > { %v6627_v39 = vpop.permute.xlu1 %719 }
 0x2d0   : > { %v735_v4 = vsel %vm338_vm1, %v6627_v39, %v6623_v36 }
 0x2d1   : > { %v6629_v41 = vpop.permute.xlu0 %721 }
 0x2d2   : > { %v736_v40 = vsel %vm338_vm1, %v6629_v41, %v6625_v37 }
 0x2d3   : > { %v6631_v46 = vpop.permute.xlu1 %715 }
 0x2d5   : > { %v6633_v47 = vpop.permute.xlu0 %717 }
 0x2d6   : > { %v734_v55 = vsel %vm338_vm1, %v6633_v47, %v6569_v45 }
 0x2d7   : > { %v6635_v49 = vpop.permute.xlu1 %723 }
 0x2d9   : > { %v6637_v50 = vpop.permute.xlu0 %725 }
 0x2db   : > { %v760_v56 = vpop.permute.xlu1 %759 }
 0x2dc   : > { %v789_v26 = vsel %vm787_vm6, %v6575_v51, %v760_v56 }
 0x2dd   : > { %v762_v62 = vpop.permute.xlu0 %761  ;;  %v818_v60 = vadd.f32 %v789_v26, %v731_v29  ;;  %v6157_v26 = vpop.eup %6156 }
 0x2de   : > { %v790_v48 = vsel %vm787_vm6, %v760_v56, %v762_v62  ;;  %v6159_v29 = vpop.eup %6158 }
 0x2df   : > { %v768_v0 = vpop.permute.xlu1 %767  ;;  %v819_v56 = vadd.f32 %v790_v48, %v735_v4 }
 0x2e0   : > { %v792_v51 = vsel %vm787_vm6, %v6582_v54, %v768_v0 }
 0x2e1   : > { %v770_v32 = vpop.permute.xlu0 %769  ;;  %v822_v62 = vadd.f32 %v792_v51, %v732_v34  ;;  %v6161_v51 = vpop.eup %6160 }
 0x2e2   : > { %v793_v52 = vsel %vm787_vm6, %v768_v0, %v770_v32  ;;  %v6163_v4 = vpop.eup %6162 }
 0x2e3   : > { %v6681_v15 = vpop.permute.xlu1 %775  ;;  %v823_v42 = vadd.f32 %v793_v52, %v736_v40 }
 0x2e5   : > { %v6690_v19 = vpop.permute.xlu0 %777 }
 0x2e6   : > { %v796_v33 = vsel %vm787_vm6, %v6681_v15, %v6690_v19 }
 0x2e7   : > { %v6698_v43 = vpop.permute.xlu1 %783 }
 0x2e8   : > { %v798_v61 = vsel %vm787_vm6, %v6617_v25, %v6698_v43 }
 0x2e9   : > { %v6709_v63 = vpop.permute.xlu0 %785 }
 0x2eb   : > { %v865_v30 = vpop.permute.xlu1 %864 }
 0x2ec   : > { %v894_v2 = vsel %vm892_vm7, %v6592_v1, %v865_v30  ;;  %v795_v1 = vsel %vm787_vm6, %v6589_v59, %v6681_v15  ;;  %v733_v59 = vsel %vm338_vm1, %v6631_v46, %v6567_v44 }
 0x2ed   : > { %v6716_v28 = vadd.f32 %v894_v2, %v818_v60  ;;  %v830_v60 = vadd.f32 %v798_v61, %v734_v55  ;;  %v945_v2 = vmul.f32 0.5, %v6684_v58  ;;  %v994_v58 = vadd.f32 1.0, %v6159_v29 }
 0x2ef   : > { %v867_v54 = vpop.permute.xlu0 %866  ;;  %v873_v6 = vpop.permute.xlu1 %872  ;;  %v955_v7 = vmul.f32 0.70710677, %v6716_v28  ;;  %v939_v17 = vmul.f32 0.5, %v6716_v28 }
 0x2f0   : > { %v895_v9 = vsel %vm892_vm7, %v865_v30, %v867_v54  ;;  %v897_v35 = vsel %vm892_vm7, %v6605_v11, %v873_v6  ;;  %v826_v11 = vadd.f32 %v795_v1, %v733_v59  ;;  %v993_v54 = vadd.f32 1.0, %v6157_v26 }
 0x2f1   : > { %v6732_v36 = vadd.f32 %v895_v9, %v819_v56  ;;  %v6734_v39 = vadd.f32 %v897_v35, %v822_v62  ;;  %6164 = verf.f32 %v955_v7  ;;  %v1002_v62 = vmul.f32 %v986_v24, %v938_v38 }
 0x2f2   : > { %v997_v1 = vadd.f32 1.0, %v6161_v51  ;;  %v946_v9 = vmul.f32 0.5, %v6688_v18  ;;  %v799_v35 = vsel %vm787_vm6, %v6698_v43, %v6709_v63  ;;  %v1009_v16 = vmul.f32 %v993_v54, %v945_v2 }
 0x2f3   : > { %v956_v0 = vmul.f32 0.70710677, %v6732_v36  ;;  %v959_v32 = vmul.f32 0.70710677, %v6734_v39  ;;  %v881_v10 = vpop.permute.xlu1 %880  ;;  %v950_v59 = vmul.f32 0.5, %v6696_v22  ;;  %v738_v18 = vsel %vm338_vm1, %v6637_v50, %v6633_v47 }
 0x2f4   : > { %v900_v44 = vsel %vm892_vm7, %v6619_v27, %v881_v10  ;;  %v875_v3 = vpop.permute.xlu0 %874  ;;  %v942_v27 = vmul.f32 0.5, %v6679_v14  ;;  %v990_v14 = vadd.f32 1.0, %v6155_v21  ;;  %v1013_v63 = vmul.f32 %v997_v1, %v949_v13 }
 0x2f5   : > { %6166 = verf.f32 %v956_v0  ;;  %v931_v37 = vadd.f32 %v900_v44, %v826_v11  ;;  %v898_v41 = vsel %vm892_vm7, %v873_v6, %v875_v3  ;;  %v737_v6 = vsel %vm338_vm1, %v6635_v49, %v6631_v46 }
 0x2f6   : > { %6168 = verf.f32 %v959_v32  ;;  %v928_v25 = vadd.f32 %v898_v41, %v823_v42  ;;  %v827_v7 = vadd.f32 %v796_v33, %v737_v6  ;;  %v1006_v40 = vmul.f32 %v990_v14, %v942_v27 }
 0x2f7   : > { %v963_v30 = vmul.f32 0.70710677, %v931_v37  ;;  %v889_v48 = vpop.permute.xlu1 %888  ;;  %v831_v11 = vadd.f32 %v799_v35, %v738_v18  ;;  %v1010_v32 = vmul.f32 %v994_v58, %v946_v9  ;;  %v940_v42 = vmul.f32 0.5, %v6732_v36 }
 0x2f8   : > { %v960_v34 = vmul.f32 0.70710677, %v928_v25  ;;  %v903_v45 = vsel %vm892_vm7, %v6621_v31, %v889_v48  ;;  %v998_v31 = vadd.f32 1.0, %v6163_v4  ;;  %v943_v44 = vmul.f32 0.5, %v6734_v39 }
 0x2f9   : > { %6170 = verf.f32 %v963_v30  ;;  %v935_v56 = vadd.f32 %v903_v45, %v830_v60  ;;  %v947_v24 = vmul.f32 0.5, %v931_v37  ;;  %v944_v41 = vmul.f32 0.5, %v928_v25 }
 0x2fa   : > { %6172 = verf.f32 %v960_v34  ;;  %v1014_v22 = vmul.f32 %v998_v31, %v950_v59 }
 0x2fb   : > { %v967_v15 = vmul.f32 0.70710677, %v935_v56  ;;  %v883_v19 = vpop.permute.xlu0 %882  ;;  %v6775_v49 = vpop.permute.xlu1 %1034  ;;  %v951_v26 = vmul.f32 0.5, %v935_v56 }
 0x2fc   : > { %v901_v52 = vsel %vm892_vm7, %v881_v10, %v883_v19  ;;  %10138 = vst [vmem:[#allocation3_spill] sm:$0xff] %v6775_v49  ;;  %v6165_v38 = vpop.eup %6164  ;;  %v6787_v28 = vmul.f32 %v6775_v49, %v1005_v12  ;;  %v1049_v37 = vmul.f32 %v6775_v49, %v6755_v57  ;;  %v6817_v1 = vmul.f32 %v6775_v49, %v1013_v63 }
 0x2fd   : > { %6174 = verf.f32 %v967_v15  ;;  %v6773_v46 = vadd.f32 %v901_v52, %v827_v7  ;;  %v987_v55 = vadd.f32 1.0, %v6165_v38  ;;  %v1057_v7 = vmul.f32 %v6775_v49, %v1009_v16 }
 0x2ff   : > { %v6167_v43 = vpop.eup %6166  ;;  %v964_v0 = vmul.f32 0.70710677, %v6773_v46  ;;  %v891_v20 = vpop.permute.xlu0 %890  ;;  %v1003_v31 = vmul.f32 %v987_v55, %v939_v17  ;;  %v948_v59 = vmul.f32 0.5, %v6773_v46 }
 0x300   : > { %v6169_v10 = vpop.eup %6168  ;;  %v904_v61 = vsel %vm892_vm7, %v889_v48, %v891_v20  ;;  %v1039_v50 = vpop.permute.xlu1 %1038  ;;  %v988_v21 = vadd.f32 1.0, %v6167_v43 }
 0x301   : > { %v991_v3 = vadd.f32 1.0, %v6169_v10  ;;  %6176 = verf.f32 %v964_v0  ;;  %v936_v47 = vadd.f32 %v904_v61, %v831_v11 }
 0x302   : > { %v1004_v33 = vmul.f32 %v988_v21, %v940_v42 }
 0x303   : > { %v6171_v53 = vpop.eup %6170  ;;  %v968_v29 = vmul.f32 0.70710677, %v936_v47  ;;  %v1037_v27 = vpop.permute.xlu0 %1036  ;;  %v1007_v36 = vmul.f32 %v991_v3, %v943_v44  ;;  %v952_v10 = vmul.f32 0.5, %v936_v47 }
 0x304   : > { %v6173_v60 = vpop.eup %6172  ;;  %v995_v30 = vadd.f32 1.0, %v6171_v53  ;;  %v6791_v39 = vsel %vm787_vm6, %v6775_v49, %v1037_v27  ;;  %v6794_v48 = vsel %vm787_vm6, %v1037_v27, %v1039_v50 }
 0x305   : > { %10139 = vst [vmem:[#allocation4_spill] sm:$0xff] %v6791_v39  ;;  %10140 = vst [vmem:[#allocation5_spill] sm:$0xff] %v6794_v48  ;;  %v992_v25 = vadd.f32 1.0, %v6173_v60  ;;  %6178 = verf.f32 %v968_v29  ;;  %v6799_v51 = vmul.f32 %v6791_v39, %v1006_v40  ;;  %v1050_v2 = vmul.f32 %v6791_v39, %v1002_v62 }
 0x306   : > { %v6803_v34 = vmul.f32 %v6791_v39, %v1014_v22  ;;  %v1058_v45 = vmul.f32 %v6791_v39, %v1010_v32  ;;  %v6807_v4 = vmul.f32 %v6794_v48, %v1007_v36  ;;  %v1011_v6 = vmul.f32 %v995_v30, %v947_v24 }
 0x307   : > { %v6175_v5 = vpop.eup %6174  ;;  %v1008_v56 = vmul.f32 %v992_v25, %v944_v41  ;;  %v1041_v14 = vpop.permute.xlu0 %1040  ;;  %v5459_v57 = vpack.i.bf16 %v6799_v51, %v6787_v28  ;;  %v6811_v54 = vpack.i.bf16 %v1050_v2, %v1049_v37  ;;  %v1051_v63 = vmul.f32 %v6794_v48, %v1003_v31 }
 0x308   : > { %v999_v58 = vadd.f32 1.0, %v6175_v5  ;;  %v6814_v62 = vsel %vm787_vm6, %v1039_v50, %v1041_v14  ;;  %v6830_v9 = vmul.f32 %v6794_v48, %v1011_v6  ;;  %v5469_v12 = vpack.i.bf16 %v6803_v34, %v6817_v1 }
 0x309   : > { %10141 = vst [vmem:[#allocation6_spill] sm:$0xff] %v6814_v62  ;;  %5460 = vrot.lane.b32.xlu0 %v5459_v57, %s6355_s13  ;;  %5455 = vrot.lane.b32.xlu1 %v6811_v54, %s6355_s13  ;;  %v6824_v15 = vmul.f32 %v6814_v62, %v1008_v56  ;;  %v6827_v19 = vmul.f32 %v6814_v62, %v1004_v33 }
 0x30a   : > { %v1015_v35 = vmul.f32 %v999_v58, %v951_v26  ;;  %v5464_v13 = vpack.i.bf16 %v1058_v45, %v1057_v7  ;;  %v5509_v38 = vpack.i.bf16 %v6807_v4, %v6799_v51  ;;  %v5539_v16 = vpack.i.bf16 %v6817_v1, %v6830_v9 }
 0x30b   : > { %v6177_v52 = vpop.eup %6176  ;;  %v5589_v43 = vpack.i.bf16 %v6824_v15, %v6827_v19  ;;  %v5479_v46 = vpack.i.bf16 %v6824_v15, %v6807_v4  ;;  %v5474_v32 = vpack.i.bf16 %v6827_v19, %v1051_v63  ;;  %v5504_v50 = vpack.i.bf16 %v6787_v28, %v1051_v63 }
 0x30c   : > { %v996_v18 = vadd.f32 1.0, %v6177_v52  ;;  %v6840_v40 = vmul.f32 %v6794_v48, %v1015_v35 }
 0x30d   : > { %5470 = vrot.lane.b32.xlu0 %v5469_v12, %s6355_s13  ;;  %5465 = vrot.lane.b32.xlu1 %v5464_v13, %s6355_s13 }
 0x30e   : > { %v1012_v11 = vmul.f32 %v996_v18, %v948_v59  ;;  %v5549_v0 = vpack.i.bf16 %v6840_v40, %v6803_v34 }
 0x30f   : > { %v6179_v20 = vpop.eup %6178 }
 0x310   : > { %v1000_v17 = vadd.f32 1.0, %v6179_v20  ;;  %v6853_v42 = vmul.f32 %v6814_v62, %v1012_v11 }
 0x311   : > { %5480 = vrot.lane.b32.xlu0 %v5479_v46, %s6355_s13  ;;  %5475 = vrot.lane.b32.xlu1 %v5474_v32, %s6355_s13 }
 0x312   : > { %v1016_v61 = vmul.f32 %v1000_v17, %v952_v10  ;;  %v5484_v22 = vpack.i.bf16 %v6853_v42, %v6830_v9 }
 0x314   : > { %v6860_v44 = vmul.f32 %v6814_v62, %v1016_v61 }
 0x315   : > { %5485 = vrot.lane.b32.xlu1 %v5484_v22, %s6355_s13 }
 0x316   : > { %v5489_v3 = vpack.i.bf16 %v6860_v44, %v6840_v40  ;;  %v5594_v47 = vpack.i.bf16 %v6860_v44, %v6853_v42 }
 0x318   : > { %5490 = vrot.lane.b32.xlu0 %v5489_v3, %s6355_s13 }
 0x31c   : > { %5505 = vrot.lane.b32.xlu0 %v5504_v50, %s6356_s14 }
 0x320   : > { %5515 = vrot.lane.b32.xlu0 %v5464_v13, %s6356_s14 }
 0x37b   : > { %v5461_v21 = vpop.permute.xlu0 %5460  ;;  %v5456_v24 = vpop.permute.xlu1 %5455 }
 0x37c   : > { %v5463_v41 = vunpack.i.h.bf16 %v5461_v21  ;;  %v5462_v26 = vunpack.i.l.bf16 %v5461_v21  ;;  %v5458_v53 = vunpack.i.h.bf16 %v5456_v24  ;;  %v5457_v55 = vunpack.i.l.bf16 %v5456_v24 }
 0x37e   : > { %v1114_v29 = vsel %vm1113_vm8, %v5457_v55, %v5458_v53  ;;  %v1117_v27 = vsel %vm1113_vm8, %v5462_v26, %v5463_v41 }
 0x37f   : > { %v5471_v36 = vpop.permute.xlu0 %5470  ;;  %v5466_v60 = vpop.permute.xlu1 %5465  ;;  %v5494_v30 = vpack.i.bf16 %v1117_v27, %v1114_v29 }
 0x380   : > { %v5473_v28 = vunpack.i.h.bf16 %v5471_v36  ;;  %v5472_v37 = vunpack.i.l.bf16 %v5471_v36  ;;  %v5468_v25 = vunpack.i.h.bf16 %v5466_v60  ;;  %v5467_v2 = vunpack.i.l.bf16 %v5466_v60 }
 0x381   : > { %5495 = vrot.lane.b32.xlu1 %v5494_v30, %s6349_s10 }
 0x382   : > { %v1120_v33 = vsel %vm1113_vm8, %v5467_v2, %v5468_v25  ;;  %v1123_v45 = vsel %vm1113_vm8, %v5472_v37, %v5473_v28 }
 0x383   : > { %v5481_v5 = vpop.permute.xlu0 %5480  ;;  %v5476_v56 = vpop.permute.xlu1 %5475  ;;  %v5519_v14 = vpack.i.bf16 %v1123_v45, %v1120_v33 }
 0x384   : > { %v5483_v57 = vunpack.i.h.bf16 %v5481_v5  ;;  %v5482_v6 = vunpack.i.l.bf16 %v5481_v5  ;;  %v5478_v58 = vunpack.i.h.bf16 %v5476_v56  ;;  %v5477_v7 = vunpack.i.l.bf16 %v5476_v56 }
 0x385   : > { %5520 = vrot.lane.b32.xlu0 %v5519_v14, %s6349_s10  ;;  %5500 = vrot.lane.b32.xlu1 %v6811_v54, %s6356_s14 }
 0x386   : > { %v1115_v31 = vsel %vm1113_vm8, %v5458_v53, %v5477_v7  ;;  %v1118_v35 = vsel %vm1113_vm8, %v5463_v41, %v5482_v6  ;;  %v1116_v13 = vsel %vm1113_vm8, %v5477_v7, %v5478_v58  ;;  %v1119_v59 = vsel %vm1113_vm8, %v5482_v6, %v5483_v57 }
 0x387   : > { %v6881_v52 = vpop.permute.xlu1 %5485  ;;  %v5524_v12 = vpack.i.bf16 %v1118_v35, %v1115_v31  ;;  %v5529_v46 = vpack.i.bf16 %v1119_v59, %v1116_v13  ;;  %v5559_v61 = vpack.i.bf16 %v1117_v27, %v1116_v13  ;;  %v5554_v22 = vpack.i.bf16 %v1115_v31, %v1114_v29 }
 0x388   : > { %v5488_v18 = vunpack.i.h.bf16 %v6881_v52  ;;  %v5487_v63 = vunpack.i.l.bf16 %v6881_v52  ;;  %v5564_v50 = vpack.i.bf16 %v1119_v59, %v1118_v35 }
 0x389   : > { %5525 = vrot.lane.b32.xlu0 %v5524_v12, %s6349_s10  ;;  %5510 = vrot.lane.b32.xlu1 %v5509_v38, %s6356_s14 }
 0x38a   : > { %v6892_v54 = vpop.permute.xlu0 %5490  ;;  %v1122_v32 = vsel %vm1113_vm8, %v5487_v63, %v5488_v18  ;;  %v1121_v4 = vsel %vm1113_vm8, %v5468_v25, %v5487_v63 }
 0x38b   : > { %v5493_v11 = vunpack.i.h.bf16 %v6892_v54  ;;  %v5492_v20 = vunpack.i.l.bf16 %v6892_v54  ;;  %v5569_v3 = vpack.i.bf16 %v1121_v4, %v1120_v33  ;;  %v5574_v34 = vpack.i.bf16 %v1123_v45, %v1122_v32 }
 0x38d   : > { %5530 = vrot.lane.b32.xlu1 %v5529_v46, %s6349_s10  ;;  %v1125_v10 = vsel %vm1113_vm8, %v5492_v20, %v5493_v11  ;;  %v1124_v51 = vsel %vm1113_vm8, %v5473_v28, %v5492_v20 }
 0x38e   : > { %v5544_v38 = vpack.i.bf16 %v1125_v10, %v1122_v32  ;;  %v5534_v17 = vpack.i.bf16 %v1124_v51, %v1121_v4  ;;  %v5579_v21 = vpack.i.bf16 %v1125_v10, %v1124_v51  ;;  %v6925_v1 = vpop.permute.xlu0 %5505 }
 0x38f   : > { %v5508_v27 = vunpack.i.h.bf16 %v6925_v1  ;;  %v5507_v36 = vunpack.i.l.bf16 %v6925_v1 }
 0x390   : > { %5545 = vrot.lane.b32.xlu0 %v5544_v38, %s6349_s10 }
 0x391   : > { %5535 = vrot.lane.b32.xlu1 %v5534_v17, %s6349_s10 }
 0x394   : > { %5550 = vrot.lane.b32.xlu0 %v5549_v0, %s6356_s14 }
 0x395   : > { %5540 = vrot.lane.b32.xlu1 %v5539_v16, %s6356_s14  ;;  %v6929_v16 = vpop.permute.xlu0 %5515 }
 0x396   : > { %v5517_v7 = vunpack.i.l.bf16 %v6929_v16 }
 0x398   : > { %5560 = vrot.lane.b32.xlu0 %v5559_v61, %s6350_s11 }
 0x399   : > { %5555 = vrot.lane.b32.xlu1 %v5554_v22, %s6350_s11 }
 0x39c   : > { %5570 = vrot.lane.b32.xlu0 %v5569_v3, %s6350_s11 }
 0x39d   : > { %5565 = vrot.lane.b32.xlu1 %v5564_v50, %s6350_s11 }
 0x3a0   : > { %5580 = vrot.lane.b32.xlu0 %v5579_v21, %s6350_s11 }
 0x3a1   : > { %5575 = vrot.lane.b32.xlu1 %v5574_v34, %s6350_s11 }
 0x3a4   : > { %5590 = vrot.lane.b32.xlu0 %v5589_v43, %s6356_s14 }
 0x3f3   : > { %v6927_v9 = vpop.permute.xlu1 %5495 }
 0x3f4   : > { %v5498_v40 = vunpack.i.h.bf16 %v6927_v9  ;;  %v5497_v0 = vunpack.i.l.bf16 %v6927_v9 }
 0x3f6   : > { %v1147_v24 = vsel %vm338_vm1, %v5498_v40, %v5483_v57  ;;  %v1144_v41 = vsel %vm338_vm1, %v5497_v0, %v5478_v58  ;;  %v5518_v58 = vunpack.i.h.bf16 %v6929_v16 }
 0x3f7   : > { %v5501_v26 = vpop.permute.xlu1 %5500  ;;  %v6937_v53 = vpack.i.bf16 %v1147_v24, %v1144_v41  ;;  %v6939_v15 = vpop.permute.xlu0 %5520  ;;  %v1315_v29 = vpack.c.bf16 %v1147_v24, %v1144_v41 }
 0x3f8   : > { %v5503_v19 = vunpack.i.h.bf16 %v5501_v26  ;;  %v5502_v43 = vunpack.i.l.bf16 %v5501_v26  ;;  %v5523_v31 = vunpack.i.h.bf16 %v6939_v15  ;;  %v5522_v35 = vunpack.i.l.bf16 %v6939_v15 }
 0x3f9   : > { %5585 = vrot.lane.b32.xlu1 %v6937_v53, %s6349_s10  ;;  %v1229_v32 = vsel %vm1222_vm9, %v5517_v7, %v5518_v58 }
 0x3fa   : > { %v1224_v28 = vsel %vm1222_vm9, %v5503_v19, %v5507_v36  ;;  %v1223_v37 = vsel %vm1222_vm9, %v5502_v43, %v5503_v19  ;;  %v1323_v57 = vpack.c.bf16 %v5508_v27, %v5502_v43  ;;  %v1153_v42 = vsel %vm338_vm1, %v5523_v31, %v5493_v11 }
 0x3fb   : > { %v6943_v55 = vpop.permute.xlu1 %5510  ;;  %v5526_v25 = vpop.permute.xlu0 %5525  ;;  %v1150_v44 = vsel %vm338_vm1, %v5522_v35, %v5488_v18 }
 0x3fc   : > { %v5513_v60 = vunpack.i.h.bf16 %v6943_v55  ;;  %v5512_v30 = vunpack.i.l.bf16 %v6943_v55  ;;  %v5528_v10 = vunpack.i.h.bf16 %v5526_v25  ;;  %v5527_v51 = vunpack.i.l.bf16 %v5526_v25 }
 0x3fd   : > { %1447 = vrot.lane.b32.xlu1 %v1315_v29, %s6351_s12  ;;  %v5599_v22 = vpack.i.bf16 %v1153_v42, %v1150_v44  ;;  %v1319_v3 = vpack.c.bf16 %v1153_v42, %v1150_v44 }
 0x3fe   : > { %v1226_v2 = vsel %vm1222_vm9, %v5508_v27, %v5512_v30  ;;  %v1227_v33 = vsel %vm1222_vm9, %v5512_v30, %v5513_v60  ;;  %v1178_v50 = vsel %vm338_vm1, %v5527_v51, %v5497_v0  ;;  %v1179_v21 = vsel %vm338_vm1, %v5528_v10, %v5498_v40 }
 0x3ff   : > { %v6958_v45 = vpop.permute.xlu1 %5530  ;;  %v1324_v5 = vpack.c.bf16 %v1226_v2, %v1223_v37  ;;  %v1325_v56 = vpack.c.bf16 %v1227_v33, %v1224_v28  ;;  %v1316_v40 = vpack.c.bf16 %v1179_v21, %v1178_v50 }
 0x400   : > { %v5533_v54 = vunpack.i.h.bf16 %v6958_v45  ;;  %v5532_v52 = vunpack.i.l.bf16 %v6958_v45 }
 0x401   : > { %1465 = vrot.lane.b32.xlu0 %v1324_v5, %s6351_s12  ;;  %1467 = vrot.lane.b32.xlu1 %v1325_v56, %s6351_s12 }
 0x402   : > { %v6962_v14 = vpop.permute.xlu0 %5545  ;;  %v1183_v34 = vsel %vm338_vm1, %v5533_v54, %v5528_v10  ;;  %v1182_v24 = vsel %vm338_vm1, %v5532_v52, %v5527_v51 }
 0x403   : > { %v5536_v6 = vpop.permute.xlu1 %5535  ;;  %v5548_v26 = vunpack.i.h.bf16 %v6962_v14  ;;  %v5547_v15 = vunpack.i.l.bf16 %v6962_v14  ;;  %v1317_v0 = vpack.c.bf16 %v1183_v34, %v1182_v24 }
 0x404   : > { %v5538_v19 = vunpack.i.h.bf16 %v5536_v6  ;;  %v5537_v43 = vunpack.i.l.bf16 %v5536_v6 }
 0x405   : > { %5595 = vrot.lane.b32.xlu0 %v5594_v47, %s6356_s14  ;;  %1463 = vrot.lane.b32.xlu1 %v1323_v57, %s6351_s12 }
 0x406   : > { %v6973_v12 = vpop.permute.xlu0 %5550  ;;  %v1181_v29 = vsel %vm338_vm1, %v5538_v19, %v5523_v31  ;;  %v1185_v27 = vsel %vm338_vm1, %v5548_v26, %v5538_v19  ;;  %v1180_v30 = vsel %vm338_vm1, %v5537_v43, %v5522_v35  ;;  %v1184_v28 = vsel %vm338_vm1, %v5547_v15, %v5537_v43 }
 0x407   : > { %v5553_v13 = vunpack.i.h.bf16 %v6973_v12  ;;  %v5552_v59 = vunpack.i.l.bf16 %v6973_v12  ;;  %v6977_v63 = vpop.permute.xlu1 %5540  ;;  %v1320_v5 = vpack.c.bf16 %v1181_v29, %v1180_v30  ;;  %v1321_v56 = vpack.c.bf16 %v1185_v27, %v1184_v28 }
 0x408   : > { %v5543_v20 = vunpack.i.h.bf16 %v6977_v63  ;;  %v5542_v46 = vunpack.i.l.bf16 %v6977_v63 }
 0x409   : > { %v1233_v47 = vsel %vm1222_vm9, %v5552_v59, %v5553_v13 }
 0x40a   : > { %v1232_v4 = vsel %vm1222_vm9, %v5543_v20, %v5552_v59  ;;  %v1230_v38 = vsel %vm1222_vm9, %v5518_v58, %v5542_v46  ;;  %v6997_v17 = vpop.permute.xlu0 %5560 }
 0x40b   : > { %v1328_v11 = vpack.c.bf16 %v1232_v4, %v1229_v32  ;;  %v1329_v18 = vpack.c.bf16 %v1233_v47, %v1230_v38  ;;  %v5556_v41 = vpop.permute.xlu1 %5555  ;;  %v5563_v58 = vunpack.i.h.bf16 %v6997_v17  ;;  %v5562_v59 = vunpack.i.l.bf16 %v6997_v17 }
 0x40c   : > { %v5558_v32 = vunpack.i.h.bf16 %v5556_v41  ;;  %v5557_v42 = vunpack.i.l.bf16 %v5556_v41  ;;  %v1327_v47 = vpack.c.bf16 %v5543_v20, %v5517_v7 }
 0x40d   : > { %1473 = vrot.lane.b32.xlu0 %v1328_v11, %s6351_s12  ;;  %1475 = vrot.lane.b32.xlu1 %v1329_v18, %s6351_s12 }
 0x40e   : > { %v7003_v61 = vpop.permute.xlu0 %5570  ;;  %v1287_v16 = vsel %vm380_vm2, %v5557_v42, %v5558_v32  ;;  %v1331_v18 = vpack.c.bf16 %v5563_v58, %v5557_v42 }
 0x40f   : > { %v7029_v37 = vpop.permute.xlu1 %5565  ;;  %v5572_v11 = vunpack.i.l.bf16 %v7003_v61 }
 0x410   : > { %v5568_v57 = vunpack.i.h.bf16 %v7029_v37  ;;  %v5567_v6 = vunpack.i.l.bf16 %v7029_v37 }
 0x411   : > { %5600 = vrot.lane.b32.xlu0 %v5599_v22, %s6349_s10  ;;  %1455 = vrot.lane.b32.xlu1 %v1319_v3, %s6351_s12 }
 0x412   : > { %v7019_v9 = vpop.permute.xlu0 %5580  ;;  %v1290_v1 = vsel %vm380_vm2, %v5563_v58, %v5567_v6  ;;  %v1291_v55 = vsel %vm380_vm2, %v5567_v6, %v5568_v57 }
 0x413   : > { %v1332_v7 = vpack.c.bf16 %v1290_v1, %v1287_v16  ;;  %v5583_v10 = vunpack.i.h.bf16 %v7019_v9  ;;  %v5582_v51 = vunpack.i.l.bf16 %v7019_v9 }
 0x415   : > { %1449 = vrot.lane.b32.xlu0 %v1316_v40, %s6351_s12  ;;  %1451 = vrot.lane.b32.xlu1 %v1317_v0, %s6351_s12  ;;  %v1297_v3 = vsel %vm380_vm2, %v5582_v51, %v5583_v10 }
 0x416   : > { %v5591_v25 = vpop.permute.xlu0 %5590 }
 0x417   : > { %v5593_v2 = vunpack.i.h.bf16 %v5591_v25  ;;  %v5592_v33 = vunpack.i.l.bf16 %v5591_v25 }
 0x419   : > { %v1225_v31 = vsel %vm1222_vm9, %v5507_v36, %v5592_v33  ;;  %v1228_v35 = vsel %vm1222_vm9, %v5513_v60, %v5593_v2  ;;  %1457 = vrot.lane.b32.xlu0 %v1320_v5, %s6351_s12  ;;  %1459 = vrot.lane.b32.xlu1 %v1321_v56, %s6351_s12  ;;  %v7051_v36 = vpop.permute.xlu1 %5575  ;;  %v1288_v60 = vsel %vm380_vm2, %v5558_v32, %v5562_v59 }
 0x41a   : > { %v1326_v44 = vpack.c.bf16 %v1228_v35, %v1225_v31  ;;  %v1333_v20 = vpack.c.bf16 %v1291_v55, %v1288_v60  ;;  %v5578_v4 = vunpack.i.h.bf16 %v7051_v36  ;;  %v5577_v38 = vunpack.i.l.bf16 %v7051_v36  ;;  %v6100_v36 = vld [vmem:[%s10053_s3] sm:$0xff]  }
 0x41c   : > { %v1296_v50 = vsel %vm380_vm2, %v5578_v4, %v5582_v51 }
 0x41d   : > { %5605 = vrot.lane.b32.xlu0 %v6937_v53, %s6350_s11  ;;  %1471 = vrot.lane.b32.xlu1 %v1327_v47, %s6351_s12  ;;  %v5573_v53 = vunpack.i.h.bf16 %v7003_v61  ;;  %v1335_v61 = vpack.c.bf16 %v5578_v4, %v5572_v11 }
 0x41f   : > { %v1294_v21 = vsel %vm380_vm2, %v5573_v53, %v5577_v38  ;;  %v1293_v34 = vsel %vm380_vm2, %v5572_v11, %v5573_v53 }
 0x420   : > { %v1336_v24 = vpack.c.bf16 %v1296_v50, %v1293_v34  ;;  %v1337_v41 = vpack.c.bf16 %v1297_v3, %v1294_v21 }
 0x421   : > { %1481 = vrot.lane.b32.xlu0 %v1332_v7, %s6351_s12  ;;  %1483 = vrot.lane.b32.xlu1 %v1333_v20, %s6351_s12 }
 0x425   : > { %5610 = vrot.lane.b32.xlu0 %v5599_v22, %s6350_s11  ;;  %1479 = vrot.lane.b32.xlu1 %v1331_v18, %s6351_s12 }
 0x429   : > { %1489 = vrot.lane.b32.xlu0 %v1336_v24, %s6351_s12  ;;  %1491 = vrot.lane.b32.xlu1 %v1337_v41, %s6351_s12 }
 0x42d   : > { %1487 = vrot.lane.b32.xlu0 %v1335_v61, %s6351_s12 }
 0x46b   : > { %v5586_v19 = vpop.permute.xlu1 %5585 }
 0x46c   : > { %v5588_v43 = vunpack.i.h.bf16 %v5586_v19  ;;  %v5587_v40 = vunpack.i.l.bf16 %v5586_v19 }
 0x46e   : > { %v1187_v22 = vsel %vm338_vm1, %v5588_v43, %v5533_v54  ;;  %v1186_v0 = vsel %vm338_vm1, %v5587_v40, %v5532_v52 }
 0x46f   : > { %v1448_v29 = vpop.permute.xlu1 %1447  ;;  %v1318_v27 = vpack.c.bf16 %v1187_v22, %v1186_v0  ;;  %v6102_v0 = vld [vmem:[%s10053_s3 + $0x10] sm:$0xff]  }
 0x471   : > { %1453 = vrot.lane.b32.xlu1 %v1318_v27, %s6351_s12  ;;  %v6104_v27 = vld [vmem:[%s10053_s3 + $0x20] sm:$0xff]  }
 0x473   : > { %v1466_v30 = vpop.permute.xlu0 %1465  ;;  %v7088_v28 = vpop.permute.xlu1 %1467 }
 0x475   : > { %1469 = vrot.lane.b32.xlu1 %v1326_v44, %s6351_s12 }
 0x477   : > { %v5596_v25 = vpop.permute.xlu0 %5595  ;;  %v1464_v2 = vpop.permute.xlu1 %1463 }
 0x478   : > { %v5598_v6 = vunpack.i.h.bf16 %v5596_v25  ;;  %v5597_v45 = vunpack.i.l.bf16 %v5596_v25  ;;  %v7135_v51 = vsel %vm462_vm3, %v1464_v2, %v1466_v30  ;;  %v6106_v25 = vld [vmem:[%s10053_s3 + $0x30] sm:$0xff]   ;;  %v6107_v2 = vld [vmem:[%s10053_s3 + $0x38] sm:$0xff]  }
 0x479   : > { %10147 = vst [vmem:[#allocation12_spill] sm:$0xff] %v7135_v51 }
 0x47a   : > { %v1234_v47 = vsel %vm1222_vm9, %v5553_v13, %v5598_v6  ;;  %v1231_v1 = vsel %vm1222_vm9, %v5542_v46, %v5597_v45  ;;  %v6109_v6 = vld [vmem:[%s10053_s3 + $0x48] sm:$0xff]   ;;  %v6110_v45 = vld [vmem:[%s10053_s3 + $0x50] sm:$0xff]  }
 0x47b   : > { %v1330_v13 = vpack.c.bf16 %v1234_v47, %v1231_v1 }
 0x47f   : > { %v1474_v33 = vpop.permute.xlu0 %1473  ;;  %v7091_v5 = vpop.permute.xlu1 %1475 }
 0x480   : > { %v7146_v11 = vsel %vm462_vm3, %v1474_v33, %v7091_v5 }
 0x481   : > { %10148 = vst [vmem:[#allocation13_spill] sm:$0xff] %v7146_v11 }
 0x483   : > { %v5601_v56 = vpop.permute.xlu0 %5600  ;;  %v1456_v54 = vpop.permute.xlu1 %1455 }
 0x484   : > { %v5603_v58 = vunpack.i.h.bf16 %v5601_v56  ;;  %v5602_v52 = vunpack.i.l.bf16 %v5601_v56 }
 0x486   : > { %v1189_v31 = vsel %vm338_vm1, %v5603_v58, %v5548_v26  ;;  %v1188_v35 = vsel %vm338_vm1, %v5602_v52, %v5547_v15  ;;  %v7131_v15 = vsel %vm462_vm3, %v1466_v30, %v7088_v28  ;;  %v6105_v30 = vld [vmem:[%s10053_s3 + $0x28] sm:$0xff]   ;;  %v6111_v58 = vld [vmem:[%s10053_s3 + $0x58] sm:$0xff]  }
 0x487   : > { %v1450_v32 = vpop.permute.xlu0 %1449  ;;  %v7099_v42 = vpop.permute.xlu1 %1451  ;;  %v1322_v44 = vpack.c.bf16 %v1189_v31, %v1188_v35  ;;  %10146 = vst [vmem:[#allocation11_spill] sm:$0xff] %v7131_v15 }
 0x488   : > { %v7109_v55 = vsel %vm462_vm3, %v1450_v32, %v7099_v42  ;;  %v7112_v14 = vsel %vm462_vm3, %v1448_v29, %v1450_v32  ;;  %v6103_v29 = vld [vmem:[%s10053_s3 + $0x18] sm:$0xff]  }
 0x489   : > { %10142 = vst [vmem:[#allocation7_spill] sm:$0xff] %v7109_v55  ;;  %10143 = vst [vmem:[#allocation8_spill] sm:$0xff] %v7112_v14  ;;  %1461 = vrot.lane.b32.xlu0 %v1322_v44, %s6351_s12  ;;  %1574 = vmatprep.subr.bf16.mxu0 %v7109_v55 }
 0x48a   : > { %1575 = vmatpush1.bf16.msra.mxu0 %v7112_v14 }
 0x48b   : > { %v1458_v12 = vpop.permute.xlu0 %1457  ;;  %v7117_v26 = vpop.permute.xlu1 %1459 }
 0x48c   : > { %v7121_v63 = vsel %vm462_vm3, %v1458_v12, %v7117_v26  ;;  %v7124_v46 = vsel %vm462_vm3, %v1456_v54, %v1458_v12 }
 0x48d   : > { %10144 = vst [vmem:[#allocation9_spill] sm:$0xff] %v7121_v63  ;;  %10145 = vst [vmem:[#allocation10_spill] sm:$0xff] %v7124_v46  ;;  %1477 = vrot.lane.b32.xlu0 %v1330_v13, %s6351_s12  ;;  %1576 = vmatprep.subr.bf16.mxu0 %v7121_v63 }
 0x48e   : > { %1577 = vmatpush1.bf16.msra.mxu0 %v7124_v46 }
 0x48f   : > { %v5606_v60 = vpop.permute.xlu0 %5605  ;;  %1578 = vmatprep.subr.bf16.mxu0 %v7131_v15  ;;  %v1472_v16 = vpop.permute.xlu1 %1471 }
 0x490   : > { %v5608_v7 = vunpack.i.h.bf16 %v5606_v60  ;;  %v5607_v20 = vunpack.i.l.bf16 %v5606_v60  ;;  %v7152_v37 = vsel %vm462_vm3, %v1472_v16, %v1474_v33  ;;  %v6108_v33 = vld [vmem:[%s10053_s3 + $0x40] sm:$0xff]  }
 0x491   : > { %10149 = vst [vmem:[#allocation14_spill] sm:$0xff] %v7152_v37 }
 0x492   : > { %v1292_v4 = vsel %vm380_vm2, %v5568_v57, %v5608_v7  ;;  %v1289_v53 = vsel %vm380_vm2, %v5562_v59, %v5607_v20  ;;  %1579 = vmatpush1.bf16.msra.mxu0 %v7135_v51 }
 0x493   : > { %v1482_v18 = vpop.permute.xlu0 %1481  ;;  %1580 = vmatprep.subr.bf16.mxu0 %v7146_v11  ;;  %v7149_v3 = vpop.permute.xlu1 %1483  ;;  %v1334_v50 = vpack.c.bf16 %v1292_v4, %v1289_v53 }
 0x494   : > { %v7158_v17 = vsel %vm462_vm3, %v1482_v18, %v7149_v3 }
 0x495   : > { %1485 = vrot.lane.b32.xlu1 %v1334_v50, %s6351_s12  ;;  %10150 = vst [vmem:[#allocation15_spill] sm:$0xff] %v7158_v17 }
 0x496   : > { %1581 = vmatpush1.bf16.msra.mxu0 %v7152_v37 }
 0x497   : > { %v5611_v57 = vpop.permute.xlu0 %5610  ;;  %1582 = vmatprep.subr.bf16.mxu0 %v7158_v17  ;;  %v1480_v59 = vpop.permute.xlu1 %1479 }
 0x498   : > { %v5613_v21 = vunpack.i.h.bf16 %v5611_v57  ;;  %v5612_v34 = vunpack.i.l.bf16 %v5611_v57  ;;  %v7162_v24 = vsel %vm462_vm3, %v1480_v59, %v1482_v18 }
 0x499   : > { %10151 = vst [vmem:[#allocation16_spill] sm:$0xff] %v7162_v24 }
 0x49a   : > { %v1298_v41 = vsel %vm380_vm2, %v5583_v10, %v5613_v21  ;;  %v1295_v61 = vsel %vm380_vm2, %v5577_v38, %v5612_v34  ;;  %1583 = vmatpush1.bf16.msra.mxu0 %v7162_v24  ;;  %v6101_v38 = vld [vmem:[%s10053_s3 + $0x8] sm:$0xff]  }
 0x49b   : > { %v1490_v19 = vpop.permute.xlu0 %1489  ;;  %v7171_v43 = vpop.permute.xlu1 %1491  ;;  %v1338_v40 = vpack.c.bf16 %v1298_v41, %v1295_v61 }
 0x49c   : > { %v7175_v22 = vsel %vm462_vm3, %v1490_v19, %v7171_v43 }
 0x49d   : > { %10152 = vst [vmem:[#allocation17_spill] sm:$0xff] %v7175_v22  ;;  %1493 = vrot.lane.b32.xlu0 %v1338_v40, %s6351_s12  ;;  %1584 = vmatprep.subr.bf16.mxu0 %v7175_v22 }
 0x49f   : > { %v1488_v9 = vpop.permute.xlu0 %1487 }
 0x4a0   : > { %v7180_v10 = vsel %vm462_vm3, %v1488_v9, %v1490_v19 }
 0x4a1   : > { %10153 = vst [vmem:[#allocation18_spill] sm:$0xff] %v7180_v10  ;;  %1585 = vmatpush1.bf16.msra.mxu0 %v7180_v10 }
 0x4a4   : > { %5328 = vmatmul.mubr.msk.bf16.vlgmr.msra.gmra.mrb[24].mxu0 %vm1537_vm10, %v6100_v36 }
 0x4a5   : > { %1616 = vmatprep.mubr.bf16.mxu0 %v10058_v23 }
 0x4ac   : > { %5329 = vmatmul.mubr.msk.bf16.gmra.mrb[28].mxu0 %vm1537_vm10, %v6101_v38 }
 0x4ad   : > { %1626 = vmatprep.mubr.bf16.mxu0 %v10058_v23 }
 0x4b4   : > { %5330 = vmatmul.mubr.msk.bf16.gmra.mrb[32].mxu0 %vm1537_vm10, %v6102_v0 }
 0x4b5   : > { %1636 = vmatprep.mubr.bf16.mxu0 %v10058_v23 }
 0x4bc   : > { %5331 = vmatmul.mubr.msk.bf16.gmra.mrb[36].mxu0 %vm1537_vm10, %v6103_v29 }
 0x4bd   : > { %1646 = vmatprep.mubr.bf16.mxu0 %v10058_v23 }
 0x4c4   : > { %5332 = vmatmul.mubr.msk.bf16.gmra.mrb[40].mxu0 %vm1537_vm10, %v6104_v27 }
 0x4c5   : > { %1656 = vmatprep.mubr.bf16.mxu0 %v10058_v23 }
 0x4cc   : > { %5333 = vmatmul.mubr.msk.bf16.gmra.mrb[44].mxu0 %vm1537_vm10, %v6105_v30 }
 0x4cd   : > { %1666 = vmatprep.mubr.bf16.mxu0 %v10058_v23 }
 0x4d4   : > { %5334 = vmatmul.mubr.msk.bf16.gmra.mrb[48].mxu0 %vm1537_vm10, %v6106_v25 }
 0x4d5   : > { %1676 = vmatprep.mubr.bf16.mxu0 %v10058_v23 }
 0x4dc   : > { %5335 = vmatmul.mubr.msk.bf16.gmra.mrb[52].mxu0 %vm1537_vm10, %v6107_v2 }
 0x4dd   : > { %1686 = vmatprep.mubr.bf16.mxu0 %v10058_v23 }
 0x4e3   : > { %v7226_v56 = vpop.permute.xlu1 %1453 }
 0x4e4   : > { %10154 = vst [vmem:[#allocation19_spill] sm:$0xff] %v7226_v56  ;;  %1727 = vmatprep.subr.bf16.mxu1 %v7226_v56  ;;  %v7232_v54 = vsel %vm462_vm3, %v7099_v42, %v7226_v56  ;;  %5336 = vmatmul.mubr.msk.bf16.gmra.mrb[56].mxu0 %vm1537_vm10, %v6108_v33 }
 0x4e5   : > { %10155 = vst [vmem:[#allocation20_spill] sm:$0xff] %v7232_v54  ;;  %1728 = vmatpush1.bf16.msra.mxu1 %v7232_v54  ;;  %1696 = vmatprep.mubr.bf16.mxu0 %v10058_v23 }
 0x4e7   : > { %v7259_v35 = vpop.permute.xlu1 %1469 }
 0x4e8   : > { %10158 = vst [vmem:[#allocation23_spill] sm:$0xff] %v7259_v35  ;;  %v7266_v32 = vsel %vm462_vm3, %v7088_v28, %v7259_v35 }
 0x4e9   : > { %10159 = vst [vmem:[#allocation24_spill] sm:$0xff] %v7266_v32 }
 0x4ec   : > { %5337 = vmatmul.mubr.msk.bf16.gmra.mrb[60].mxu0 %vm1537_vm10, %v6109_v6 }
 0x4ed   : > { %1706 = vmatprep.mubr.bf16.mxu0 %v10058_v23 }
 0x4f4   : > { %5338 = vmatmul.mubr.msk.bf16.gmra.mrb[64].mxu0 %vm1537_vm10, %v6110_v45 }
 0x4f5   : > { %1716 = vmatprep.mubr.bf16.mxu0 %v10058_v23 }
 0x4fb   : > { %v7250_v52 = vpop.permute.xlu0 %1461 }
 0x4fc   : > { %10156 = vst [vmem:[#allocation21_spill] sm:$0xff] %v7250_v52  ;;  %1729 = vmatprep.subr.bf16.mxu1 %v7250_v52  ;;  %v7256_v31 = vsel %vm462_vm3, %v7117_v26, %v7250_v52  ;;  %5339 = vmatmul.mubr.msk.bf16.gmra.mrb[68].mxu0 %vm1537_vm10, %v6111_v58 }
 0x4fd   : > { %10157 = vst [vmem:[#allocation22_spill] sm:$0xff] %v7256_v31  ;;  %1730 = vmatpush1.bf16.msra.mxu1 %v7256_v31 }
 0x4fe   : > { %1731 = vmatprep.subr.bf16.mxu1 %v7259_v35 }
 0x4ff   : > { %v7268_v42 = vpop.permute.xlu0 %1477 }
 0x500   : > { %10160 = vst [vmem:[#allocation25_spill] sm:$0xff] %v7268_v42  ;;  %v7275_v44 = vsel %vm462_vm3, %v7091_v5, %v7268_v42 }
 0x501   : > { %1732 = vmatpush1.bf16.msra.mxu1 %v7266_v32  ;;  %10161 = vst [vmem:[#allocation26_spill] sm:$0xff] %v7275_v44 }
 0x502   : > { %1733 = vmatprep.subr.bf16.mxu1 %v7268_v42 }
 0x505   : > { %1734 = vmatpush1.bf16.msra.mxu1 %v7275_v44 }
 0x507   : > { %v7278_v47 = vpop.permute.xlu1 %1485 }
 0x508   : > { %10162 = vst [vmem:[#allocation27_spill] sm:$0xff] %v7278_v47  ;;  %1735 = vmatprep.subr.bf16.mxu1 %v7278_v47  ;;  %v7284_v28 = vsel %vm462_vm3, %v7149_v3, %v7278_v47 }
 0x509   : > { %10163 = vst [vmem:[#allocation28_spill] sm:$0xff] %v7284_v28  ;;  %1736 = vmatpush1.bf16.msra.mxu1 %v7284_v28 }
 0x50f   : > { %v7287_v1 = vpop.permute.xlu0 %1493 }
 0x510   : > { %10164 = vst [vmem:[#allocation29_spill] sm:$0xff] %v7287_v1  ;;  %1737 = vmatprep.subr.bf16.mxu1 %v7287_v1  ;;  %v7293_v5 = vsel %vm462_vm3, %v7171_v43, %v7287_v1 }
 0x511   : > { %10165 = vst [vmem:[#allocation30_spill] sm:$0xff] %v7293_v5  ;;  %1738 = vmatpush1.bf16.msra.mxu1 %v7293_v5 }
 0x514   : > { %5340 = vmatmul.mubr.msk.bf16.vlgmr.msra.gmra.mrb[24].mxu1 %vm1537_vm10, %v6100_v36 }
 0x515   : > { %1769 = vmatprep.mubr.bf16.mxu1 %v10058_v23 }
 0x51c   : > { %5341 = vmatmul.mubr.msk.bf16.gmra.mrb[28].mxu1 %vm1537_vm10, %v6101_v38 }
 0x51d   : > { %1779 = vmatprep.mubr.bf16.mxu1 %v10058_v23 }
 0x524   : > { %5342 = vmatmul.mubr.msk.bf16.gmra.mrb[32].mxu1 %vm1537_vm10, %v6102_v0 }
 0x525   : > { %1789 = vmatprep.mubr.bf16.mxu1 %v10058_v23 }
 0x52c   : > { %5343 = vmatmul.mubr.msk.bf16.gmra.mrb[36].mxu1 %vm1537_vm10, %v6103_v29 }
 0x52d   : > { %1799 = vmatprep.mubr.bf16.mxu1 %v10058_v23 }
 0x534   : > { %5344 = vmatmul.mubr.msk.bf16.gmra.mrb[40].mxu1 %vm1537_vm10, %v6104_v27 }
 0x535   : > { %1809 = vmatprep.mubr.bf16.mxu1 %v10058_v23 }
 0x53c   : > { %5345 = vmatmul.mubr.msk.bf16.gmra.mrb[44].mxu1 %vm1537_vm10, %v6105_v30 }
 0x53d   : > { %1819 = vmatprep.mubr.bf16.mxu1 %v10058_v23 }
 0x544   : > { %5346 = vmatmul.mubr.msk.bf16.gmra.mrb[48].mxu1 %vm1537_vm10, %v6106_v25 }
 0x545   : > { %1829 = vmatprep.mubr.bf16.mxu1 %v10058_v23 }
 0x54c   : > { %5347 = vmatmul.mubr.msk.bf16.gmra.mrb[52].mxu1 %vm1537_vm10, %v6107_v2 }
 0x54d   : > { %1839 = vmatprep.mubr.bf16.mxu1 %v10058_v23 }
 0x554   : > { %5348 = vmatmul.mubr.msk.bf16.gmra.mrb[56].mxu1 %vm1537_vm10, %v6108_v33 }
 0x555   : > { %1849 = vmatprep.mubr.bf16.mxu1 %v10058_v23 }
 0x55c   : > { %5349 = vmatmul.mubr.msk.bf16.gmra.mrb[60].mxu1 %vm1537_vm10, %v6109_v6 }
 0x55d   : > { %1859 = vmatprep.mubr.bf16.mxu1 %v10058_v23 }
 0x564   : > { %5350 = vmatmul.mubr.msk.bf16.gmra.mrb[64].mxu1 %vm1537_vm10, %v6110_v45 }
 0x565   : > { %1869 = vmatprep.mubr.bf16.mxu1 %v10058_v23 }
 0x56c   : > { %5351 = vmatmul.mubr.msk.bf16.gmra.mrb[68].mxu1 %vm1537_vm10, %v6111_v58 }
 0x577   : > { %v1608_v12 = vpop.f32.mrb[24].mxu0 }
 0x578   : > { %v1610_v26 = vpop.f32.mrb[25].mxu0 }
 0x579   : > { %v1612_v13 = vpop.f32.mrb[26].mxu0 }
 0x57a   : > { %v1614_v60 = vpop.f32.mrb[27].mxu0 }
 0x57f   : > { %v1618_v16 = vpop.f32.mrb[28].mxu0 }
 0x580   : > { %v7319_v7 = vpop.f32.mrb[29].mxu0 }
 0x581   : > { %v1622_v20 = vpop.f32.mrb[30].mxu0 }
 0x582   : > { %v1624_v4 = vpop.f32.mrb[31].mxu0 }
 0x587   : > { %v7321_v53 = vpop.f32.mrb[32].mxu0 }
 0x588   : > { %v7323_v18 = vpop.f32.mrb[33].mxu0 }
 0x589   : > { %v7325_v3 = vpop.f32.mrb[34].mxu0 }
 0x58a   : > { %v7327_v50 = vpop.f32.mrb[35].mxu0 }
 0x58f   : > { %v7329_v57 = vpop.f32.mrb[36].mxu0 }
 0x590   : > { %v7331_v59 = vpop.f32.mrb[37].mxu0 }
 0x591   : > { %v7333_v21 = vpop.f32.mrb[38].mxu0 }
 0x592   : > { %v7335_v34 = vpop.f32.mrb[39].mxu0 }
 0x597   : > { %v7337_v41 = vpop.f32.mrb[40].mxu0 }
 0x598   : > { %v7339_v61 = vpop.f32.mrb[41].mxu0 }
 0x599   : > { %v7341_v19 = vpop.f32.mrb[42].mxu0 }
 0x59a   : > { %v7343_v43 = vpop.f32.mrb[43].mxu0 }
 0x59f   : > { %v7345_v40 = vpop.f32.mrb[44].mxu0 }
 0x5a0   : > { %v7347_v9 = vpop.f32.mrb[45].mxu0 }
 0x5a1   : > { %v7349_v36 = vpop.f32.mrb[46].mxu0 }
 0x5a2   : > { %v7351_v38 = vpop.f32.mrb[47].mxu0 }
 0x5a7   : > { %v7353_v0 = vpop.f32.mrb[48].mxu0 }
 0x5a8   : > { %v7355_v29 = vpop.f32.mrb[49].mxu0 }
 0x5a9   : > { %v7357_v27 = vpop.f32.mrb[50].mxu0 }
 0x5aa   : > { %v7359_v30 = vpop.f32.mrb[51].mxu0 }
 0x5af   : > { %v7361_v25 = vpop.f32.mrb[52].mxu0 }
 0x5b0   : > { %v7363_v2 = vpop.f32.mrb[53].mxu0 }
 0x5b1   : > { %v7365_v33 = vpop.f32.mrb[54].mxu0 }
 0x5b2   : > { %v7367_v6 = vpop.f32.mrb[55].mxu0 }
 0x5b7   : > { %v7369_v45 = vpop.f32.mrb[56].mxu0 }
 0x5b8   : > { %v7371_v58 = vpop.f32.mrb[57].mxu0 }
 0x5b9   : > { %v7373_v23 = vpop.f32.mrb[58].mxu0 }
 0x5ba   : > { %v7375_v8 = vpop.f32.mrb[59].mxu0 }
 0x5bf   : > { %v7377_v5 = vpop.f32.mrb[60].mxu0 }
 0x5c0   : > { %v7379_v1 = vpop.f32.mrb[61].mxu0 }
 0x5c1   : > { %v7381_v28 = vpop.f32.mrb[62].mxu0 }
 0x5c2   : > { %v7383_v47 = vpop.f32.mrb[63].mxu0 }
 0x5c7   : > { %v7385_v44 = vpop.f32.mrb[64].mxu0 }
 0x5c8   : > { %v7387_v42 = vpop.f32.mrb[65].mxu0 }
 0x5c9   : > { %v7389_v32 = vpop.f32.mrb[66].mxu0 }
 0x5ca   : > { %v7391_v35 = vpop.f32.mrb[67].mxu0 }
 0x5cf   : > { %v7409_v17 = vpop.f32.mrb[68].mxu0 }
 0x5e7   : > { %v1761_v31 = vpop.f32.mrb[24].mxu1 }
 0x5e8   : > { %1920 = vrot.lane.b32.xlu1 %v1761_v31, %s6349_s10  ;;  %v7394_v52 = vpop.f32.mrb[25].mxu1 }
 0x5e9   : > { %v1765_v54 = vpop.f32.mrb[26].mxu1 }
 0x5ea   : > { %1922 = vrot.lane.b32.xlu0 %v1765_v54, %s6349_s10  ;;  %v7397_v56 = vpop.f32.mrb[27].mxu1 }
 0x5ec   : > { %1880 = vrot.lane.b32.xlu1 %v1608_v12, %s6349_s10 }
 0x5ee   : > { %1883 = vrot.lane.b32.xlu0 %v1612_v13, %s6349_s10  ;;  %v7414_v13 = vpop.f32.mrb[69].mxu0 }
 0x5ef   : > { %v1771_v10 = vpop.f32.mrb[28].mxu1  ;;  %v7416_v37 = vpop.f32.mrb[70].mxu0 }
 0x5f0   : > { %1904 = vrot.lane.b32.xlu1 %v1610_v26, %s6349_s10  ;;  %v7402_v22 = vpop.f32.mrb[29].mxu1 }
 0x5f1   : > { %v1775_v24 = vpop.f32.mrb[30].mxu1 }
 0x5f2   : > { %1906 = vrot.lane.b32.xlu0 %v1614_v60, %s6349_s10  ;;  %v7405_v31 = vpop.f32.mrb[31].mxu1 }
 0x5f4   : > { %1924 = vrot.lane.b32.xlu1 %v1771_v10, %s6349_s10 }
 0x5f6   : > { %1926 = vrot.lane.b32.xlu0 %v1775_v24, %s6349_s10 }
 0x5f7   : > { %v1781_v54 = vpop.f32.mrb[32].mxu1 }
 0x5f8   : > { %1886 = vrot.lane.b32.xlu1 %v1618_v16, %s6349_s10  ;;  %v7412_v12 = vpop.f32.mrb[33].mxu1 }
 0x5f9   : > { %v1785_v26 = vpop.f32.mrb[34].mxu1 }
 0x5fa   : > { %1889 = vrot.lane.b32.xlu0 %v1622_v20, %s6349_s10  ;;  %v7419_v60 = vpop.f32.mrb[35].mxu1  ;;  %v7436_v20 = vpop.f32.mrb[71].mxu0 }
 0x5fc   : > { %1908 = vrot.lane.b32.xlu1 %v7319_v7, %s6349_s10 }
 0x5fe   : > { %1910 = vrot.lane.b32.xlu0 %v1624_v4, %s6349_s10 }
 0x5ff   : > { %v7424_v24 = vpop.f32.mrb[36].mxu1 }
 0x600   : > { %1928 = vrot.lane.b32.xlu1 %v1781_v54, %s6349_s10  ;;  %v7427_v10 = vpop.f32.mrb[37].mxu1 }
 0x601   : > { %v7429_v16 = vpop.f32.mrb[38].mxu1 }
 0x602   : > { %1930 = vrot.lane.b32.xlu0 %v1785_v26, %s6349_s10  ;;  %v7432_v11 = vpop.f32.mrb[39].mxu1 }
 0x604   : > { %1892 = vrot.lane.b32.xlu1 %v7321_v53, %s6349_s10 }
 0x606   : > { %1895 = vrot.lane.b32.xlu0 %v7325_v3, %s6349_s10 }
 0x607   : > { %v1801_v7 = vpop.f32.mrb[40].mxu1 }
 0x608   : > { %1912 = vrot.lane.b32.xlu1 %v7323_v18, %s6349_s10  ;;  %v1803_v4 = vpop.f32.mrb[41].mxu1 }
 0x609   : > { %v1805_v54 = vpop.f32.mrb[42].mxu1 }
 0x60a   : > { %1914 = vrot.lane.b32.xlu0 %v7327_v50, %s6349_s10  ;;  %v1807_v26 = vpop.f32.mrb[43].mxu1 }
 0x60c   : > { %1898 = vrot.lane.b32.xlu1 %v7329_v57, %s6349_s10 }
 0x60e   : > { %1901 = vrot.lane.b32.xlu0 %v7333_v21, %s6349_s10 }
 0x60f   : > { %v1811_v53 = vpop.f32.mrb[44].mxu1 }
 0x610   : > { %2012 = vrot.lane.b32.xlu1 %v1801_v7, %s6353_s29  ;;  %v1813_v3 = vpop.f32.mrb[45].mxu1 }
 0x611   : > { %v1815_v51 = vpop.f32.mrb[46].mxu1 }
 0x612   : > { %2014 = vrot.lane.b32.xlu0 %v1803_v4, %s6353_s29  ;;  %v1817_v18 = vpop.f32.mrb[47].mxu1 }
 0x614   : > { %2008 = vrot.lane.b32.xlu1 %v7337_v41, %s6353_s29 }
 0x616   : > { %2010 = vrot.lane.b32.xlu0 %v7339_v61, %s6353_s29 }
 0x617   : > { %v1821_v50 = vpop.f32.mrb[48].mxu1 }
 0x618   : > { %2020 = vrot.lane.b32.xlu1 %v1805_v54, %s6353_s29  ;;  %v1823_v57 = vpop.f32.mrb[49].mxu1 }
 0x619   : > { %v1825_v15 = vpop.f32.mrb[50].mxu1 }
 0x61a   : > { %2022 = vrot.lane.b32.xlu0 %v1807_v26, %s6353_s29  ;;  %v1827_v21 = vpop.f32.mrb[51].mxu1 }
 0x61c   : > { %2016 = vrot.lane.b32.xlu1 %v7341_v19, %s6353_s29 }
 0x61e   : > { %2018 = vrot.lane.b32.xlu0 %v7343_v43, %s6353_s29 }
 0x61f   : > { %v7460_v7 = vpop.f32.mrb[52].mxu1 }
 0x620   : > { %2028 = vrot.lane.b32.xlu1 %v1811_v53, %s6353_s29  ;;  %v7463_v41 = vpop.f32.mrb[53].mxu1 }
 0x621   : > { %v7465_v61 = vpop.f32.mrb[54].mxu1 }
 0x622   : > { %2030 = vrot.lane.b32.xlu0 %v1813_v3, %s6353_s29  ;;  %v7468_v4 = vpop.f32.mrb[55].mxu1 }
 0x624   : > { %2024 = vrot.lane.b32.xlu1 %v7345_v40, %s6353_s29 }
 0x626   : > { %2026 = vrot.lane.b32.xlu0 %v7347_v9, %s6353_s29 }
 0x627   : > { %v1841_v19 = vpop.f32.mrb[56].mxu1 }
 0x628   : > { %2036 = vrot.lane.b32.xlu1 %v1815_v51, %s6353_s29  ;;  %v7475_v43 = vpop.f32.mrb[57].mxu1 }
 0x629   : > { %v1845_v54 = vpop.f32.mrb[58].mxu1 }
 0x62a   : > { %2038 = vrot.lane.b32.xlu0 %v1817_v18, %s6353_s29  ;;  %v7478_v26 = vpop.f32.mrb[59].mxu1 }
 0x62c   : > { %2032 = vrot.lane.b32.xlu1 %v7349_v36, %s6353_s29 }
 0x62e   : > { %2034 = vrot.lane.b32.xlu0 %v7351_v38, %s6353_s29 }
 0x62f   : > { %v1851_v40 = vpop.f32.mrb[60].mxu1 }
 0x630   : > { %2044 = vrot.lane.b32.xlu1 %v1821_v50, %s6353_s29  ;;  %v7485_v9 = vpop.f32.mrb[61].mxu1 }
 0x631   : > { %v1855_v53 = vpop.f32.mrb[62].mxu1 }
 0x632   : > { %2046 = vrot.lane.b32.xlu0 %v1823_v57, %s6353_s29  ;;  %v7488_v51 = vpop.f32.mrb[63].mxu1 }
 0x634   : > { %2040 = vrot.lane.b32.xlu1 %v7353_v0, %s6353_s29 }
 0x636   : > { %2042 = vrot.lane.b32.xlu0 %v7355_v29, %s6353_s29 }
 0x637   : > { %v1861_v36 = vpop.f32.mrb[64].mxu1 }
 0x638   : > { %2052 = vrot.lane.b32.xlu1 %v1825_v15, %s6353_s29  ;;  %v7495_v38 = vpop.f32.mrb[65].mxu1 }
 0x639   : > { %v1865_v3 = vpop.f32.mrb[66].mxu1 }
 0x63a   : > { %2054 = vrot.lane.b32.xlu0 %v1827_v21, %s6353_s29  ;;  %v7498_v18 = vpop.f32.mrb[67].mxu1 }
 0x63c   : > { %2048 = vrot.lane.b32.xlu1 %v7357_v27, %s6353_s29 }
 0x63e   : > { %2050 = vrot.lane.b32.xlu0 %v7359_v30, %s6353_s29 }
 0x63f   : > { %v7504_v0 = vpop.f32.mrb[68].mxu1 }
 0x640   : > { %2220 = vrot.lane.b32.xlu1 %v1841_v19, %s6354_s30  ;;  %v7507_v29 = vpop.f32.mrb[69].mxu1 }
 0x641   : > { %v7509_v15 = vpop.f32.mrb[70].mxu1 }
 0x642   : > { %2218 = vrot.lane.b32.xlu0 %v7371_v58, %s6354_s30  ;;  %v7513_v50 = vpop.f32.mrb[71].mxu1 }
 0x644   : > { %2160 = vrot.lane.b32.xlu1 %v7369_v45, %s6349_s10 }
 0x646   : > { %2162 = vrot.lane.b32.xlu0 %v7373_v23, %s6349_s10 }
 0x648   : > { %2216 = vrot.lane.b32.xlu1 %v7369_v45, %s6354_s30 }
 0x64a   : > { %2226 = vrot.lane.b32.xlu0 %v7375_v8, %s6354_s30 }
 0x64c   : > { %2228 = vrot.lane.b32.xlu1 %v1845_v54, %s6354_s30 }
 0x64e   : > { %2234 = vrot.lane.b32.xlu0 %v7379_v1, %s6354_s30 }
 0x650   : > { %2224 = vrot.lane.b32.xlu1 %v7373_v23, %s6354_s30 }
 0x652   : > { %2166 = vrot.lane.b32.xlu0 %v7381_v28, %s6349_s10 }
 0x654   : > { %2236 = vrot.lane.b32.xlu1 %v1851_v40, %s6354_s30 }
 0x656   : > { %2242 = vrot.lane.b32.xlu0 %v7383_v47, %s6354_s30 }
 0x658   : > { %2164 = vrot.lane.b32.xlu1 %v7377_v5, %s6349_s10 }
 0x65a   : > { %v7535_v8 = vpop.permute.xlu1 %1920  ;;  %2250 = vrot.lane.b32.xlu0 %v7387_v42, %s6354_s30 }
 0x65c   : > { %v7539_v1 = vpop.permute.xlu0 %1922  ;;  %2232 = vrot.lane.b32.xlu1 %v7377_v5, %s6354_s30 }
 0x65d   : > { %10166 = vst [vmem:[#allocation31_spill] sm:$0xff] %v7539_v1 }
 0x65e   : > { %v7543_v23 = vpop.permute.xlu1 %1880  ;;  %2170 = vrot.lane.b32.xlu0 %v7389_v32, %s6349_s10 }
 0x660   : > { %v7547_v27 = vpop.permute.xlu0 %1883  ;;  %2244 = vrot.lane.b32.xlu1 %v1855_v53, %s6354_s30 }
 0x662   : > { %v7550_v47 = vpop.permute.xlu1 %1904  ;;  %2258 = vrot.lane.b32.xlu0 %v7391_v35, %s6354_s30 }
 0x664   : > { %v7554_v42 = vpop.permute.xlu0 %1906  ;;  %2240 = vrot.lane.b32.xlu1 %v7381_v28, %s6354_s30 }
 0x666   : > { %v7558_v5 = vpop.permute.xlu1 %1924  ;;  %1918 = vrot.lane.b32.xlu0 %v7335_v34, %s6349_s10 }
 0x667   : > { %10167 = vst [vmem:[#allocation32_spill] sm:$0xff] %v7558_v5 }
 0x668   : > { %v7562_v30 = vpop.permute.xlu0 %1926  ;;  %2252 = vrot.lane.b32.xlu1 %v1861_v36, %s6354_s30 }
 0x669   : > { %10168 = vst [vmem:[#allocation33_spill] sm:$0xff] %v7562_v30 }
 0x66a   : > { %v7565_v45 = vpop.permute.xlu1 %1886  ;;  %2058 = vrot.lane.b32.xlu0 %v7363_v2, %s6353_s29 }
 0x66c   : > { %v7569_v35 = vpop.permute.xlu0 %1889  ;;  %2168 = vrot.lane.b32.xlu1 %v7385_v44, %s6349_s10 }
 0x66e   : > { %v7573_v28 = vpop.permute.xlu1 %1908  ;;  %2066 = vrot.lane.b32.xlu0 %v7367_v6, %s6353_s29 }
 0x670   : > { %v7577_v34 = vpop.permute.xlu0 %1910  ;;  %2248 = vrot.lane.b32.xlu1 %v7385_v44, %s6354_s30 }
 0x672   : > { %v7581_v58 = vpop.permute.xlu1 %1928  ;;  %1934 = vrot.lane.b32.xlu0 %v7429_v16, %s6349_s10 }
 0x673   : > { %10169 = vst [vmem:[#allocation34_spill] sm:$0xff] %v7581_v58 }
 0x674   : > { %v7585_v2 = vpop.permute.xlu0 %1930  ;;  %2256 = vrot.lane.b32.xlu1 %v7389_v32, %s6354_s30 }
 0x675   : > { %10170 = vst [vmem:[#allocation35_spill] sm:$0xff] %v7585_v2 }
 0x676   : > { %v7589_v57 = vpop.permute.xlu1 %1892  ;;  %2062 = vrot.lane.b32.xlu0 %v7463_v41, %s6353_s29 }
 0x678   : > { %v7593_v6 = vpop.permute.xlu0 %1895  ;;  %2172 = vrot.lane.b32.xlu1 %v7409_v17, %s6349_s10 }
 0x679   : > { %v7655_v40 = vsel %vm338_vm1, %v7593_v6, %v7419_v60 }
 0x67a   : > { %v7597_v44 = vpop.permute.xlu1 %1912  ;;  %2174 = vrot.lane.b32.xlu0 %v7416_v37, %s6349_s10 }
 0x67c   : > { %v7601_v16 = vpop.permute.xlu0 %1914  ;;  %2260 = vrot.lane.b32.xlu1 %v1865_v3, %s6354_s30 }
 0x67e   : > { %v7604_v32 = vpop.permute.xlu1 %1898  ;;  %2070 = vrot.lane.b32.xlu0 %v7468_v4, %s6353_s29 }
 0x680   : > { %v7608_v21 = vpop.permute.xlu0 %1901  ;;  %1916 = vrot.lane.b32.xlu1 %v7331_v59, %s6349_s10  ;;  %v7629_v59 = vsel %vm338_vm1, %v7547_v27, %v7397_v56 }
 0x681   : > { %v7668_v53 = vsel %vm338_vm1, %v7608_v21, %v7432_v11 }
 0x682   : > { %v7612_v41 = vpop.permute.xlu1 %2012  ;;  %2266 = vrot.lane.b32.xlu0 %v7414_v13, %s6354_s30 }
 0x684   : > { %v7616_v19 = vpop.permute.xlu0 %2014  ;;  %2056 = vrot.lane.b32.xlu1 %v7361_v25, %s6353_s29 }
 0x685   : > { %10171 = vst [vmem:[#allocation36_spill] sm:$0xff] %v7616_v19  ;;  %v1953_v19 = vsel %vm338_vm1, %v7554_v42, %v7547_v27 }
 0x686   : > { %v2009_v54 = vpop.permute.xlu1 %2008  ;;  %2274 = vrot.lane.b32.xlu0 %v7436_v20, %s6354_s30  ;;  %v7642_v20 = vsel %vm338_vm1, %v7569_v35, %v7405_v31 }
 0x688   : > { %v7622_v4 = vpop.permute.xlu0 %2010  ;;  %2064 = vrot.lane.b32.xlu1 %v7365_v33, %s6353_s29 }
 0x689   : > { %v2072_v58 = vsel %vm787_vm6, %v2009_v54, %v7622_v4 }
 0x68a   : > { %v7631_v13 = vpop.permute.xlu1 %2020  ;;  %1938 = vrot.lane.b32.xlu0 %v7629_v59, %s6349_s10 }
 0x68c   : > { %v7635_v25 = vpop.permute.xlu0 %2022  ;;  %1932 = vrot.lane.b32.xlu1 %v7424_v24, %s6349_s10 }
 0x68d   : > { %10172 = vst [vmem:[#allocation37_spill] sm:$0xff] %v7635_v25 }
 0x68e   : > { %v7644_v33 = vpop.permute.xlu1 %2016  ;;  %1942 = vrot.lane.b32.xlu0 %v7642_v20, %s6349_s10 }
 0x690   : > { %v7648_v56 = vpop.permute.xlu0 %2018  ;;  %2060 = vrot.lane.b32.xlu1 %v7460_v7, %s6353_s29 }
 0x692   : > { %v7657_v24 = vpop.permute.xlu1 %2028  ;;  %1946 = vrot.lane.b32.xlu0 %v7655_v40, %s6349_s10 }
 0x693   : > { %10173 = vst [vmem:[#allocation38_spill] sm:$0xff] %v7657_v24 }
 0x694   : > { %v7661_v31 = vpop.permute.xlu0 %2030  ;;  %2068 = vrot.lane.b32.xlu1 %v7465_v61, %s6353_s29 }
 0x695   : > { %10174 = vst [vmem:[#allocation39_spill] sm:$0xff] %v7661_v31 }
 0x696   : > { %v7670_v7 = vpop.permute.xlu1 %2024  ;;  %1950 = vrot.lane.b32.xlu0 %v7668_v53, %s6349_s10 }
 0x698   : > { %v7674_v60 = vpop.permute.xlu0 %2026  ;;  %2264 = vrot.lane.b32.xlu1 %v7409_v17, %s6354_s30  ;;  %v1882_v17 = vsel %vm338_vm1, %v7543_v23, %v7394_v52  ;;  %v7711_v52 = vsel %vm338_vm1, %v7589_v57, %v7412_v12 }
 0x699   : > { %10175 = vst [vmem:[#allocation40_spill] sm:$0xff] %v7674_v60  ;;  %v2128_v62 = vadd.f32 %v2009_v54, %v1882_v17 }
 0x69a   : > { %v7678_v36 = vpop.permute.xlu1 %2036 }
 0x69b   : > { %10176 = vst [vmem:[#allocation41_spill] sm:$0xff] %v7678_v36 }
 0x69c   : > { %v7680_v3 = vpop.permute.xlu0 %2038  ;;  %2268 = vrot.lane.b32.xlu1 %v7504_v0, %s6354_s30  ;;  %v1888_v0 = vsel %vm338_vm1, %v7565_v45, %v7402_v22  ;;  %v7722_v22 = vsel %vm338_vm1, %v7604_v32, %v7427_v10 }
 0x69d   : > { %10177 = vst [vmem:[#allocation42_spill] sm:$0xff] %v7680_v3  ;;  %v1952_v3 = vsel %vm338_vm1, %v7550_v47, %v7543_v23 }
 0x69e   : > { %v7684_v61 = vpop.permute.xlu1 %2032  ;;  %v2129_v48 = vadd.f32 %v2072_v58, %v1952_v3 }
 0x6a0   : > { %v7686_v11 = vpop.permute.xlu0 %2034  ;;  %2272 = vrot.lane.b32.xlu1 %v7416_v37, %s6354_s30 }
 0x6a2   : > { %v7690_v46 = vpop.permute.xlu1 %2044 }
 0x6a3   : > { %10178 = vst [vmem:[#allocation43_spill] sm:$0xff] %v7690_v46 }
 0x6a4   : > { %v7695_v63 = vpop.permute.xlu0 %2046  ;;  %1936 = vrot.lane.b32.xlu1 %v1882_v17, %s6349_s10 }
 0x6a5   : > { %10179 = vst [vmem:[#allocation44_spill] sm:$0xff] %v7695_v63 }
 0x6a6   : > { %v7698_v14 = vpop.permute.xlu1 %2040 }
 0x6a8   : > { %v7703_v55 = vpop.permute.xlu0 %2042  ;;  %1940 = vrot.lane.b32.xlu1 %v1888_v0, %s6349_s10 }
 0x6aa   : > { %v7706_v37 = vpop.permute.xlu1 %2052 }
 0x6ab   : > { %10180 = vst [vmem:[#allocation45_spill] sm:$0xff] %v7706_v37 }
 0x6ac   : > { %v7713_v2 = vpop.permute.xlu0 %2054  ;;  %1944 = vrot.lane.b32.xlu1 %v7711_v52, %s6349_s10 }
 0x6ad   : > { %10181 = vst [vmem:[#allocation46_spill] sm:$0xff] %v7713_v2 }
 0x6ae   : > { %v7717_v46 = vpop.permute.xlu1 %2048 }
 0x6b0   : > { %v7724_v63 = vpop.permute.xlu0 %2050  ;;  %1948 = vrot.lane.b32.xlu1 %v7722_v22, %s6349_s10 }
 0x6b2   : > { %v7728_v37 = vpop.permute.xlu1 %2220 }
 0x6b4   : > { %v7730_v12 = vpop.permute.xlu0 %2218  ;;  %2276 = vrot.lane.b32.xlu1 %v7509_v15, %s6354_s30 }
 0x6b6   : > { %v2161_v2 = vpop.permute.xlu1 %2160 }
 0x6b7   : > { %v2176_v10 = vsel %vm338_vm1, %v2161_v2, %v7475_v43 }
 0x6b8   : > { %v2163_v36 = vpop.permute.xlu0 %2162  ;;  %2222 = vrot.lane.b32.xlu0 %v2176_v10, %s6354_s30 }
 0x6b9   : > { %v2177_v15 = vsel %vm338_vm1, %v2163_v36, %v7478_v26 }
 0x6ba   : > { %v2217_v30 = vpop.permute.xlu1 %2216 }
 0x6bb   : > { %v2280_v24 = vsel %vm892_vm7, %v2217_v30, %v7730_v12  ;;  %v2336_v31 = vadd.f32 %v2217_v30, %v2128_v62  ;;  %v2075_v30 = vsel %vm787_vm6, %v7644_v33, %v7648_v56 }
 0x6bc   : > { %v2337_v5 = vadd.f32 %v2280_v24, %v2129_v48  ;;  %v7746_v25 = vpop.permute.xlu0 %2226  ;;  %2230 = vrot.lane.b32.xlu0 %v2177_v15, %s6354_s30  ;;  %v2078_v15 = vsel %vm787_vm6, %v7670_v7, %v7674_v60 }
 0x6bd   : > { %v2400_v43 = vmul.f32 0.70710677, %v2336_v31  ;;  %v2368_v24 = vmul.f32 0.5, %v2336_v31 }
 0x6be   : > { %v2401_v2 = vmul.f32 0.70710677, %v2337_v5  ;;  %v7749_v10 = vpop.permute.xlu1 %2228 }
 0x6bf   : > { %10182 = vst [vmem:[#allocation47_spill] sm:$0xff] %v7749_v10  ;;  %6180 = verf.f32 %v2400_v43  ;;  %v2369_v43 = vmul.f32 0.5, %v2337_v5  ;;  %v2132_v10 = vadd.f32 %v7644_v33, %v7629_v59  ;;  %v1954_v5 = vsel %vm338_vm1, %v7573_v28, %v7565_v45 }
 0x6c0   : > { %6182 = verf.f32 %v2401_v2  ;;  %v7751_v23 = vpop.permute.xlu0 %2234  ;;  %v2137_v27 = vadd.f32 %v2078_v15, %v1954_v5  ;;  %v2140_v5 = vadd.f32 %v7684_v61, %v7642_v20 }
 0x6c2   : > { %v2225_v58 = vpop.permute.xlu1 %2224 }
 0x6c3   : > { %v7779_v60 = vadd.f32 %v2225_v58, %v2132_v10 }
 0x6c4   : > { %v2167_v54 = vpop.permute.xlu0 %2166 }
 0x6c6   : > { %v7753_v26 = vpop.permute.xlu1 %2236 }
 0x6c7   : > { %10183 = vst [vmem:[#allocation48_spill] sm:$0xff] %v7753_v26 }
 0x6c8   : > { %v7755_v36 = vpop.permute.xlu0 %2242 }
 0x6c9   : > { %v6181_v62 = vpop.eup %6180 }
 0x6ca   : > { %v6183_v48 = vpop.eup %6182  ;;  %v2464_v3 = vadd.f32 1.0, %v6181_v62  ;;  %v2165_v17 = vpop.permute.xlu1 %2164  ;;  %v2136_v62 = vadd.f32 %v7670_v7, %v1888_v0 }
 0x6cb   : > { %v2465_v2 = vadd.f32 1.0, %v6183_v48  ;;  %v2178_v26 = vsel %vm338_vm1, %v2165_v17, %v7485_v9  ;;  %v2283_v9 = vsel %vm892_vm7, %v2225_v58, %v7746_v25  ;;  %v2133_v17 = vadd.f32 %v2075_v30, %v1953_v19 }
 0x6cc   : > { %v2496_v1 = vmul.f32 %v2464_v3, %v2368_v24  ;;  %v7770_v31 = vpop.permute.xlu0 %2250  ;;  %2238 = vrot.lane.b32.xlu0 %v2178_v26, %s6354_s30  ;;  %v2179_v26 = vsel %vm338_vm1, %v2167_v54, %v7488_v51  ;;  %v2081_v51 = vsel %vm787_vm6, %v7684_v61, %v7686_v11  ;;  %v2404_v54 = vmul.f32 0.70710677, %v7779_v60 }
 0x6cd   : > { %v2497_v48 = vmul.f32 %v2465_v2, %v2369_v43  ;;  %v7787_v0 = vadd.f32 %v2283_v9, %v2133_v17  ;;  %v1955_v2 = vsel %vm338_vm1, %v7577_v34, %v7569_v35 }
 0x6ce   : > { %v2233_v59 = vpop.permute.xlu1 %2232  ;;  %v2528_v33 = vmul.f32 %v2496_v1, %v6775_v49 }
 0x6cf   : > { %v2286_v24 = vsel %vm892_vm7, %v2233_v59, %v7751_v23  ;;  %v2344_v45 = vadd.f32 %v2233_v59, %v2136_v62  ;;  %v2529_v7 = vmul.f32 %v2497_v48, %v6791_v39  ;;  %v2405_v30 = vmul.f32 0.70710677, %v7787_v0 }
 0x6d0   : > { %v2345_v3 = vadd.f32 %v2286_v24, %v2137_v27  ;;  %v2171_v43 = vpop.permute.xlu0 %2170  ;;  %2246 = vrot.lane.b32.xlu0 %v2179_v26, %s6354_s30  ;;  %v2141_v62 = vadd.f32 %v2081_v51, %v1955_v2 }
 0x6d1   : > { %v2408_v19 = vmul.f32 0.70710677, %v2344_v45  ;;  %v5614_v1 = vpack.i.bf16 %v2529_v7, %v2528_v33  ;;  %v2376_v7 = vmul.f32 0.5, %v2344_v45  ;;  %v1956_v45 = vsel %vm338_vm1, %v7597_v44, %v7589_v57 }
 0x6d2   : > { %v2409_v10 = vmul.f32 0.70710677, %v2345_v3  ;;  %v7790_v58 = vpop.permute.xlu1 %2244  ;;  %v2377_v51 = vmul.f32 0.5, %v2345_v3 }
 0x6d3   : > { %6184 = verf.f32 %v2408_v19  ;;  %5615 = vrot.lane.b32.xlu1 %v5614_v1, %s6355_s13 }
 0x6d4   : > { %6186 = verf.f32 %v2409_v10  ;;  %v7798_v15 = vpop.permute.xlu0 %2258 }
 0x6d5   : > { %6188 = verf.f32 %v2404_v54 }
 0x6d6   : > { %v2241_v48 = vpop.permute.xlu1 %2240  ;;  %6190 = verf.f32 %v2405_v30 }
 0x6d7   : > { %v2289_v9 = vsel %vm892_vm7, %v2241_v48, %v7755_v36  ;;  %v7807_v17 = vadd.f32 %v2241_v48, %v2140_v5  ;;  %5625 = vrot.lane.b32.xlu1 %v5614_v1, %s6356_s14  ;;  %v2084_v1 = vsel %vm787_vm6, %v7698_v14, %v7703_v55  ;;  %v2144_v48 = vadd.f32 %v7698_v14, %v7711_v52 }
 0x6d8   : > { %v7809_v27 = vadd.f32 %v2289_v9, %v2141_v62  ;;  %v7812_v59 = vpop.permute.xlu0 %1918  ;;  %v2145_v3 = vadd.f32 %v2084_v1, %v1956_v45  ;;  %v1957_v14 = vsel %vm338_vm1, %v7601_v16, %v7593_v6  ;;  %v2148_v1 = vadd.f32 %v7717_v46, %v7655_v40 }
 0x6d9   : > { %v2412_v35 = vmul.f32 0.70710677, %v7807_v17 }
 0x6da   : > { %v2413_v33 = vmul.f32 0.70710677, %v7809_v27  ;;  %v7816_v20 = vpop.permute.xlu1 %2252 }
 0x6db   : > { %6192 = verf.f32 %v2412_v35 }
 0x6dc   : > { %v7818_v61 = vpop.permute.xlu0 %2058  ;;  %6194 = verf.f32 %v2413_v33 }
 0x6dd   : > { %v6185_v26 = vpop.eup %6184 }
 0x6de   : > { %v6187_v24 = vpop.eup %6186  ;;  %v2472_v19 = vadd.f32 1.0, %v6185_v26  ;;  %v2169_v10 = vpop.permute.xlu1 %2168 }
 0x6df   : > { %v2473_v54 = vadd.f32 1.0, %v6187_v24  ;;  %v2180_v30 = vsel %vm338_vm1, %v2169_v10, %v7495_v38  ;;  %v6189_v62 = vpop.eup %6188  ;;  %v2087_v38 = vsel %vm787_vm6, %v7717_v46, %v7724_v63  ;;  %v2181_v24 = vsel %vm338_vm1, %v2171_v43, %v7498_v18 }
 0x6e0   : > { %v2504_v2 = vmul.f32 %v2472_v19, %v2376_v7  ;;  %v7825_v5 = vpop.permute.xlu0 %2066  ;;  %2254 = vrot.lane.b32.xlu0 %v2180_v30, %s6354_s30  ;;  %v6191_v35 = vpop.eup %6190  ;;  %v2149_v30 = vadd.f32 %v2087_v38, %v1957_v14  ;;  %v2380_v14 = vmul.f32 0.5, %v7807_v17 }
 0x6e1   : > { %v2505_v9 = vmul.f32 %v2473_v54, %v2377_v51  ;;  %v2468_v51 = vadd.f32 1.0, %v6189_v62  ;;  %v2469_v18 = vadd.f32 1.0, %v6191_v35 }
 0x6e2   : > { %v2249_v33 = vpop.permute.xlu1 %2248  ;;  %v2536_v26 = vmul.f32 %v2504_v2, %v6775_v49  ;;  %v2372_v2 = vmul.f32 0.5, %v7779_v60 }
 0x6e3   : > { %v2292_v7 = vsel %vm892_vm7, %v2249_v33, %v7770_v31  ;;  %v2352_v57 = vadd.f32 %v2249_v33, %v2144_v48  ;;  %v2537_v19 = vmul.f32 %v2505_v9, %v6791_v39 }
 0x6e4   : > { %v2353_v52 = vadd.f32 %v2292_v7, %v2145_v3  ;;  %v7845_v10 = vpop.permute.xlu0 %1934  ;;  %2262 = vrot.lane.b32.xlu0 %v2181_v24, %s6354_s30  ;;  %v2373_v3 = vmul.f32 0.5, %v7787_v0  ;;  %v2500_v60 = vmul.f32 %v2468_v51, %v2372_v2 }
 0x6e5   : > { %v2416_v43 = vmul.f32 0.70710677, %v2352_v57  ;;  %v6193_v54 = vpop.eup %6192  ;;  %v7851_v9 = vpack.i.bf16 %v2537_v19, %v2536_v26 }
 0x6e6   : > { %v2417_v45 = vmul.f32 0.70710677, %v2353_v52  ;;  %v2257_v48 = vpop.permute.xlu1 %2256  ;;  %v6195_v6 = vpop.eup %6194  ;;  %v2501_v62 = vmul.f32 %v2469_v18, %v2373_v3  ;;  %v2476_v38 = vadd.f32 1.0, %v6193_v54  ;;  %v7866_v51 = vmul.f32 %v2500_v60, %v6775_v49 }
 0x6e7   : > { %10184 = vst [vmem:[#allocation49_spill] sm:$0xff] %v7851_v9  ;;  %6196 = verf.f32 %v2416_v43  ;;  %v2295_v33 = vsel %vm892_vm7, %v2257_v48, %v7798_v15  ;;  %v2356_v24 = vadd.f32 %v2257_v48, %v2148_v1  ;;  %5630 = vrot.lane.b32.xlu1 %v7851_v9, %s6355_s13  ;;  %v2477_v26 = vadd.f32 1.0, %v6195_v6 }
 0x6e8   : > { %6198 = verf.f32 %v2417_v45  ;;  %v2357_v46 = vadd.f32 %v2295_v33, %v2149_v30  ;;  %v7858_v40 = vpop.permute.xlu0 %2062  ;;  %v2381_v1 = vmul.f32 0.5, %v7809_v27  ;;  %10185 = vst [vmem:[#allocation50_spill] sm:$0xff] %v7866_v51  ;;  %v7869_v18 = vmul.f32 %v2501_v62, %v6791_v39 }
 0x6e9   : > { %v2420_v35 = vmul.f32 0.70710677, %v2356_v24  ;;  %v2508_v54 = vmul.f32 %v2476_v38, %v2380_v14  ;;  %v2384_v48 = vmul.f32 0.5, %v2352_v57  ;;  %v2385_v62 = vmul.f32 0.5, %v2353_v52 }
 0x6ea   : > { %v2421_v7 = vmul.f32 0.70710677, %v2357_v46  ;;  %v2173_v19 = vpop.permute.xlu1 %2172  ;;  %v2509_v30 = vmul.f32 %v2477_v26, %v2381_v1  ;;  %v5619_v27 = vpack.i.bf16 %v7869_v18, %v7866_v51 }
 0x6eb   : > { %6200 = verf.f32 %v2420_v35  ;;  %v2182_v0 = vsel %vm338_vm1, %v2173_v19, %v7507_v29  ;;  %v7881_v33 = vmul.f32 %v2508_v54, %v6775_v49  ;;  %v2388_v19 = vmul.f32 0.5, %v2356_v24 }
 0x6ec   : > { %6202 = verf.f32 %v2421_v7  ;;  %v2175_v43 = vpop.permute.xlu0 %2174  ;;  %2270 = vrot.lane.b32.xlu0 %v2182_v0, %s6354_s30  ;;  %v7884_v60 = vmul.f32 %v2509_v30, %v6791_v39 }
 0x6ed   : > { %v2183_v29 = vsel %vm338_vm1, %v2175_v43, %v7513_v50  ;;  %v2389_v43 = vmul.f32 0.5, %v2357_v46 }
 0x6ee   : > { %v7871_v2 = vpop.permute.xlu1 %2260  ;;  %10186 = vst [vmem:[#allocation51_spill] sm:$0xff] %v7884_v60  ;;  %v5634_v14 = vpack.i.bf16 %v7884_v60, %v7881_v33 }
 0x6f0   : > { %2278 = vrot.lane.b32.xlu0 %v2183_v29, %s6354_s30 }
 0x6f1   : > { %v6197_v17 = vpop.eup %6196 }
 0x6f2   : > { %v6199_v45 = vpop.eup %6198  ;;  %v2480_v6 = vadd.f32 1.0, %v6197_v17  ;;  %v7878_v3 = vpop.permute.xlu1 %1916 }
 0x6f3   : > { %v2481_v35 = vadd.f32 1.0, %v6199_v45 }
 0x6f4   : > { %v2512_v50 = vmul.f32 %v2480_v6, %v2384_v48  ;;  %5620 = vrot.lane.b32.xlu0 %v5619_v27, %s6355_s13  ;;  %v7907_v6 = vpop.permute.xlu0 %2070 }
 0x6f5   : > { %v6201_v38 = vpop.eup %6200  ;;  %v2513_v26 = vmul.f32 %v2481_v35, %v2385_v62 }
 0x6f6   : > { %v6203_v7 = vpop.eup %6202  ;;  %v2484_v0 = vadd.f32 1.0, %v6201_v38  ;;  %v2057_v57 = vpop.permute.xlu1 %2056  ;;  %v2544_v1 = vmul.f32 %v2512_v50, %v6775_v49 }
 0x6f7   : > { %v2485_v54 = vadd.f32 1.0, %v6203_v7  ;;  %v2545_v30 = vmul.f32 %v2513_v26, %v6791_v39  ;;  %v2090_v50 = vsel %vm787_vm6, %v2057_v57, %v7818_v61  ;;  %v1958_v26 = vsel %vm338_vm1, %v7878_v3, %v7604_v32 }
 0x6f8   : > { %v2516_v52 = vmul.f32 %v2484_v0, %v2388_v19  ;;  %5635 = vrot.lane.b32.xlu0 %v5634_v14, %s6355_s13  ;;  %v7915_v38 = vpop.permute.xlu0 %2266  ;;  %v2152_v7 = vadd.f32 %v2057_v57, %v7722_v22  ;;  %v2153_v19 = vadd.f32 %v2090_v50, %v1958_v26  ;;  %v1959_v32 = vsel %vm338_vm1, %v7812_v59, %v7608_v21 }
 0x6f9   : > { %v2517_v29 = vmul.f32 %v2485_v54, %v2389_v43  ;;  %v7892_v17 = vpack.i.bf16 %v2545_v30, %v2544_v1 }
 0x6fa   : > { %v2065_v27 = vpop.permute.xlu1 %2064  ;;  %v7895_v24 = vmul.f32 %v2516_v52, %v6775_v49 }
 0x6fb   : > { %5640 = vrot.lane.b32.xlu1 %v7892_v17, %s6355_s13  ;;  %v7900_v45 = vmul.f32 %v2517_v29, %v6791_v39  ;;  %v2156_v22 = vadd.f32 %v2065_v27, %v7668_v53 }
 0x6fc   : > { %10187 = vst [vmem:[#allocation52_spill] sm:$0xff] %v7895_v24  ;;  %v7923_v30 = vpop.permute.xlu0 %2274 }
 0x6fd   : > { %v5644_v46 = vpack.i.bf16 %v7900_v45, %v7895_v24 }
 0x6fe   : > { %v7904_v48 = vpop.permute.xlu1 %1932 }
 0x6ff   : > { %5645 = vrot.lane.b32.xlu0 %v5644_v46, %s6355_s13  ;;  %v2093_v46 = vsel %vm787_vm6, %v2065_v27, %v7825_v5  ;;  %v2073_v27 = vsel %vm787_vm6, %v7622_v4, %v7612_v41 }
 0x700   : > { %v2157_v57 = vadd.f32 %v2093_v46, %v1959_v32 }
 0x702   : > { %v7909_v62 = vpop.permute.xlu1 %2060 }
 0x706   : > { %v7911_v35 = vpop.permute.xlu1 %2068 }
 0x70a   : > { %v2265_v0 = vpop.permute.xlu1 %2264 }
 0x70b   : > { %v2298_v14 = vsel %vm892_vm7, %v2265_v0, %v7915_v38  ;;  %v2360_v1 = vadd.f32 %v2265_v0, %v2152_v7 }
 0x70c   : > { %v2361_v43 = vadd.f32 %v2298_v14, %v2153_v19  ;;  %v1939_v19 = vpop.permute.xlu0 %1938 }
 0x70d   : > { %v2424_v54 = vmul.f32 0.70710677, %v2360_v1  ;;  %v2392_v9 = vmul.f32 0.5, %v2360_v1 }
 0x70e   : > { %v2425_v52 = vmul.f32 0.70710677, %v2361_v43  ;;  %v7925_v29 = vpop.permute.xlu1 %2268  ;;  %v2393_v51 = vmul.f32 0.5, %v2361_v43 }
 0x70f   : > { %6204 = verf.f32 %v2424_v54 }
 0x710   : > { %6206 = verf.f32 %v2425_v52  ;;  %v7935_v60 = vpop.permute.xlu0 %1942 }
 0x712   : > { %v2273_v50 = vpop.permute.xlu1 %2272 }
 0x713   : > { %v2301_v26 = vsel %vm892_vm7, %v2273_v50, %v7923_v30  ;;  %v2364_v7 = vadd.f32 %v2273_v50, %v2156_v22  ;;  %v1960_v22 = vsel %vm338_vm1, %v7535_v8, %v7550_v47  ;;  %v2076_v50 = vsel %vm787_vm6, %v7648_v56, %v7631_v13 }
 0x714   : > { %v2365_v0 = vadd.f32 %v2301_v26, %v2157_v57  ;;  %v2130_v1 = vadd.f32 %v2073_v27, %v1960_v22  ;;  %v7951_v4 = vpop.permute.xlu0 %1946 }
 0x715   : > { %v2428_v14 = vmul.f32 0.70710677, %v2364_v7 }
 0x716   : > { %v2429_v24 = vmul.f32 0.70710677, %v2365_v0  ;;  %v1937_v22 = vpop.permute.xlu1 %1936 }
 0x717   : > { %6208 = verf.f32 %v2428_v14  ;;  %v10189_v14 = vld [vmem:[#allocation31_spill] sm:$0xff] }
 0x718   : > { %6210 = verf.f32 %v2429_v24  ;;  %v2281_v24 = vsel %vm892_vm7, %v7730_v12, %v7728_v37  ;;  %v1961_v12 = vsel %vm338_vm1, %v10189_v14, %v7554_v42 }
 0x719   : > { %v6205_v54 = vpop.eup %6204  ;;  %v2134_v27 = vadd.f32 %v2076_v50, %v1961_v12 }
 0x71a   : > { %v6207_v52 = vpop.eup %6206  ;;  %v2488_v21 = vadd.f32 1.0, %v6205_v54  ;;  %v10190_v54 = vld [vmem:[#allocation47_spill] sm:$0xff] }
 0x71b   : > { %v2489_v53 = vadd.f32 1.0, %v6207_v52  ;;  %v2284_v52 = vsel %vm892_vm7, %v7746_v25, %v10190_v54  ;;  %v1968_v25 = vsel %vm338_vm1, %v1937_v22, %v7535_v8 }
 0x71c   : > { %v2520_v46 = vmul.f32 %v2488_v21, %v2392_v9  ;;  %v2396_v21 = vmul.f32 0.5, %v2364_v7 }
 0x71d   : > { %v2521_v32 = vmul.f32 %v2489_v53, %v2393_v51  ;;  %v2338_v51 = vadd.f32 %v2281_v24, %v2130_v1 }
 0x71e   : > { %v2552_v57 = vmul.f32 %v2520_v46, %v6775_v49  ;;  %v2397_v46 = vmul.f32 0.5, %v2365_v0  ;;  %v10192_v0 = vld [vmem:[#allocation36_spill] sm:$0xff] }
 0x71f   : > { %v2553_v43 = vmul.f32 %v2521_v32, %v6791_v39  ;;  %v2402_v24 = vmul.f32 0.70710677, %v2338_v51  ;;  %v2074_v50 = vsel %vm787_vm6, %v7612_v41, %v10192_v0  ;;  %v1941_v0 = vpop.permute.xlu1 %1940 }
 0x720   : > { %v2131_v12 = vadd.f32 %v2074_v50, %v1968_v25  ;;  %v2370_v25 = vmul.f32 0.5, %v2338_v51 }
 0x721   : > { %v6209_v9 = vpop.eup %6208  ;;  %v7953_v26 = vpack.i.bf16 %v2553_v43, %v2552_v57  ;;  %v2342_v57 = vadd.f32 %v2284_v52, %v2134_v27  ;;  %v7963_v43 = vpop.permute.xlu0 %1950  ;;  %6212 = verf.f32 %v2402_v24  ;;  %v10193_v27 = vld [vmem:[#allocation37_spill] sm:$0xff] }
 0x722   : > { %v6211_v47 = vpop.eup %6210  ;;  %v2492_v53 = vadd.f32 1.0, %v6209_v9  ;;  %v2077_v41 = vsel %vm787_vm6, %v7631_v13, %v10193_v27  ;;  %v10194_v13 = vld [vmem:[#allocation32_spill] sm:$0xff]  ;;  %v10195_v27 = vld [vmem:[#allocation39_spill] sm:$0xff] }
 0x723   : > { %10188 = vst [vmem:[#allocation53_spill] sm:$0xff] %v7953_v26  ;;  %v2493_v56 = vadd.f32 1.0, %v6211_v47  ;;  %5650 = vrot.lane.b32.xlu1 %v7953_v26, %s6355_s13  ;;  %v2406_v9 = vmul.f32 0.70710677, %v2342_v57 }
 0x724   : > { %v2524_v32 = vmul.f32 %v2492_v53, %v2396_v21  ;;  %v1969_v21 = vsel %vm338_vm1, %v1939_v19, %v10189_v14 }
 0x725   : > { %v2525_v1 = vmul.f32 %v2493_v56, %v2397_v46  ;;  %6214 = verf.f32 %v2406_v9  ;;  %v2135_v46 = vadd.f32 %v2077_v41, %v1969_v21  ;;  %v1970_v9 = vsel %vm338_vm1, %v1941_v0, %v10194_v13 }
 0x726   : > { %v7966_v42 = vmul.f32 %v2524_v32, %v6775_v49 }
 0x727   : > { %v7971_v7 = vmul.f32 %v2525_v1, %v6791_v39 }
 0x729   : > { %10191 = vst [vmem:[#allocation31_spill] sm:$0xff] %v7971_v7  ;;  %v5654_v47 = vpack.i.bf16 %v7971_v7, %v7966_v42 }
 0x72a   : > { %v2223_v52 = vpop.permute.xlu0 %2222 }
 0x72b   : > { %v2282_v8 = vsel %vm892_vm7, %v7728_v37, %v2223_v52  ;;  %5655 = vrot.lane.b32.xlu0 %v5654_v47, %s6355_s13  ;;  %v6213_v14 = vpop.eup %6212 }
 0x72c   : > { %v2339_v53 = vadd.f32 %v2282_v8, %v2131_v12  ;;  %v2466_v37 = vadd.f32 1.0, %v6213_v14  ;;  %v2374_v8 = vmul.f32 0.5, %v2342_v57 }
 0x72e   : > { %v2403_v56 = vmul.f32 0.70710677, %v2339_v53  ;;  %v2231_v32 = vpop.permute.xlu0 %2230  ;;  %v2498_v47 = vmul.f32 %v2466_v37, %v2370_v25  ;;  %v2371_v52 = vmul.f32 0.5, %v2339_v53  ;;  %v10198_v37 = vld [vmem:[#allocation5_spill] sm:$0xff]  ;;  %v10200_v25 = vld [vmem:[#allocation6_spill] sm:$0xff] }
 0x72f   : > { %v2285_v22 = vsel %vm892_vm7, %v10190_v54, %v2231_v32  ;;  %v6215_v1 = vpop.eup %6214  ;;  %v10196_v54 = vld [vmem:[#allocation38_spill] sm:$0xff] }
 0x730   : > { %6216 = verf.f32 %v2403_v56  ;;  %v2343_v24 = vadd.f32 %v2285_v22, %v2135_v46  ;;  %v2470_v12 = vadd.f32 1.0, %v6215_v1  ;;  %v2080_v41 = vsel %vm787_vm6, %v10196_v54, %v10195_v27  ;;  %v10197_v22 = vld [vmem:[#allocation33_spill] sm:$0xff] }
 0x731   : > { %v1971_v51 = vsel %vm338_vm1, %v7935_v60, %v10197_v22  ;;  %v7997_v1 = vmul.f32 %v2498_v47, %v10198_v37 }
 0x732   : > { %v2407_v19 = vmul.f32 0.70710677, %v2343_v24  ;;  %v2502_v32 = vmul.f32 %v2470_v12, %v2374_v8  ;;  %v2375_v57 = vmul.f32 0.5, %v2343_v24  ;;  %v10204_v12 = vld [vmem:[#allocation41_spill] sm:$0xff] }
 0x733   : > { %10199 = vst [vmem:[#allocation47_spill] sm:$0xff] %v7997_v1 }
 0x734   : > { %6218 = verf.f32 %v2407_v19  ;;  %v2139_v19 = vadd.f32 %v2080_v41, %v1970_v9 }
 0x73a   : > { %v6217_v50 = vpop.eup %6216 }
 0x73b   : > { %v2467_v21 = vadd.f32 1.0, %v6217_v50  ;;  %v10202_v50 = vld [vmem:[#allocation48_spill] sm:$0xff] }
 0x73d   : > { %v2499_v46 = vmul.f32 %v2467_v21, %v2371_v52  ;;  %v10203_v21 = vld [vmem:[#allocation42_spill] sm:$0xff] }
 0x73e   : > { %v6219_v56 = vpop.eup %6218  ;;  %v2239_v14 = vpop.permute.xlu0 %2238  ;;  %v2083_v8 = vsel %vm787_vm6, %v10204_v12, %v10203_v21 }
 0x73f   : > { %v8000_v53 = vmul.f32 %v2499_v46, %v10200_v25  ;;  %v2471_v0 = vadd.f32 1.0, %v6219_v56  ;;  %v2288_v27 = vsel %vm892_vm7, %v10202_v50, %v2239_v14  ;;  %v2143_v9 = vadd.f32 %v2083_v8, %v1971_v51  ;;  %v1945_v8 = vpop.permute.xlu1 %1944 }
 0x740   : > { %v2347_v52 = vadd.f32 %v2288_v27, %v2139_v19  ;;  %v8016_v56 = vmul.f32 %v2502_v32, %v10198_v37  ;;  %v1962_v32 = vsel %vm338_vm1, %v10194_v13, %v7573_v28  ;;  %v2287_v27 = vsel %vm892_vm7, %v7751_v23, %v10202_v50  ;;  %v10210_v28 = vld [vmem:[#allocation35_spill] sm:$0xff] }
 0x741   : > { %10201 = vst [vmem:[#allocation36_spill] sm:$0xff] %v8000_v53  ;;  %v2503_v39 = vmul.f32 %v2471_v0, %v2375_v57  ;;  %v5659_v60 = vpack.i.bf16 %v8000_v53, %v7997_v1  ;;  %v1973_v13 = vsel %vm338_vm1, %v7951_v4, %v10210_v28  ;;  %v10212_v53 = vld [vmem:[#allocation45_spill] sm:$0xff] }
 0x742   : > { %v2411_v47 = vmul.f32 0.70710677, %v2347_v52  ;;  %v2247_v41 = vpop.permute.xlu0 %2246 }
 0x743   : > { %v8010_v46 = vmul.f32 %v2503_v39, %v10200_v25  ;;  %v2291_v24 = vsel %vm892_vm7, %v7790_v58, %v2247_v41  ;;  %5660 = vrot.lane.b32.xlu1 %v5659_v60, %s6355_s13  ;;  %v10206_v39 = vld [vmem:[#allocation40_spill] sm:$0xff] }
 0x744   : > { %6220 = verf.f32 %v2411_v47  ;;  %v2351_v19 = vadd.f32 %v2291_v24, %v2143_v9  ;;  %v2079_v0 = vsel %vm787_vm6, %v10206_v39, %v10196_v54  ;;  %v10207_v47 = vld [vmem:[#allocation34_spill] sm:$0xff]  ;;  %v2379_v39 = vmul.f32 0.5, %v2347_v52 }
 0x745   : > { %10205 = vst [vmem:[#allocation37_spill] sm:$0xff] %v8010_v46  ;;  %v5664_v14 = vpack.i.bf16 %v8010_v46, %v8016_v56  ;;  %v2138_v21 = vadd.f32 %v2079_v0, %v1962_v32  ;;  %v1972_v41 = vsel %vm338_vm1, %v1945_v8, %v10207_v47 }
 0x746   : > { %v2415_v57 = vmul.f32 0.70710677, %v2351_v19  ;;  %v2383_v32 = vmul.f32 0.5, %v2351_v19 }
 0x747   : > { %5665 = vrot.lane.b32.xlu0 %v5664_v14, %s6355_s13  ;;  %v2346_v9 = vadd.f32 %v2287_v27, %v2138_v21  ;;  %v10208_v14 = vld [vmem:[#allocation44_spill] sm:$0xff] }
 0x748   : > { %6222 = verf.f32 %v2415_v57  ;;  %v10209_v57 = vld [vmem:[#allocation43_spill] sm:$0xff] }
 0x749   : > { %v2086_v54 = vsel %vm787_vm6, %v10209_v57, %v10208_v14  ;;  %v2410_v49 = vmul.f32 0.70710677, %v2346_v9 }
 0x74a   : > { %v2147_v23 = vadd.f32 %v2086_v54, %v1972_v41 }
 0x74b   : > { %6224 = verf.f32 %v2410_v49  ;;  %v2092_v49 = vsel %vm787_vm6, %v7909_v62, %v7858_v40 }
 0x74e   : > { %v6221_v60 = vpop.eup %6220 }
 0x74f   : > { %v2475_v24 = vadd.f32 1.0, %v6221_v60  ;;  %v10211_v60 = vld [vmem:[#allocation46_spill] sm:$0xff] }
 0x750   : > { %v2089_v14 = vsel %vm787_vm6, %v10212_v53, %v10211_v60 }
 0x751   : > { %v2507_v0 = vmul.f32 %v2475_v24, %v2379_v39  ;;  %v2151_v46 = vadd.f32 %v2089_v14, %v1973_v13 }
 0x752   : > { %v6223_v51 = vpop.eup %6222  ;;  %v2255_v50 = vpop.permute.xlu0 %2254 }
 0x753   : > { %v2479_v27 = vadd.f32 1.0, %v6223_v51  ;;  %v2294_v21 = vsel %vm892_vm7, %v7816_v20, %v2255_v50  ;;  %v8046_v4 = vmul.f32 %v2507_v0, %v10200_v25  ;;  %v1949_v51 = vpop.permute.xlu1 %1948 }
 0x754   : > { %v2355_v8 = vadd.f32 %v2294_v21, %v2147_v23  ;;  %v1974_v13 = vsel %vm338_vm1, %v1949_v51, %v7904_v48 }
 0x755   : > { %v2511_v52 = vmul.f32 %v2479_v27, %v2383_v32  ;;  %v2155_v23 = vadd.f32 %v2092_v49, %v1974_v13  ;;  %v6225_v32 = vpop.eup %6224  ;;  %v2095_v27 = vsel %vm787_vm6, %v7911_v35, %v7907_v6  ;;  %v2378_v6 = vmul.f32 0.5, %v2346_v9 }
 0x756   : > { %v2419_v7 = vmul.f32 0.70710677, %v2355_v8  ;;  %v2263_v26 = vpop.permute.xlu0 %2262 }
 0x757   : > { %v8049_v41 = vmul.f32 %v2511_v52, %v10200_v25  ;;  %v2297_v19 = vsel %vm892_vm7, %v7871_v2, %v2263_v26  ;;  %v8060_v50 = vpop.permute.xlu1 %2276  ;;  %v1975_v26 = vsel %vm338_vm1, %v7963_v43, %v7845_v10  ;;  %v2474_v43 = vadd.f32 1.0, %v6225_v32 }
 0x758   : > { %6226 = verf.f32 %v2419_v7  ;;  %v2359_v24 = vadd.f32 %v2297_v19, %v2151_v46  ;;  %v2159_v60 = vadd.f32 %v2095_v27, %v1975_v26 }
 0x759   : > { %v2506_v32 = vmul.f32 %v2474_v43, %v2378_v6 }
 0x75a   : > { %v2423_v39 = vmul.f32 0.70710677, %v2359_v24 }
 0x75b   : > { %v8070_v40 = vpop.permute.xlu1 %5615 }
 0x75c   : > { %6228 = verf.f32 %v2423_v39  ;;  %v5618_v13 = vunpack.i.h.bf16 %v8070_v40  ;;  %v5617_v49 = vunpack.i.l.bf16 %v8070_v40 }
 0x75e   : > { %v2271_v0 = vpop.permute.xlu0 %2270 }
 0x75f   : > { %v2300_v7 = vsel %vm892_vm7, %v7925_v29, %v2271_v0 }
 0x760   : > { %v2363_v46 = vadd.f32 %v2300_v7, %v2155_v23  ;;  %v2387_v23 = vmul.f32 0.5, %v2355_v8  ;;  %v2391_v7 = vmul.f32 0.5, %v2359_v24 }
 0x762   : > { %v6227_v21 = vpop.eup %6226  ;;  %v2427_v14 = vmul.f32 0.70710677, %v2363_v46  ;;  %v2279_v52 = vpop.permute.xlu0 %2278 }
 0x763   : > { %v2483_v19 = vadd.f32 1.0, %v6227_v21  ;;  %v2303_v51 = vsel %vm892_vm7, %v8060_v50, %v2279_v52 }
 0x764   : > { %6230 = verf.f32 %v2427_v14  ;;  %v2367_v39 = vadd.f32 %v2303_v51, %v2159_v60  ;;  %v8083_v60 = vsel %vm1113_vm8, %v5617_v49, %v5618_v13  ;;  %v8098_v51 = vmul.f32 %v2506_v32, %v10198_v37 }
 0x765   : > { %v2515_v54 = vmul.f32 %v2483_v19, %v2387_v23 }
 0x766   : > { %v6229_v0 = vpop.eup %6228  ;;  %v2431_v26 = vmul.f32 0.70710677, %v2367_v39  ;;  %v8076_v27 = vpop.permute.xlu0 %5620  ;;  %v5679_v49 = vpack.i.bf16 %v8046_v4, %v8098_v51 }
 0x767   : > { %v2487_v1 = vadd.f32 1.0, %v6229_v0  ;;  %v5623_v21 = vunpack.i.h.bf16 %v8076_v27  ;;  %v5622_v52 = vunpack.i.l.bf16 %v8076_v27  ;;  %v8091_v14 = vmul.f32 %v2515_v54, %v10200_v25 }
 0x768   : > { %6232 = verf.f32 %v2431_v26  ;;  %v2395_v54 = vmul.f32 0.5, %v2363_v46  ;;  %v1963_v46 = vsel %vm338_vm1, %v10197_v22, %v7577_v34  ;;  %v2296_v34 = vsel %vm892_vm7, %v7798_v15, %v7871_v2 }
 0x769   : > { %v2519_v8 = vmul.f32 %v2487_v1, %v2391_v7  ;;  %v8086_v9 = vsel %vm1113_vm8, %v5622_v52, %v5623_v21  ;;  %v2399_v7 = vmul.f32 0.5, %v2367_v39  ;;  %v2290_v39 = vsel %vm892_vm7, %v7755_v36, %v7790_v58 }
 0x76a   : > { %v5669_v24 = vpack.i.bf16 %v8086_v9, %v8083_v60  ;;  %v8135_v58 = vpop.permute.xlu0 %5635 }
 0x76b   : > { %v8094_v19 = vmul.f32 %v2519_v8, %v10200_v25 }
 0x76c   : > { %5670 = vrot.lane.b32.xlu1 %v5669_v24, %s6349_s10  ;;  %v2082_v24 = vsel %vm787_vm6, %v7686_v11, %v10204_v12  ;;  %v1965_v11 = vsel %vm338_vm1, %v10210_v28, %v7601_v16 }
 0x76e   : > { %v6231_v43 = vpop.eup %6230 }
 0x76f   : > { %v2491_v23 = vadd.f32 1.0, %v6231_v43  ;;  %v2142_v43 = vadd.f32 %v2082_v24, %v1963_v46 }
 0x770   : > { %5680 = vrot.lane.b32.xlu1 %v5679_v49, %s6355_s13 }
 0x771   : > { %v2523_v6 = vmul.f32 %v2491_v23, %v2395_v54  ;;  %v2350_v49 = vadd.f32 %v2290_v39, %v2142_v43  ;;  %v2088_v23 = vsel %vm787_vm6, %v7724_v63, %v10212_v53  ;;  %v8125_v54 = vpop.permute.xlu1 %5625  ;;  %v8139_v53 = vpop.permute.xlu0 %5645 }
 0x772   : > { %v6233_v0 = vpop.eup %6232  ;;  %v2150_v22 = vadd.f32 %v2088_v23, %v1965_v11 }
 0x773   : > { %v2495_v26 = vadd.f32 1.0, %v6233_v0  ;;  %v8106_v52 = vmul.f32 %v2523_v6, %v10200_v25  ;;  %v2414_v0 = vmul.f32 0.70710677, %v2350_v49  ;;  %v2382_v24 = vmul.f32 0.5, %v2350_v49 }
 0x774   : > { %v2358_v36 = vadd.f32 %v2296_v34, %v2150_v22 }
 0x775   : > { %v2527_v27 = vmul.f32 %v2495_v26, %v2399_v7  ;;  %v8133_v12 = vpop.permute.xlu1 %5630  ;;  %6234 = verf.f32 %v2414_v0 }
 0x776   : > { %v2422_v63 = vmul.f32 0.70710677, %v2358_v36 }
 0x777   : > { %v8109_v32 = vmul.f32 %v2527_v27, %v10200_v25 }
 0x778   : > { %6236 = verf.f32 %v2422_v63 }
 0x779   : > { %v8137_v6 = vpop.permute.xlu1 %5640 }
 0x77f   : > { %v6235_v16 = vpop.eup %6234 }
 0x780   : > { %v2478_v15 = vadd.f32 1.0, %v6235_v16  ;;  %v1966_v16 = vsel %vm338_vm1, %v7904_v48, %v7878_v3 }
 0x782   : > { %v2510_v23 = vmul.f32 %v2478_v15, %v2382_v24  ;;  %v6237_v0 = vpop.eup %6236  ;;  %v5632_v24 = vunpack.i.l.bf16 %v8133_v12 }
 0x783   : > { %v2486_v15 = vadd.f32 1.0, %v6237_v0 }
 0x795   : > { %v8141_v7 = vpop.permute.xlu1 %5650 }
 0x79d   : > { %v8143_v28 = vpop.permute.xlu0 %5655 }
 0x7b5   : > { %v5661_v26 = vpop.permute.xlu1 %5660 }
 0x7b6   : > { %v5663_v2 = vunpack.i.h.bf16 %v5661_v26  ;;  %v5662_v27 = vunpack.i.l.bf16 %v5661_v26  ;;  %v5637_v26 = vunpack.i.l.bf16 %v8135_v58 }
 0x7b8   : > { %v8148_v11 = vsel %vm1113_vm8, %v5618_v13, %v5662_v27  ;;  %v8151_v34 = vsel %vm1113_vm8, %v5662_v27, %v5663_v2  ;;  %v5638_v13 = vunpack.i.h.bf16 %v8135_v58  ;;  %v5633_v27 = vunpack.i.h.bf16 %v8133_v12 }
 0x7b9   : > { %v5666_v46 = vpop.permute.xlu0 %5665 }
 0x7ba   : > { %v5668_v39 = vunpack.i.h.bf16 %v5666_v46  ;;  %v5667_v43 = vunpack.i.l.bf16 %v5666_v46  ;;  %v2390_v46 = vmul.f32 0.5, %v2358_v36  ;;  %v8176_v8 = vsel %vm1113_vm8, %v5637_v26, %v5638_v13 }
 0x7bb   : > { %v8180_v58 = vsel %vm1113_vm8, %v5632_v24, %v5633_v27 }
 0x7bc   : > { %v8154_v22 = vsel %vm1113_vm8, %v5623_v21, %v5667_v43  ;;  %v8157_v63 = vsel %vm1113_vm8, %v5667_v43, %v5668_v39  ;;  %v8169_v21 = vmul.f32 %v2510_v23, %v10198_v37  ;;  %v2518_v1 = vmul.f32 %v2486_v15, %v2390_v46 }
 0x7bd   : > { %v5674_v49 = vpack.i.bf16 %v8154_v22, %v8148_v11  ;;  %v5689_v23 = vpack.i.bf16 %v8176_v8, %v8180_v58  ;;  %v2085_v46 = vsel %vm787_vm6, %v7703_v55, %v10209_v57  ;;  %v2299_v55 = vsel %vm892_vm7, %v7915_v38, %v7925_v29 }
 0x7be   : > { %v5684_v43 = vpack.i.bf16 %v8049_v41, %v8169_v21  ;;  %v8186_v12 = vmul.f32 %v2518_v1, %v10198_v37 }
 0x7bf   : > { %5675 = vrot.lane.b32.xlu0 %v5674_v49, %s6349_s10 }
 0x7c0   : > { %v5704_v36 = vpack.i.bf16 %v8094_v19, %v8186_v12 }
 0x7c3   : > { %5685 = vrot.lane.b32.xlu0 %v5684_v43, %s6355_s13  ;;  %v1964_v43 = vsel %vm338_vm1, %v10207_v47, %v7597_v44 }
 0x7c7   : > { %5690 = vrot.lane.b32.xlu0 %v5689_v23, %s6349_s10  ;;  %v2146_v23 = vadd.f32 %v2085_v46, %v1964_v43 }
 0x7cb   : > { %5705 = vrot.lane.b32.xlu0 %v5704_v36, %s6355_s13 }
 0x7de   : > { %v8191_v0 = vpop.permute.xlu1 %5670 }
 0x7df   : > { %v10115_v49 = vunpack.i.h.bf16 %v8191_v0  ;;  %v5672_v26 = vunpack.i.l.bf16 %v8191_v0 }
 0x7e1   : > { %v8198_v15 = vsel %vm338_vm1, %v10115_v49, %v5668_v39  ;;  %v8203_v1 = vsel %vm338_vm1, %v5672_v26, %v5663_v2  ;;  %v2293_v39 = vsel %vm892_vm7, %v7770_v31, %v7816_v20  ;;  %v2091_v2 = vsel %vm787_vm6, %v7818_v61, %v7909_v62 }
 0x7e2   : > { %v8207_v24 = vpack.i.bf16 %v8198_v15, %v8203_v1  ;;  %v2354_v36 = vadd.f32 %v2293_v39, %v2146_v23  ;;  %v2154_v44 = vadd.f32 %v2091_v2, %v1966_v16  ;;  %v8227_v20 = vpop.permute.xlu1 %5680 }
 0x7e3   : > { %v10117_v62 = vunpack.i.l.bf16 %v8227_v20 }
 0x7e4   : > { %v2418_v40 = vmul.f32 0.70710677, %v2354_v36  ;;  %v2362_v47 = vadd.f32 %v2299_v55, %v2154_v44  ;;  %v2386_v43 = vmul.f32 0.5, %v2354_v36  ;;  %v5647_v44 = vunpack.i.l.bf16 %v8139_v53 }
 0x7e5   : > { %v8235_v38 = vsel %vm1113_vm8, %v5633_v27, %v10117_v62  ;;  %v5683_v27 = vunpack.i.h.bf16 %v8227_v20 }
 0x7e6   : > { %6238 = verf.f32 %v2418_v40  ;;  %v2426_v57 = vmul.f32 0.70710677, %v2362_v47  ;;  %v5648_v40 = vunpack.i.h.bf16 %v8139_v53 }
 0x7e8   : > { %6240 = verf.f32 %v2426_v57 }
 0x7f0   : > { %v6239_v31 = vpop.eup %6238 }
 0x7f1   : > { %v2482_v61 = vadd.f32 1.0, %v6239_v31 }
 0x7f2   : > { %v6241_v49 = vpop.eup %6240 }
 0x7f3   : > { %v2514_v23 = vmul.f32 %v2482_v61, %v2386_v43  ;;  %v2490_v31 = vadd.f32 1.0, %v6241_v49  ;;  %v5643_v43 = vunpack.i.h.bf16 %v8137_v6 }
 0x7f5   : > { %v8256_v61 = vmul.f32 %v2514_v23, %v10198_v37 }
 0x7f7   : > { %v5699_v23 = vpack.i.bf16 %v8091_v14, %v8256_v61 }
 0x831   : > { %v8229_v46 = vpop.permute.xlu0 %5675 }
 0x835   : > { %v5686_v39 = vpop.permute.xlu0 %5685 }
 0x836   : > { %v5688_v3 = vunpack.i.h.bf16 %v5686_v39  ;;  %v5687_v48 = vunpack.i.l.bf16 %v5686_v39  ;;  %v5642_v39 = vunpack.i.l.bf16 %v8137_v6  ;;  %v8279_v6 = vsel %vm1113_vm8, %v5647_v44, %v5648_v40 }
 0x837   : > { %v5744_v44 = vpack.i.bf16 %v7881_v33, %v8098_v51  ;;  %v2094_v33 = vsel %vm787_vm6, %v7825_v5, %v7911_v35 }
 0x838   : > { %v8238_v29 = vsel %vm1113_vm8, %v5638_v13, %v5687_v48  ;;  %v8241_v16 = vsel %vm1113_vm8, %v5687_v48, %v5688_v3  ;;  %v2394_v48 = vmul.f32 0.5, %v2362_v47 }
 0x839   : > { %v8244_v2 = vpop.permute.xlu0 %5690  ;;  %v5694_v36 = vpack.i.bf16 %v8238_v29, %v8235_v38 }
 0x83a   : > { %v10118_v13 = vunpack.i.h.bf16 %v8244_v2  ;;  %v10116_v57 = vunpack.i.l.bf16 %v8244_v2  ;;  %v2522_v55 = vmul.f32 %v2490_v31, %v2394_v48 }
 0x83b   : > { %5695 = vrot.lane.b32.xlu1 %v5694_v36, %s6349_s10 }
 0x83c   : > { %v8265_v53 = vsel %vm338_vm1, %v10116_v57, %v5683_v27  ;;  %v8270_v49 = vsel %vm338_vm1, %v10118_v13, %v5688_v3  ;;  %v2668_v57 = vsel %vm1113_vm8, %v5642_v39, %v5643_v43  ;;  %v2554_v47 = vmul.f32 %v2522_v55, %v10198_v37 }
 0x83d   : > { %v8276_v36 = vpack.i.bf16 %v8270_v49, %v8265_v53  ;;  %v5709_v62 = vpack.i.bf16 %v8279_v6, %v2668_v57  ;;  %v5734_v13 = vpack.i.bf16 %v8016_v56, %v7869_v18  ;;  %v5784_v18 = vpack.i.bf16 %v8148_v11, %v8083_v60  ;;  %v5706_v60 = vpop.permute.xlu0 %5705 }
 0x83e   : > { %v5719_v3 = vpack.i.bf16 %v8106_v52, %v2554_v47  ;;  %v5774_v55 = vpack.i.bf16 %v7966_v42, %v2554_v47  ;;  %v5708_v31 = vunpack.i.h.bf16 %v5706_v60  ;;  %v5707_v39 = vunpack.i.l.bf16 %v5706_v60  ;;  %v10216_v60 = vld [vmem:[#allocation51_spill] sm:$0xff] }
 0x83f   : > { %5700 = vrot.lane.b32.xlu1 %v5699_v23, %s6355_s13 }
 0x843   : > { %5710 = vrot.lane.b32.xlu1 %v5709_v62, %s6349_s10  ;;  %v5764_v62 = vpack.i.bf16 %v8186_v12, %v7900_v45  ;;  %v2302_v45 = vsel %vm892_vm7, %v7923_v30, %v8060_v50  ;;  %v8319_v30 = vsel %vm1113_vm8, %v5707_v39, %v5708_v31 }
 0x847   : > { %5720 = vrot.lane.b32.xlu1 %v5719_v3, %s6355_s13 }
 0x84b   : > { %5735 = vrot.lane.b32.xlu1 %v5734_v13, %s6356_s14 }
 0x84f   : > { %5745 = vrot.lane.b32.xlu1 %v5744_v44, %s6356_s14 }
 0x853   : > { %5755 = vrot.lane.b32.xlu1 %v7892_v17, %s6356_s14  ;;  %v1967_v17 = vsel %vm338_vm1, %v7845_v10, %v7812_v59  ;;  %v8316_v10 = vsel %vm1113_vm8, %v5648_v40, %v5707_v39 }
 0x854   : > { %v2158_v42 = vadd.f32 %v2094_v33, %v1967_v17 }
 0x856   : > { %v2366_v56 = vadd.f32 %v2302_v45, %v2158_v42  ;;  %v10213_v42 = vld [vmem:[#allocation47_spill] sm:$0xff] }
 0x857   : > { %5765 = vrot.lane.b32.xlu1 %v5764_v62, %s6356_s14 }
 0x858   : > { %v2430_v51 = vmul.f32 0.70710677, %v2366_v56  ;;  %v2398_v5 = vmul.f32 0.5, %v2366_v56  ;;  %v10214_v56 = vld [vmem:[#allocation50_spill] sm:$0xff] }
 0x85a   : > { %6242 = verf.f32 %v2430_v51  ;;  %v5729_v51 = vpack.i.bf16 %v10214_v56, %v10213_v42 }
 0x85b   : > { %5775 = vrot.lane.b32.xlu1 %v5774_v55, %s6356_s14 }
 0x85f   : > { %5785 = vrot.lane.b32.xlu1 %v5784_v18, %s6350_s11 }
 0x864   : > { %v6243_v12 = vpop.eup %6242 }
 0x865   : > { %v2494_v13 = vadd.f32 1.0, %v6243_v12  ;;  %v10215_v12 = vld [vmem:[#allocation49_spill] sm:$0xff] }
 0x867   : > { %v2526_v59 = vmul.f32 %v2494_v13, %v2398_v5  ;;  %v5749_v13 = vpack.i.bf16 %v8169_v21, %v10216_v60  ;;  %v5653_v21 = vunpack.i.h.bf16 %v8141_v7 }
 0x8ad   : > { %v8313_v11 = vpop.permute.xlu1 %5695 }
 0x8b1   : > { %v5701_v35 = vpop.permute.xlu1 %5700 }
 0x8b2   : > { %v5703_v48 = vunpack.i.h.bf16 %v5701_v35  ;;  %v5702_v23 = vunpack.i.l.bf16 %v5701_v35  ;;  %v10218_v35 = vld [vmem:[#allocation53_spill] sm:$0xff] }
 0x8b4   : > { %v2669_v50 = vsel %vm1113_vm8, %v5643_v43, %v5702_v23  ;;  %v8323_v47 = vsel %vm1113_vm8, %v5702_v23, %v5703_v48  ;;  %v2558_v43 = vmul.f32 %v2526_v59, %v10198_v37 }
 0x8b5   : > { %v8325_v3 = vpop.permute.xlu1 %5710  ;;  %v5794_v44 = vpack.i.bf16 %v2669_v50, %v2668_v57  ;;  %v5714_v62 = vpack.i.bf16 %v8316_v10, %v2669_v50  ;;  %v5854_v55 = vpack.i.bf16 %v8319_v30, %v8323_v47  ;;  %v5652_v50 = vunpack.i.l.bf16 %v8141_v7 }
 0x8b6   : > { %v5713_v18 = vunpack.i.h.bf16 %v8325_v3  ;;  %v5712_v40 = vunpack.i.l.bf16 %v8325_v3  ;;  %v5724_v17 = vpack.i.bf16 %v8109_v32, %v2558_v43 }
 0x8b7   : > { %5795 = vrot.lane.b32.xlu1 %v5794_v44, %s6350_s11  ;;  %5715 = vrot.lane.b32.xlu0 %v5714_v62, %s6349_s10  ;;  %v5658_v44 = vunpack.i.h.bf16 %v8143_v28  ;;  %v5657_v62 = vunpack.i.l.bf16 %v8143_v28  ;;  %v5814_v28 = vpack.i.bf16 %v8086_v9, %v8151_v34  ;;  %v10221_v9 = vunpack.i.l.bf16 %v8227_v20 }
 0x8b8   : > { %v8338_v33 = vsel %vm338_vm1, %v5713_v18, %v5708_v31  ;;  %v8343_v57 = vsel %vm338_vm1, %v5712_v40, %v5703_v48  ;;  %v10217_v31 = vld [vmem:[#allocation52_spill] sm:$0xff]  ;;  %v10219_v48 = vld [vmem:[#allocation31_spill] sm:$0xff] }
 0x8b9   : > { %v8348_v45 = vpack.i.bf16 %v8338_v33, %v8343_v57  ;;  %v5759_v39 = vpack.i.bf16 %v10217_v31, %v8256_v61  ;;  %v8362_v5 = vpop.permute.xlu1 %5720  ;;  %v5779_v23 = vpack.i.bf16 %v2558_v43, %v10219_v48  ;;  %v5789_v61 = vpack.i.bf16 %v8235_v38, %v8180_v58 }
 0x8ba   : > { %v5722_v59 = vunpack.i.l.bf16 %v8362_v5  ;;  %v2674_v43 = vsel %vm1113_vm8, %v5652_v50, %v5653_v21  ;;  %v8379_v56 = vsel %vm1113_vm8, %v5657_v62, %v5658_v44  ;;  %v5678_v58 = vunpack.i.h.bf16 %v8229_v46 }
 0x8bb   : > { %5725 = vrot.lane.b32.xlu0 %v5724_v17, %s6355_s13  ;;  %v5804_v7 = vpack.i.bf16 %v8379_v56, %v2674_v43  ;;  %v5677_v38 = vunpack.i.l.bf16 %v8229_v46  ;;  %v2664_v31 = vsel %vm1113_vm8, %v10221_v9, %v5683_v27  ;;  %v5723_v20 = vunpack.i.h.bf16 %v8362_v5 }
 0x8bc   : > { %v2675_v17 = vsel %vm1113_vm8, %v5653_v21, %v5722_v59 }
 0x8bd   : > { %v5799_v42 = vpack.i.bf16 %v2675_v17, %v2674_v43 }
 0x8bf   : > { %5730 = vrot.lane.b32.xlu0 %v5729_v51, %s6356_s14  ;;  %v2784_v51 = vsel %vm338_vm1, %v5677_v38, %v5672_v26  ;;  %v5849_v26 = vpack.i.bf16 %v8279_v6, %v8323_v47  ;;  %v10230_v47 = vpack.i.bf16 %v8049_v41, %v8046_v4 }
 0x8c3   : > { %5740 = vrot.lane.b32.xlu0 %v10215_v12, %s6356_s14  ;;  %v10220_v12 = vunpack.i.h.bf16 %v8191_v0  ;;  %v10222_v0 = vpack.i.bf16 %v8241_v16, %v8238_v29 }
 0x8c5   : > { %v2785_v60 = vsel %vm338_vm1, %v5678_v58, %v10220_v12 }
 0x8c7   : > { %5750 = vrot.lane.b32.xlu0 %v5749_v13, %s6356_s14  ;;  %v3057_v13 = vpack.c.bf16 %v2785_v60, %v2784_v51  ;;  %v10224_v51 = vunpack.i.l.bf16 %v8244_v2  ;;  %v10225_v60 = vpack.i.bf16 %v8157_v63, %v8151_v34 }
 0x8cb   : > { %5760 = vrot.lane.b32.xlu0 %v5759_v39, %s6356_s14  ;;  %v5839_v39 = vpack.i.bf16 %v8241_v16, %v2664_v31  ;;  %v2676_v16 = vsel %vm1113_vm8, %v5722_v59, %v5723_v20 }
 0x8cf   : > { %5770 = vrot.lane.b32.xlu0 %v10218_v35, %s6356_s14  ;;  %v8414_v35 = vpop.permute.xlu1 %5735 }
 0x8d3   : > { %5780 = vrot.lane.b32.xlu0 %v5779_v23, %s6356_s14  ;;  %v8419_v27 = vpop.permute.xlu1 %5745 }
 0x8d7   : > { %5790 = vrot.lane.b32.xlu0 %v5789_v61, %s6350_s11 }
 0x8db   : > { %5800 = vrot.lane.b32.xlu0 %v5799_v42, %s6350_s11  ;;  %v5698_v42 = vunpack.i.h.bf16 %v8313_v11 }
 0x8df   : > { %5805 = vrot.lane.b32.xlu0 %v5804_v7, %s6349_s10  ;;  %v5697_v7 = vunpack.i.l.bf16 %v8313_v11 }
 0x8e1   : > { %v2786_v12 = vsel %vm338_vm1, %v5697_v7, %v10224_v51  ;;  %v5627_v51 = vunpack.i.l.bf16 %v8125_v54 }
 0x8e3   : > { %5815 = vrot.lane.b32.xlu0 %v5814_v28, %s6350_s11  ;;  %v8442_v28 = vpop.permute.xlu1 %5755 }
 0x8e7   : > { %3220 = vrot.lane.b32.xlu0 %v3057_v13, %s6351_s12  ;;  %v8464_v13 = vpop.permute.xlu1 %5765 }
 0x8eb   : > { %5840 = vrot.lane.b32.xlu0 %v5839_v39, %s6349_s10 }
 0x8ef   : > { %5845 = vrot.lane.b32.xlu0 %v10222_v0, %s6350_s11 }
 0x8f3   : > { %5850 = vrot.lane.b32.xlu0 %v5849_v26, %s6350_s11  ;;  %v10226_v26 = vpack.i.bf16 %v8157_v63, %v8154_v22 }
 0x929   : > { %v8416_v48 = vpop.permute.xlu0 %5715 }
 0x92a   : > { %v5718_v0 = vunpack.i.h.bf16 %v8416_v48 }
 0x92d   : > { %v8421_v23 = vpop.permute.xlu0 %5725 }
 0x92e   : > { %v5728_v21 = vunpack.i.h.bf16 %v8421_v23  ;;  %v5727_v29 = vunpack.i.l.bf16 %v8421_v23  ;;  %v5758_v23 = vunpack.i.h.bf16 %v8442_v28 }
 0x930   : > { %v8429_v6 = vsel %vm1113_vm8, %v5658_v44, %v5727_v29  ;;  %v8434_v50 = vsel %vm1113_vm8, %v5727_v29, %v5728_v21  ;;  %v10223_v44 = vunpack.i.h.bf16 %v8244_v2  ;;  %v10119_v2 = vunpack.i.l.bf16 %v8416_v48 }
 0x931   : > { %v8436_v61 = vpop.permute.xlu0 %5730  ;;  %v5809_v62 = vpack.i.bf16 %v8429_v6, %v2675_v17  ;;  %v5869_v43 = vpack.i.bf16 %v8434_v50, %v2676_v16  ;;  %v2789_v29 = vsel %vm338_vm1, %v5718_v0, %v5713_v18 }
 0x932   : > { %v2787_v17 = vsel %vm338_vm1, %v5698_v42, %v10223_v44  ;;  %v5834_v44 = vpack.i.bf16 %v8176_v8, %v2664_v31  ;;  %v5733_v3 = vunpack.i.h.bf16 %v8436_v61 }
 0x933   : > { %5810 = vrot.lane.b32.xlu1 %v5809_v62, %s6349_s10  ;;  %5870 = vrot.lane.b32.xlu0 %v5869_v43, %s6349_s10  ;;  %v3061_v39 = vpack.c.bf16 %v2787_v17, %v2786_v12  ;;  %v2788_v62 = vsel %vm338_vm1, %v10119_v2, %v5712_v40  ;;  %v8487_v43 = vpop.permute.xlu1 %5775  ;;  %v5628_v40 = vunpack.i.h.bf16 %v8125_v54  ;;  %v5737_v12 = vunpack.i.l.bf16 %v8414_v35 }
 0x934   : > { %v3065_v63 = vpack.c.bf16 %v2789_v29, %v2788_v62  ;;  %v5778_v18 = vunpack.i.h.bf16 %v8487_v43 }
 0x935   : > { %v8446_v59 = vpop.permute.xlu0 %5740  ;;  %v2872_v54 = vsel %vm1222_vm9, %v5627_v51, %v5628_v40 }
 0x937   : > { %5820 = vrot.lane.b32.xlu1 %v10225_v60, %s6349_s10  ;;  %5875 = vrot.lane.b32.xlu0 %v8276_v36, %s6349_s10  ;;  %v2875_v60 = vsel %vm1222_vm9, %v5733_v3, %v5737_v12 }
 0x939   : > { %v8466_v9 = vpop.permute.xlu0 %5750 }
 0x93b   : > { %5825 = vrot.lane.b32.xlu1 %v10226_v26, %s6350_s11  ;;  %3228 = vrot.lane.b32.xlu0 %v3061_v39, %s6351_s12  ;;  %v10227_v39 = vld [vmem:[#allocation37_spill] sm:$0xff]  ;;  %v10228_v26 = vld [vmem:[#allocation36_spill] sm:$0xff] }
 0x93c   : > { %v10229_v29 = vpack.i.bf16 %v10227_v39, %v10228_v26  ;;  %v5864_v39 = vpack.i.bf16 %v8379_v56, %v2676_v16  ;;  %v5752_v26 = vunpack.i.l.bf16 %v8466_v9  ;;  %v5894_v56 = vpack.i.bf16 %v8434_v50, %v8429_v6 }
 0x93d   : > { %v8475_v34 = vpop.permute.xlu0 %5760  ;;  %v3056_v16 = vpack.c.bf16 %v8198_v15, %v8203_v1  ;;  %v3060_v50 = vpack.c.bf16 %v8270_v49, %v8265_v53  ;;  %v3064_v53 = vpack.c.bf16 %v8338_v33, %v8343_v57 }
 0x93e   : > { %v5763_v5 = vunpack.i.h.bf16 %v8475_v34 }
 0x93f   : > { %5880 = vrot.lane.b32.xlu0 %v8348_v45, %s6349_s10  ;;  %5830 = vrot.lane.b32.xlu1 %v8207_v24, %s6349_s10 }
 0x941   : > { %v8493_v22 = vpop.permute.xlu0 %5770 }
 0x942   : > { %v5772_v17 = vunpack.i.l.bf16 %v8493_v22 }
 0x943   : > { %3236 = vrot.lane.b32.xlu0 %v3065_v63, %s6351_s12  ;;  %5835 = vrot.lane.b32.xlu1 %v5834_v44, %s6350_s11  ;;  %v3073_v63 = vpack.c.bf16 %v2875_v60, %v2872_v54  ;;  %v5859_v44 = vpack.i.bf16 %v8319_v30, %v8316_v10  ;;  %v5743_v10 = vunpack.i.h.bf16 %v8446_v59  ;;  %v5742_v30 = vunpack.i.l.bf16 %v8446_v59 }
 0x944   : > { %v8508_v8 = vpack.c.bf16 %v5778_v18, %v5772_v17 }
 0x945   : > { %v8510_v31 = vpop.permute.xlu0 %5780  ;;  %v2878_v59 = vsel %vm1222_vm9, %v5742_v30, %v5743_v10 }
 0x947   : > { %5885 = vrot.lane.b32.xlu0 %v10229_v29, %s6356_s14  ;;  %5855 = vrot.lane.b32.xlu1 %v5854_v55, %s6349_s10  ;;  %v5748_v55 = vunpack.i.h.bf16 %v8419_v27 }
 0x949   : > { %v8522_v62 = vpop.permute.xlu0 %5790  ;;  %v2881_v29 = vsel %vm1222_vm9, %v5748_v55, %v5752_v26 }
 0x94a   : > { %v3077_v1 = vpack.c.bf16 %v2881_v29, %v2878_v59  ;;  %v10130_v29 = vunpack.i.l.bf16 %v8419_v27 }
 0x94b   : > { %3252 = vrot.lane.b32.xlu0 %v3073_v63, %s6351_s12  ;;  %5860 = vrot.lane.b32.xlu1 %v5859_v44, %s6350_s11  ;;  %v10122_v63 = vunpack.i.l.bf16 %v8436_v61  ;;  %v5767_v44 = vunpack.i.l.bf16 %v8464_v13 }
 0x94d   : > { %v8528_v2 = vpop.permute.xlu0 %5800  ;;  %v2873_v49 = vsel %vm1222_vm9, %v5628_v40, %v10122_v63  ;;  %v5782_v40 = vunpack.i.l.bf16 %v8510_v31 }
 0x94f   : > { %5890 = vrot.lane.b32.xlu0 %v10230_v47, %s6356_s14  ;;  %5865 = vrot.lane.b32.xlu1 %v5864_v39, %s6350_s11  ;;  %v2887_v39 = vsel %vm1222_vm9, %v5763_v5, %v5767_v44  ;;  %v10231_v47 = vpack.i.bf16 %v8094_v19, %v8091_v14  ;;  %v5773_v14 = vunpack.i.h.bf16 %v8493_v22  ;;  %v3072_v19 = vpack.c.bf16 %v5733_v3, %v5627_v51 }
 0x950   : > { %v2893_v59 = vsel %vm1222_vm9, %v5778_v18, %v5782_v40  ;;  %v2879_v3 = vsel %vm1222_vm9, %v5743_v10, %v10130_v29  ;;  %v10125_v10 = vunpack.i.h.bf16 %v8510_v31 }
 0x951   : > { %v8540_v60 = vpop.permute.xlu0 %5805  ;;  %v2890_v51 = vsel %vm1222_vm9, %v5772_v17, %v5773_v14 }
 0x952   : > { %v5808_v4 = vunpack.i.h.bf16 %v8540_v60  ;;  %v5807_v41 = vunpack.i.l.bf16 %v8540_v60 }
 0x953   : > { %5895 = vrot.lane.b32.xlu0 %v5894_v56, %s6350_s11  ;;  %3218 = vrot.lane.b32.xlu1 %v3056_v16, %s6351_s12  ;;  %v10131_v16 = vunpack.i.h.bf16 %v8466_v9 }
 0x954   : > { %v2732_v6 = vsel %vm338_vm1, %v5807_v41, %v5723_v20  ;;  %v2735_v15 = vsel %vm338_vm1, %v5808_v4, %v5728_v21  ;;  %v10123_v20 = vunpack.i.h.bf16 %v8414_v35  ;;  %v5757_v21 = vunpack.i.l.bf16 %v8442_v28 }
 0x955   : > { %v8564_v54 = vpack.i.bf16 %v2735_v15, %v2732_v6 }
 0x956   : > { %v2876_v28 = vsel %vm1222_vm9, %v5737_v12, %v10123_v20  ;;  %v2884_v56 = vsel %vm1222_vm9, %v5757_v21, %v5758_v23  ;;  %v2882_v12 = vsel %vm1222_vm9, %v5752_v26, %v10131_v16  ;;  %v3085_v26 = vpack.c.bf16 %v2893_v59, %v2890_v51 }
 0x957   : > { %3260 = vrot.lane.b32.xlu0 %v3077_v1, %s6351_s12  ;;  %3226 = vrot.lane.b32.xlu1 %v3060_v50, %s6351_s12  ;;  %v3081_v33 = vpack.c.bf16 %v2887_v39, %v2884_v56  ;;  %v3074_v57 = vpack.c.bf16 %v2876_v28, %v2873_v49  ;;  %v10232_v1 = vpack.i.bf16 %v8109_v32, %v8106_v52  ;;  %v10121_v52 = vunpack.i.h.bf16 %v8464_v13  ;;  %v8645_v56 = vpop.permute.xlu1 %5785 }
 0x958   : > { %v3078_v50 = vpack.c.bf16 %v2882_v12, %v2879_v3  ;;  %v3076_v32 = vpack.c.bf16 %v5748_v55, %v5742_v30  ;;  %v3080_v49 = vpack.c.bf16 %v5763_v5, %v5757_v21  ;;  %v10124_v55 = vunpack.i.l.bf16 %v8487_v43 }
 0x959   : > { %v2888_v22 = vsel %vm1222_vm9, %v5767_v44, %v10121_v52  ;;  %v2894_v30 = vsel %vm1222_vm9, %v5782_v40, %v10125_v10  ;;  %v3068_v44 = vpack.c.bf16 %v2735_v15, %v2732_v6  ;;  %v5787_v60 = vunpack.i.l.bf16 %v8645_v56 }
 0x95b   : > { %5900 = vrot.lane.b32.xlu0 %v10231_v47, %s6356_s14  ;;  %3234 = vrot.lane.b32.xlu1 %v3064_v53, %s6351_s12  ;;  %v10120_v53 = vunpack.i.l.bf16 %v8475_v34  ;;  %v8637_v47 = vpop.permute.xlu0 %5815 }
 0x95c   : > { %v5817_v29 = vunpack.i.l.bf16 %v8637_v47 }
 0x95d   : > { %v2885_v18 = vsel %vm1222_vm9, %v5758_v23, %v10120_v53  ;;  %v2891_v23 = vsel %vm1222_vm9, %v5773_v14, %v10124_v55 }
 0x95e   : > { %v3082_v17 = vpack.c.bf16 %v2888_v22, %v2885_v18  ;;  %v3086_v39 = vpack.c.bf16 %v2894_v30, %v2891_v23  ;;  %v5818_v30 = vunpack.i.h.bf16 %v8637_v47 }
 0x95f   : > { %3268 = vrot.lane.b32.xlu0 %v3081_v33, %s6351_s12  ;;  %3254 = vrot.lane.b32.xlu1 %v3074_v57, %s6351_s12  ;;  %v8639_v5 = vpop.permute.xlu0 %3220  ;;  %v8647_v33 = vpop.permute.xlu1 %5795 }
 0x960   : > { %v5798_v53 = vunpack.i.h.bf16 %v8647_v33  ;;  %v5797_v52 = vunpack.i.l.bf16 %v8647_v33 }
 0x963   : > { %5905 = vrot.lane.b32.xlu0 %v10232_v1, %s6356_s14  ;;  %3250 = vrot.lane.b32.xlu1 %v3072_v19, %s6351_s12  ;;  %v8641_v21 = vpop.permute.xlu0 %5840 }
 0x964   : > { %v5843_v51 = vunpack.i.h.bf16 %v8641_v21 }
 0x966   : > { %v2795_v23 = vsel %vm338_vm1, %v5843_v51, %v5698_v42 }
 0x967   : > { %3276 = vrot.lane.b32.xlu0 %v3085_v26, %s6351_s12  ;;  %3262 = vrot.lane.b32.xlu1 %v3078_v50, %s6351_s12  ;;  %v8643_v28 = vpop.permute.xlu0 %5845  ;;  %v5842_v26 = vunpack.i.l.bf16 %v8641_v21 }
 0x969   : > { %v2794_v46 = vsel %vm338_vm1, %v5842_v26, %v5697_v7 }
 0x96b   : > { %5910 = vrot.lane.b32.xlu0 %v8564_v54, %s6349_s10  ;;  %3258 = vrot.lane.b32.xlu1 %v3076_v32, %s6351_s12  ;;  %v8649_v57 = vpop.permute.xlu0 %5850 }
 0x96f   : > { %3270 = vrot.lane.b32.xlu1 %v3082_v17, %s6351_s12 }
 0x973   : > { %3266 = vrot.lane.b32.xlu1 %v3080_v49, %s6351_s12 }
 0x977   : > { %3278 = vrot.lane.b32.xlu1 %v3086_v39, %s6351_s12 }
 0x97b   : > { %3242 = vrot.lane.b32.xlu1 %v3068_v44, %s6351_s12  ;;  %v3062_v44 = vpack.c.bf16 %v2795_v23, %v2794_v46 }
 0x9a5   : > { %v8651_v40 = vpop.permute.xlu1 %5810  ;;  %v8653_v14 = vpop.permute.xlu0 %5870 }
 0x9a6   : > { %v5813_v6 = vunpack.i.h.bf16 %v8651_v40  ;;  %v5812_v15 = vunpack.i.l.bf16 %v8651_v40  ;;  %v5792_v40 = vunpack.i.l.bf16 %v8522_v62  ;;  %v10236_v33 = vunpack.i.h.bf16 %v8653_v14 }
 0x9a8   : > { %v2791_v19 = vsel %vm338_vm1, %v5813_v6, %v5808_v4  ;;  %v2790_v12 = vsel %vm338_vm1, %v5812_v15, %v5807_v41  ;;  %v5788_v4 = vunpack.i.h.bf16 %v8645_v56 }
 0x9a9   : > { %v8663_v59 = vpop.permute.xlu1 %5820  ;;  %v8665_v1 = vpop.permute.xlu0 %5875  ;;  %v3069_v3 = vpack.c.bf16 %v2791_v19, %v2790_v12 }
 0x9aa   : > { %v10127_v50 = vunpack.i.h.bf16 %v8663_v59  ;;  %v10126_v32 = vunpack.i.l.bf16 %v8663_v59 }
 0x9ab   : > { %3244 = vrot.lane.b32.xlu0 %v3069_v3, %s6351_s12  ;;  %v5847_v3 = vunpack.i.l.bf16 %v8643_v28 }
 0x9ac   : > { %v2793_v41 = vsel %vm338_vm1, %v10127_v50, %v5678_v58  ;;  %v2792_v18 = vsel %vm338_vm1, %v10126_v32, %v5677_v38  ;;  %v3000_v38 = vsel %vm380_vm2, %v5787_v60, %v5788_v4 }
 0x9ad   : > { %v8684_v22 = vpop.permute.xlu1 %5825  ;;  %v8686_v17 = vpop.permute.xlu0 %3228  ;;  %v3058_v49 = vpack.c.bf16 %v2793_v41, %v2792_v18 }
 0x9ae   : > { %v5827_v58 = vunpack.i.l.bf16 %v8684_v22 }
 0x9af   : > { %5915 = vrot.lane.b32.xlu0 %v8207_v24, %s6350_s11  ;;  %3222 = vrot.lane.b32.xlu1 %v3058_v49, %s6351_s12  ;;  %v5793_v24 = vunpack.i.h.bf16 %v8522_v62  ;;  %v6114_v62 = vld [vmem:[%s10054_s4 + $0x4] ss:$8 sps:$4 sm:$0xff]  }
 0x9b0   : > { %v3003_v11 = vsel %vm380_vm2, %v5818_v30, %v5827_v58  ;;  %5364 = vmatprep.mubr.msk.bf16.mxu0 %vm3398_vm11, %v6114_v62  ;;  %5370 = vmatprep.mubr.msk.bf16.mxu1 %vm3398_vm11, %v6114_v62 }
 0x9b1   : > { %v8711_v42 = vpop.permute.xlu0 %5880  ;;  %v8713_v7 = vpop.permute.xlu1 %5830  ;;  %v3089_v39 = vpack.c.bf16 %v3003_v11, %v3000_v38  ;;  %v3006_v18 = vsel %vm380_vm2, %v5792_v40, %v5793_v24 }
 0x9b3   : > { %3284 = vrot.lane.b32.xlu0 %v3089_v39, %s6351_s12  ;;  %3230 = vrot.lane.b32.xlu1 %v3062_v44, %s6351_s12  ;;  %v10133_v39 = vunpack.i.h.bf16 %v8653_v14  ;;  %v10135_v44 = vunpack.i.l.bf16 %v8653_v14 }
 0x9b5   : > { %v8719_v19 = vpop.permute.xlu0 %3236  ;;  %v8721_v12 = vpop.permute.xlu1 %5835  ;;  %v2799_v50 = vsel %vm338_vm1, %v10133_v39, %v5813_v6 }
 0x9b6   : > { %v5838_v41 = vunpack.i.h.bf16 %v8721_v12 }
 0x9b7   : > { %5920 = vrot.lane.b32.xlu0 %v8276_v36, %s6350_s11 }
 0x9b8   : > { %v3009_v49 = vsel %vm380_vm2, %v5838_v41, %v5847_v3 }
 0x9b9   : > { %v8737_v23 = vpop.permute.xlu0 %5885  ;;  %v8739_v46 = vpop.permute.xlu1 %5855  ;;  %v3093_v38 = vpack.c.bf16 %v3009_v49, %v3006_v18  ;;  %v10233_v49 = vunpack.i.l.bf16 %v8416_v48  ;;  %v2798_v48 = vsel %vm338_vm1, %v10135_v44, %v5812_v15  ;;  %v10132_v15 = vunpack.i.h.bf16 %v8684_v22 }
 0x9ba   : > { %v10129_v11 = vunpack.i.h.bf16 %v8739_v46  ;;  %v10128_v36 = vunpack.i.l.bf16 %v8739_v46 }
 0x9bb   : > { %3292 = vrot.lane.b32.xlu0 %v3093_v38, %s6351_s12  ;;  %v10136_v38 = vunpack.i.h.bf16 %v8649_v57 }
 0x9bc   : > { %v2797_v18 = vsel %vm338_vm1, %v10129_v11, %v5718_v0  ;;  %v2796_v63 = vsel %vm338_vm1, %v10128_v36, %v10233_v49  ;;  %v3012_v0 = vsel %vm380_vm2, %v5797_v52, %v5798_v53  ;;  %v3070_v49 = vpack.c.bf16 %v2799_v50, %v2798_v48 }
 0x9bd   : > { %v8758_v20 = vpop.permute.xlu0 %3252  ;;  %v8760_v55 = vpop.permute.xlu1 %5860  ;;  %v3066_v32 = vpack.c.bf16 %v2797_v18, %v2796_v63  ;;  %v5802_v11 = vunpack.i.l.bf16 %v8528_v2  ;;  %v3004_v48 = vsel %vm380_vm2, %v5827_v58, %v10132_v15  ;;  %v5877_v15 = vunpack.i.l.bf16 %v8665_v1 }
 0x9be   : > { %v5862_v10 = vunpack.i.l.bf16 %v8760_v55 }
 0x9bf   : > { %5925 = vrot.lane.b32.xlu0 %v8348_v45, %s6350_s11  ;;  %3238 = vrot.lane.b32.xlu1 %v3066_v32, %s6351_s12  ;;  %v10134_v45 = vunpack.i.h.bf16 %v8528_v2 }
 0x9c0   : > { %v3015_v63 = vsel %vm380_vm2, %v10136_v38, %v5862_v10 }
 0x9c1   : > { %v8781_v6 = vpop.permute.xlu0 %5890  ;;  %v3097_v18 = vpack.c.bf16 %v3015_v63, %v3012_v0  ;;  %v8784_v36 = vpop.permute.xlu1 %5865  ;;  %v3018_v0 = vsel %vm380_vm2, %v5802_v11, %v10134_v45  ;;  %v5837_v45 = vunpack.i.l.bf16 %v8721_v12 }
 0x9c2   : > { %v5868_v32 = vunpack.i.h.bf16 %v8784_v36 }
 0x9c3   : > { %3300 = vrot.lane.b32.xlu0 %v3097_v18, %s6351_s12  ;;  %3246 = vrot.lane.b32.xlu1 %v3070_v49, %s6351_s12  ;;  %v3001_v18 = vsel %vm380_vm2, %v5788_v4, %v5817_v29  ;;  %v3088_v4 = vpack.c.bf16 %v5818_v30, %v5787_v60  ;;  %v5863_v60 = vunpack.i.h.bf16 %v8760_v55  ;;  %v5852_v30 = vunpack.i.l.bf16 %v8649_v57 }
 0x9c4   : > { %v3090_v39 = vpack.c.bf16 %v3004_v48, %v3001_v18  ;;  %v3100_v44 = vpack.c.bf16 %v5868_v32, %v5802_v11  ;;  %v3007_v11 = vsel %vm380_vm2, %v5793_v24, %v5837_v45  ;;  %v5892_v18 = vunpack.i.l.bf16 %v8781_v6 }
 0x9c5   : > { %v8791_v16 = vpop.permute.xlu0 %5895 }
 0x9c6   : > { %v5897_v50 = vunpack.i.l.bf16 %v8791_v16 }
 0x9c7   : > { %5930 = vrot.lane.b32.xlu0 %v8564_v54, %s6350_s11  ;;  %3274 = vrot.lane.b32.xlu1 %v8508_v8, %s6351_s12  ;;  %v5878_v54 = vunpack.i.h.bf16 %v8665_v1  ;;  %v5848_v8 = vunpack.i.h.bf16 %v8643_v28  ;;  %v2802_v1 = vsel %vm338_vm1, %v5877_v15, %v5842_v26 }
 0x9c8   : > { %v3021_v63 = vsel %vm380_vm2, %v5868_v32, %v5897_v50 }
 0x9c9   : > { %v8811_v49 = vpop.permute.xlu0 %3260  ;;  %v3101_v58 = vpack.c.bf16 %v3021_v63, %v3018_v0  ;;  %v2803_v48 = vsel %vm338_vm1, %v5878_v54, %v5843_v51  ;;  %v3010_v56 = vsel %vm380_vm2, %v5847_v3, %v5848_v8  ;;  %v3016_v3 = vsel %vm380_vm2, %v5862_v10, %v5863_v60 }
 0x9ca   : > { %v3063_v21 = vpack.c.bf16 %v2803_v48, %v2802_v1  ;;  %v3094_v51 = vpack.c.bf16 %v3010_v56, %v3007_v11  ;;  %v5893_v10 = vunpack.i.h.bf16 %v8781_v6  ;;  %v5832_v1 = vunpack.i.l.bf16 %v8713_v7 }
 0x9cb   : > { %3308 = vrot.lane.b32.xlu0 %v3101_v58, %s6351_s12  ;;  %3286 = vrot.lane.b32.xlu1 %v3090_v39, %s6351_s12  ;;  %v3092_v39 = vpack.c.bf16 %v5838_v41, %v5792_v40  ;;  %v5898_v40 = vunpack.i.h.bf16 %v8791_v16  ;;  %v5867_v41 = vunpack.i.l.bf16 %v8784_v36  ;;  %v10235_v11 = vunpack.i.l.bf16 %v8653_v14 }
 0x9cc   : > { %v10237_v6 = vunpack.i.h.bf16 %v8466_v9 }
 0x9cd   : > { %v8819_v38 = vpop.permute.xlu0 %5900  ;;  %v3022_v48 = vsel %vm380_vm2, %v5897_v50, %v5898_v40 }
 0x9cf   : > { %3306 = vrot.lane.b32.xlu0 %v3100_v44, %s6351_s12  ;;  %3282 = vrot.lane.b32.xlu1 %v3088_v4, %s6351_s12  ;;  %v3013_v44 = vsel %vm380_vm2, %v5798_v53, %v5852_v30  ;;  %v10234_v53 = vunpack.i.h.bf16 %v8649_v57  ;;  %v5833_v4 = vunpack.i.h.bf16 %v8713_v7  ;;  %v10238_v7 = vunpack.i.h.bf16 %v8528_v2 }
 0x9d0   : > { %v3098_v32 = vpack.c.bf16 %v3016_v3, %v3013_v44  ;;  %v10239_v3 = vunpack.i.l.bf16 %v8419_v27  ;;  %v5883_v2 = vunpack.i.h.bf16 %v8711_v42  ;;  %v5882_v27 = vunpack.i.l.bf16 %v8711_v42 }
 0x9d1   : > { %v8843_v26 = vpop.permute.xlu0 %3268  ;;  %v3096_v63 = vpack.c.bf16 %v10234_v53, %v5797_v52  ;;  %v3019_v50 = vsel %vm380_vm2, %v10238_v7, %v5867_v41  ;;  %v10245_v42 = vunpack.i.l.bf16 %v8739_v46  ;;  %v5903_v7 = vunpack.i.h.bf16 %v8819_v38 }
 0x9d2   : > { %v2880_v14 = vsel %vm1222_vm9, %v10239_v3, %v5892_v18  ;;  %v3102_v62 = vpack.c.bf16 %v3022_v48, %v3019_v50  ;;  %v10244_v48 = vunpack.i.h.bf16 %v8739_v46  ;;  %v5902_v46 = vunpack.i.l.bf16 %v8819_v38 }
 0x9d3   : > { %3232 = vrot.lane.b32.xlu0 %v3063_v21, %s6351_s12  ;;  %3294 = vrot.lane.b32.xlu1 %v3094_v51, %s6351_s12  ;;  %v2883_v21 = vsel %vm1222_vm9, %v10237_v6, %v5893_v10  ;;  %v3219_v51 = vpop.permute.xlu1 %3218  ;;  %v10241_v10 = vunpack.i.l.bf16 %v8663_v59  ;;  %v10248_v3 = vunpack.i.h.bf16 %v8464_v13 }
 0x9d5   : > { %v5906_v24 = vpop.permute.xlu0 %5905  ;;  %v2800_v53 = vsel %vm338_vm1, %v5832_v1, %v10241_v10  ;;  %v5887_v1 = vunpack.i.l.bf16 %v8737_v23 }
 0x9d6   : > { %v5908_v44 = vunpack.i.h.bf16 %v5906_v24 }
 0x9d7   : > { %3290 = vrot.lane.b32.xlu1 %v3092_v39, %s6351_s12 }
 0x9d9   : > { %v8862_v15 = vpop.permute.xlu0 %3276 }
 0x9db   : > { %3302 = vrot.lane.b32.xlu1 %v3098_v32, %s6351_s12  ;;  %v5907_v32 = vunpack.i.l.bf16 %v5906_v24  ;;  %v10242_v24 = vunpack.i.h.bf16 %v8510_v31  ;;  %v3227_v31 = vpop.permute.xlu1 %3226 }
 0x9dd   : > { %v5911_v0 = vpop.permute.xlu0 %5910  ;;  %v2895_v18 = vsel %vm1222_vm9, %v10242_v24, %v5908_v44 }
 0x9de   : > { %v5913_v58 = vunpack.i.h.bf16 %v5911_v0  ;;  %v5912_v54 = vunpack.i.l.bf16 %v5911_v0  ;;  %v10240_v0 = vunpack.i.h.bf16 %v8663_v59 }
 0x9df   : > { %3298 = vrot.lane.b32.xlu1 %v3096_v63, %s6351_s12  ;;  %v3079_v63 = vpack.c.bf16 %v2883_v21, %v2880_v14  ;;  %v3235_v50 = vpop.permute.xlu1 %3234  ;;  %v10249_v14 = vunpack.i.l.bf16 %v8475_v34 }
 0x9e0   : > { %v2806_v56 = vsel %vm338_vm1, %v5912_v54, %v10235_v11  ;;  %v2807_v52 = vsel %vm338_vm1, %v5913_v58, %v10236_v33  ;;  %v2801_v9 = vsel %vm338_vm1, %v5833_v4, %v10240_v0  ;;  %v10243_v58 = vunpack.i.l.bf16 %v8487_v43 }
 0x9e1   : > { %v3071_v39 = vpack.c.bf16 %v2807_v52, %v2806_v56  ;;  %v3059_v59 = vpack.c.bf16 %v2801_v9, %v2800_v53  ;;  %v5888_v4 = vunpack.i.h.bf16 %v8737_v23  ;;  %v2805_v11 = vsel %vm338_vm1, %v5883_v2, %v10244_v48 }
 0x9e2   : > { %v2892_v54 = vsel %vm1222_vm9, %v10243_v58, %v5907_v32  ;;  %v2804_v56 = vsel %vm338_vm1, %v5882_v27, %v10245_v42  ;;  %v10246_v52 = vunpack.i.h.bf16 %v8414_v35  ;;  %v10247_v23 = vunpack.i.l.bf16 %v8436_v61 }
 0x9e3   : > { %3248 = vrot.lane.b32.xlu0 %v3071_v39, %s6351_s12  ;;  %3310 = vrot.lane.b32.xlu1 %v3102_v62, %s6351_s12  ;;  %v3087_v43 = vpack.c.bf16 %v2895_v18, %v2892_v54  ;;  %v3067_v33 = vpack.c.bf16 %v2805_v11, %v2804_v56  ;;  %v2889_v35 = vsel %vm1222_vm9, %v10248_v3, %v5903_v7  ;;  %v8944_v32 = vpop.permute.xlu1 %3254  ;;  %v10250_v54 = vunpack.i.h.bf16 %v8684_v22 }
 0x9e4   : > { %v2877_v6 = vsel %vm1222_vm9, %v10246_v52, %v5888_v4  ;;  %v2874_v21 = vsel %vm1222_vm9, %v10247_v23, %v5887_v1  ;;  %v2886_v61 = vsel %vm1222_vm9, %v10249_v14, %v5902_v46  ;;  %v3314_v58 = vsel %vm462_vm3, %v3219_v51, %v8639_v5 }
 0x9e5   : > { %v3075_v39 = vpack.c.bf16 %v2877_v6, %v2874_v21  ;;  %v3083_v44 = vpack.c.bf16 %v2889_v35, %v2886_v61  ;;  %v3320_v28 = vsel %vm462_vm3, %v3235_v50, %v8719_v19  ;;  %v3327_v57 = vsel %vm462_vm3, %v8758_v20, %v8944_v32 }
 0x9e7   : > { %3264 = vrot.lane.b32.xlu0 %v3079_v63, %s6351_s12  ;;  %3224 = vrot.lane.b32.xlu1 %v3059_v59, %s6351_s12  ;;  %v3251_v38 = vpop.permute.xlu1 %3250 }
 0x9eb   : > { %3280 = vrot.lane.b32.xlu0 %v3087_v43, %s6351_s12  ;;  %3240 = vrot.lane.b32.xlu1 %v3067_v33, %s6351_s12  ;;  %v8947_v62 = vpop.permute.xlu1 %3262 }
 0x9ec   : > { %v3330_v14 = vsel %vm462_vm3, %v8811_v49, %v8947_v62 }
 0x9ef   : > { %3256 = vrot.lane.b32.xlu1 %v3075_v39, %s6351_s12  ;;  %v8949_v0 = vpop.permute.xlu1 %3258  ;;  %v3326_v39 = vsel %vm462_vm3, %v3251_v38, %v8758_v20 }
 0x9f0   : > { %v3329_v20 = vsel %vm462_vm3, %v8949_v0, %v8811_v49 }
 0x9f3   : > { %3272 = vrot.lane.b32.xlu1 %v3083_v44, %s6351_s12  ;;  %v8951_v9 = vpop.permute.xlu1 %3270 }
 0x9f4   : > { %v3333_v16 = vsel %vm462_vm3, %v8843_v26, %v8951_v9 }
 0x9f7   : > { %v8953_v13 = vpop.permute.xlu1 %3266 }
 0x9fb   : > { %v8955_v10 = vpop.permute.xlu1 %3278 }
 0x9ff   : > { %v3243_v34 = vpop.permute.xlu1 %3242 }
 0xa1d   : > { %v3245_v53 = vpop.permute.xlu0 %3244 }
 0xa1e   : > { %v3323_v55 = vsel %vm462_vm3, %v3243_v34, %v3245_v53 }
 0xa21   : > { %v5916_v2 = vpop.permute.xlu0 %5915  ;;  %v8957_v27 = vpop.permute.xlu1 %3222 }
 0xa22   : > { %v5918_v63 = vunpack.i.h.bf16 %v5916_v2  ;;  %v5917_v24 = vunpack.i.l.bf16 %v5916_v2  ;;  %v3315_v18 = vsel %vm462_vm3, %v8639_v5, %v8957_v27  ;;  %v3317_v5 = vsel %vm462_vm3, %v3227_v31, %v8686_v17 }
 0xa23   : > { %3417 = vmatprep.subr.bf16.mxu0 %v3315_v18 }
 0xa24   : > { %v3005_v59 = vsel %vm380_vm2, %v10250_v54, %v5918_v63  ;;  %v3002_v4 = vsel %vm380_vm2, %v5817_v29, %v5917_v24  ;;  %3418 = vmatpush1.bf16.msra.mxu0 %v3314_v58 }
 0xa25   : > { %v8970_v1 = vpop.permute.xlu0 %3284  ;;  %v8972_v48 = vpop.permute.xlu1 %3230  ;;  %v3091_v11 = vpack.c.bf16 %v3005_v59, %v3002_v4 }
 0xa26   : > { %v3318_v42 = vsel %vm462_vm3, %v8686_v17, %v8972_v48 }
 0xa27   : > { %3288 = vrot.lane.b32.xlu1 %v3091_v11, %s6351_s12  ;;  %3419 = vmatprep.subr.bf16.mxu0 %v3318_v42  ;;  %v9065_v11 = vld [vmem:[%s10054_s4 + $0x14] ss:$8 sps:$4 sm:$0xff]  }
 0xa28   : > { %3420 = vmatpush1.bf16.msra.mxu0 %v3317_v5 }
 0xa29   : > { %v5921_v47 = vpop.permute.xlu0 %5920 }
 0xa2a   : > { %v5923_v22 = vunpack.i.h.bf16 %v5921_v47  ;;  %v5922_v29 = vunpack.i.l.bf16 %v5921_v47 }
 0xa2c   : > { %v3011_v51 = vsel %vm380_vm2, %v5848_v8, %v5923_v22  ;;  %v3008_v56 = vsel %vm380_vm2, %v5837_v45, %v5922_v29 }
 0xa2d   : > { %v3293_v43 = vpop.permute.xlu0 %3292  ;;  %v3095_v33 = vpack.c.bf16 %v3011_v51, %v3008_v56  ;;  %v6117_v51 = vld [vmem:[%s10054_s4 + $0x10] ss:$8 sps:$4 sm:$0xff]  }
 0xa2f   : > { %3296 = vrot.lane.b32.xlu0 %v3095_v33, %s6351_s12 }
 0xa31   : > { %v5926_v17 = vpop.permute.xlu0 %5925  ;;  %v8987_v6 = vpop.permute.xlu1 %3238 }
 0xa32   : > { %v5928_v31 = vunpack.i.h.bf16 %v5926_v17  ;;  %v5927_v52 = vunpack.i.l.bf16 %v5926_v17  ;;  %v3321_v23 = vsel %vm462_vm3, %v8719_v19, %v8987_v6  ;;  %v6120_v17 = vld [vmem:[%s10054_s4 + $0x20] ss:$8 sps:$4 sm:$0xff]  }
 0xa33   : > { %3421 = vmatprep.subr.bf16.mxu0 %v3321_v23 }
 0xa34   : > { %v3017_v12 = vsel %vm380_vm2, %v5863_v60, %v5928_v31  ;;  %v3014_v45 = vsel %vm380_vm2, %v5852_v30, %v5927_v52  ;;  %3422 = vmatpush1.bf16.msra.mxu0 %v3320_v28  ;;  %v6121_v31 = vld [vmem:[%s10054_s4 + $0x34] ss:$8 sps:$4 sm:$0xff]  }
 0xa35   : > { %v3301_v8 = vpop.permute.xlu0 %3300  ;;  %v3099_v21 = vpack.c.bf16 %v3017_v12, %v3014_v45  ;;  %v9000_v7 = vpop.permute.xlu1 %3246  ;;  %v6123_v12 = vld [vmem:[%s10054_s4 + $0x30] ss:$8 sps:$4 sm:$0xff]  }
 0xa36   : > { %v3324_v46 = vsel %vm462_vm3, %v3245_v53, %v9000_v7 }
 0xa37   : > { %3304 = vrot.lane.b32.xlu1 %v3099_v21, %s6351_s12  ;;  %3423 = vmatprep.subr.bf16.mxu0 %v3324_v46  ;;  %v6126_v21 = vld [vmem:[%s10054_s4 + $0x40] ss:$8 sps:$4 sm:$0xff]  }
 0xa38   : > { %3424 = vmatpush1.bf16.msra.mxu0 %v3323_v55 }
 0xa39   : > { %v5931_v19 = vpop.permute.xlu0 %5930  ;;  %3425 = vmatprep.subr.bf16.mxu0 %v3327_v57  ;;  %v3275_v50 = vpop.permute.xlu1 %3274 }
 0xa3a   : > { %v5933_v60 = vunpack.i.h.bf16 %v5931_v19  ;;  %v5932_v30 = vunpack.i.l.bf16 %v5931_v19  ;;  %v3335_v49 = vsel %vm462_vm3, %v3275_v50, %v8862_v15 }
 0xa3c   : > { %v3023_v3 = vsel %vm380_vm2, %v5898_v40, %v5933_v60  ;;  %v3020_v35 = vsel %vm380_vm2, %v5867_v41, %v5932_v30  ;;  %3426 = vmatpush1.bf16.msra.mxu0 %v3326_v39  ;;  %v3332_v40 = vsel %vm462_vm3, %v8953_v13, %v8843_v26  ;;  %v3336_v41 = vsel %vm462_vm3, %v8862_v15, %v8955_v10 }
 0xa3d   : > { %v3103_v61 = vpack.c.bf16 %v3023_v3, %v3020_v35  ;;  %3427 = vmatprep.subr.bf16.mxu0 %v3330_v14  ;;  %v9020_v44 = vpop.permute.xlu1 %3286  ;;  %v3309_v2 = vpop.permute.xlu0 %3308 }
 0xa3e   : > { %v3339_v0 = vsel %vm462_vm3, %v8970_v1, %v9020_v44 }
 0xa3f   : > { %3312 = vrot.lane.b32.xlu0 %v3103_v61, %s6351_s12 }
 0xa40   : > { %3428 = vmatpush1.bf16.msra.mxu0 %v3329_v20 }
 0xa41   : > { %3429 = vmatprep.subr.bf16.mxu0 %v3333_v16  ;;  %v3283_v36 = vpop.permute.xlu1 %3282  ;;  %v3307_v58 = vpop.permute.xlu0 %3306 }
 0xa42   : > { %v3338_v26 = vsel %vm462_vm3, %v3283_v36, %v8970_v1  ;;  %v3347_v4 = vsel %vm462_vm3, %v3307_v58, %v3309_v2  ;;  %v9060_v1 = vld [vmem:[%s10054_s4] ss:$8 sps:$4 sm:$0xff]  }
 0xa44   : > { %3430 = vmatpush1.bf16.msra.mxu0 %v3332_v40 }
 0xa45   : > { %3431 = vmatprep.subr.bf16.mxu0 %v3336_v41  ;;  %v9035_v38 = vpop.permute.xlu1 %3294  ;;  %v3233_v47 = vpop.permute.xlu0 %3232 }
 0xa46   : > { %v3342_v13 = vsel %vm462_vm3, %v3293_v43, %v9035_v38  ;;  %v3319_v22 = vsel %vm462_vm3, %v8972_v48, %v3233_v47 }
 0xa48   : > { %3432 = vmatpush1.bf16.msra.mxu0 %v3335_v49 }
 0xa49   : > { %3433 = vmatprep.subr.bf16.mxu0 %v3339_v0  ;;  %v3291_v34 = vpop.permute.xlu1 %3290 }
 0xa4a   : > { %v3341_v15 = vsel %vm462_vm3, %v3291_v34, %v3293_v43 }
 0xa4c   : > { %3434 = vmatpush1.bf16.msra.mxu0 %v3338_v26 }
 0xa4d   : > { %3435 = vmatprep.subr.bf16.mxu0 %v3342_v13  ;;  %v9046_v53 = vpop.permute.xlu1 %3302 }
 0xa4e   : > { %v3345_v63 = vsel %vm462_vm3, %v3301_v8, %v9046_v53 }
 0xa50   : > { %3436 = vmatpush1.bf16.msra.mxu0 %v3341_v15 }
 0xa51   : > { %3437 = vmatprep.subr.bf16.mxu0 %v3345_v63  ;;  %v3299_v24 = vpop.permute.xlu1 %3298 }
 0xa52   : > { %v3344_v18 = vsel %vm462_vm3, %v3299_v24, %v3301_v8 }
 0xa54   : > { %3438 = vmatpush1.bf16.msra.mxu0 %v3344_v18 }
 0xa55   : > { %v9052_v54 = vpop.permute.xlu1 %3310  ;;  %v3249_v43 = vpop.permute.xlu0 %3248 }
 0xa56   : > { %v3348_v59 = vsel %vm462_vm3, %v3309_v2, %v9052_v54  ;;  %v3325_v48 = vsel %vm462_vm3, %v9000_v7, %v3249_v43  ;;  %v6127_v7 = vld [vmem:[%s10054_s4 + $0x54] ss:$8 sps:$4 sm:$0xff]  }
 0xa57   : > { %3439 = vmatprep.subr.bf16.mxu0 %v3348_v59 }
 0xa58   : > { %3440 = vmatpush1.bf16.msra.mxu0 %v3347_v4 }
 0xa59   : > { %v3225_v42 = vpop.permute.xlu1 %3224 }
 0xa5a   : > { %3510 = vmatprep.subr.bf16.mxu1 %v3225_v42  ;;  %v3316_v5 = vsel %vm462_vm3, %v8957_v27, %v3225_v42  ;;  %v6118_v27 = vld [vmem:[%s10054_s4 + $0x24] ss:$8 sps:$4 sm:$0xff]  }
 0xa5b   : > { %3450 = vmatmul.mubr.bf16.vlgmr.msra.gmra.mrb[72].mxu0 %v9060_v1  ;;  %3511 = vmatpush1.bf16.msra.mxu1 %v3316_v5 }
 0xa5c   : > { %3512 = vmatprep.subr.bf16.mxu1 %v3233_v47  ;;  %5365 = vmatprep.mubr.msk.bf16.mxu0 %vm3398_vm11, %v9065_v11 }
 0xa5d   : > { %v3241_v29 = vpop.permute.xlu1 %3240 }
 0xa5e   : > { %v3322_v56 = vsel %vm462_vm3, %v8987_v6, %v3241_v29  ;;  %v3265_v6 = vpop.permute.xlu0 %3264 }
 0xa5f   : > { %3513 = vmatpush1.bf16.msra.mxu1 %v3319_v22  ;;  %v3331_v23 = vsel %vm462_vm3, %v8947_v62, %v3265_v6 }
 0xa60   : > { %3514 = vmatprep.subr.bf16.mxu1 %v3241_v29 }
 0xa61   : > { %v3257_v33 = vpop.permute.xlu1 %3256 }
 0xa62   : > { %v3328_v52 = vsel %vm462_vm3, %v8944_v32, %v3257_v33  ;;  %v6124_v32 = vld [vmem:[%s10054_s4 + $0x44] ss:$8 sps:$4 sm:$0xff]   ;;  %v3281_v8 = vpop.permute.xlu0 %3280 }
 0xa63   : > { %3515 = vmatpush1.bf16.msra.mxu1 %v3322_v56  ;;  %3460 = vmatmul.mubr.bf16.gmra.mrb[76].mxu0 %v6117_v51  ;;  %v3337_v62 = vsel %vm462_vm3, %v8955_v10, %v3281_v8 }
 0xa64   : > { %3516 = vmatprep.subr.bf16.mxu1 %v3249_v43  ;;  %5366 = vmatprep.mubr.msk.bf16.mxu0 %vm3398_vm11, %v6118_v27 }
 0xa65   : > { %v3273_v28 = vpop.permute.xlu1 %3272 }
 0xa66   : > { %v3334_v45 = vsel %vm462_vm3, %v8951_v9, %v3273_v28  ;;  %v6129_v9 = vld [vmem:[%s10054_s4 + $0x50] ss:$8 sps:$4 sm:$0xff]  }
 0xa67   : > { %3517 = vmatpush1.bf16.msra.mxu1 %v3325_v48 }
 0xa68   : > { %3518 = vmatprep.subr.bf16.mxu1 %v3257_v33 }
 0xa6b   : > { %3519 = vmatpush1.bf16.msra.mxu1 %v3328_v52  ;;  %3470 = vmatmul.mubr.bf16.gmra.mrb[80].mxu0 %v6120_v17 }
 0xa6c   : > { %3520 = vmatprep.subr.bf16.mxu1 %v3265_v6  ;;  %5367 = vmatprep.mubr.msk.bf16.mxu0 %vm3398_vm11, %v6121_v31 }
 0xa6f   : > { %3521 = vmatpush1.bf16.msra.mxu1 %v3331_v23 }
 0xa70   : > { %3522 = vmatprep.subr.bf16.mxu1 %v3273_v28 }
 0xa73   : > { %3523 = vmatpush1.bf16.msra.mxu1 %v3334_v45  ;;  %3480 = vmatmul.mubr.bf16.gmra.mrb[84].mxu0 %v6123_v12 }
 0xa74   : > { %3524 = vmatprep.subr.bf16.mxu1 %v3281_v8  ;;  %5368 = vmatprep.mubr.msk.bf16.mxu0 %vm3398_vm11, %v6124_v32 }
 0xa77   : > { %3525 = vmatpush1.bf16.msra.mxu1 %v3337_v62 }
 0xa7b   : > { %3490 = vmatmul.mubr.bf16.gmra.mrb[88].mxu0 %v6126_v21 }
 0xa7c   : > { %5369 = vmatprep.mubr.msk.bf16.mxu0 %vm3398_vm11, %v6127_v7 }
 0xa83   : > { %3500 = vmatmul.mubr.bf16.gmra.mrb[92].mxu0 %v6129_v9 }
 0xa99   : > { %v3289_v46 = vpop.permute.xlu1 %3288 }
 0xa9a   : > { %3526 = vmatprep.subr.bf16.mxu1 %v3289_v46  ;;  %v3340_v10 = vsel %vm462_vm3, %v9020_v44, %v3289_v46 }
 0xa9b   : > { %3527 = vmatpush1.bf16.msra.mxu1 %v3340_v10 }
 0xaa1   : > { %v3297_v55 = vpop.permute.xlu0 %3296 }
 0xaa2   : > { %3528 = vmatprep.subr.bf16.mxu1 %v3297_v55  ;;  %v3343_v19 = vsel %vm462_vm3, %v9035_v38, %v3297_v55 }
 0xaa3   : > { %3529 = vmatpush1.bf16.msra.mxu1 %v3343_v19 }
 0xaa9   : > { %v3305_v57 = vpop.permute.xlu1 %3304 }
 0xaaa   : > { %3530 = vmatprep.subr.bf16.mxu1 %v3305_v57  ;;  %v3346_v60 = vsel %vm462_vm3, %v9046_v53, %v3305_v57 }
 0xaab   : > { %3531 = vmatpush1.bf16.msra.mxu1 %v3346_v60 }
 0xab1   : > { %v3313_v30 = vpop.permute.xlu0 %3312 }
 0xab2   : > { %3532 = vmatprep.subr.bf16.mxu1 %v3313_v30  ;;  %v3349_v50 = vsel %vm462_vm3, %v9052_v54, %v3313_v30 }
 0xab3   : > { %3533 = vmatpush1.bf16.msra.mxu1 %v3349_v50 }
 0xab6   : > { %3543 = vmatmul.mubr.bf16.vlgmr.msra.gmra.mrb[72].mxu1 %v9060_v1 }
 0xab7   : > { %5371 = vmatprep.mubr.msk.bf16.mxu1 %vm3398_vm11, %v9065_v11 }
 0xabe   : > { %3553 = vmatmul.mubr.bf16.gmra.mrb[76].mxu1 %v6117_v51 }
 0xabf   : > { %5372 = vmatprep.mubr.msk.bf16.mxu1 %vm3398_vm11, %v6118_v27 }
 0xac6   : > { %3563 = vmatmul.mubr.bf16.gmra.mrb[80].mxu1 %v6120_v17 }
 0xac7   : > { %5373 = vmatprep.mubr.msk.bf16.mxu1 %vm3398_vm11, %v6121_v31 }
 0xace   : > { %3573 = vmatmul.mubr.bf16.gmra.mrb[84].mxu1 %v6123_v12 }
 0xacf   : > { %5374 = vmatprep.mubr.msk.bf16.mxu1 %vm3398_vm11, %v6124_v32 }
 0xad6   : > { %3583 = vmatmul.mubr.bf16.gmra.mrb[88].mxu1 %v6126_v21 }
 0xad7   : > { %5375 = vmatprep.mubr.msk.bf16.mxu1 %vm3398_vm11, %v6127_v7 }
 0xade   : > { %3593 = vmatmul.mubr.bf16.gmra.mrb[92].mxu1 %v6129_v9 }
 0xb2e   : > { %v3451_v39 = vpop.f32.mrb[72].mxu0 }
 0xb2f   : > { %3603 = vrot.lane.b32.xlu1 %v3451_v39, %s6349_s10  ;;  %v3453_v3 = vpop.f32.mrb[73].mxu0 }
 0xb30   : > { %v3455_v35 = vpop.f32.mrb[74].mxu0 }
 0xb31   : > { %3606 = vrot.lane.b32.xlu0 %v3455_v35, %s6349_s10  ;;  %v3457_v14 = vpop.f32.mrb[75].mxu0 }
 0xb36   : > { %v3461_v61 = vpop.f32.mrb[76].mxu0 }
 0xb37   : > { %v9134_v44 = vpop.f32.mrb[77].mxu0 }
 0xb38   : > { %v3465_v20 = vpop.f32.mrb[78].mxu0 }
 0xb39   : > { %v9136_v16 = vpop.f32.mrb[79].mxu0 }
 0xb3e   : > { %v3471_v36 = vpop.f32.mrb[80].mxu0 }
 0xb3f   : > { %v3473_v40 = vpop.f32.mrb[81].mxu0 }
 0xb40   : > { %v3475_v41 = vpop.f32.mrb[82].mxu0 }
 0xb41   : > { %v3477_v38 = vpop.f32.mrb[83].mxu0 }
 0xb46   : > { %v9138_v49 = vpop.f32.mrb[84].mxu0 }
 0xb47   : > { %v3483_v0 = vpop.f32.mrb[85].mxu0 }
 0xb48   : > { %v9140_v34 = vpop.f32.mrb[86].mxu0 }
 0xb49   : > { %v3487_v26 = vpop.f32.mrb[87].mxu0 }
 0xb4e   : > { %v3491_v13 = vpop.f32.mrb[88].mxu0 }
 0xb4f   : > { %v3493_v53 = vpop.f32.mrb[89].mxu0 }
 0xb50   : > { %v3495_v2 = vpop.f32.mrb[90].mxu0 }
 0xb51   : > { %v3497_v15 = vpop.f32.mrb[91].mxu0 }
 0xb56   : > { %v9142_v63 = vpop.f32.mrb[92].mxu0 }
 0xb57   : > { %v3503_v24 = vpop.f32.mrb[93].mxu0 }
 0xb58   : > { %v9144_v18 = vpop.f32.mrb[94].mxu0 }
 0xb59   : > { %v3507_v58 = vpop.f32.mrb[95].mxu0 }
 0xb89   : > { %v3544_v54 = vpop.f32.mrb[72].mxu1 }
 0xb8a   : > { %3623 = vrot.lane.b32.xlu1 %v3544_v54, %s6349_s10  ;;  %v9147_v59 = vpop.f32.mrb[73].mxu1 }
 0xb8b   : > { %v3548_v4 = vpop.f32.mrb[74].mxu1 }
 0xb8c   : > { %3625 = vrot.lane.b32.xlu0 %v3548_v4, %s6349_s10  ;;  %v3550_v1 = vpop.f32.mrb[75].mxu1 }
 0xb8e   : > { %3615 = vrot.lane.b32.xlu1 %v3453_v3, %s6349_s10 }
 0xb90   : > { %3617 = vrot.lane.b32.xlu0 %v3457_v14, %s6349_s10 }
 0xb91   : > { %v3554_v11 = vpop.f32.mrb[76].mxu1 }
 0xb92   : > { %3609 = vrot.lane.b32.xlu1 %v3461_v61, %s6349_s10  ;;  %v9153_v42 = vpop.f32.mrb[77].mxu1 }
 0xb93   : > { %v3558_v5 = vpop.f32.mrb[78].mxu1 }
 0xb94   : > { %3612 = vrot.lane.b32.xlu0 %v3465_v20, %s6349_s10  ;;  %v9156_v47 = vpop.f32.mrb[79].mxu1 }
 0xb96   : > { %3667 = vrot.lane.b32.xlu1 %v3471_v36, %s6353_s29 }
 0xb98   : > { %3669 = vrot.lane.b32.xlu0 %v3473_v40, %s6353_s29 }
 0xb99   : > { %v3564_v22 = vpop.f32.mrb[80].mxu1 }
 0xb9a   : > { %3671 = vrot.lane.b32.xlu1 %v3564_v22, %s6353_s29  ;;  %v3566_v29 = vpop.f32.mrb[81].mxu1 }
 0xb9b   : > { %v3568_v51 = vpop.f32.mrb[82].mxu1 }
 0xb9c   : > { %3673 = vrot.lane.b32.xlu0 %v3566_v29, %s6353_s29  ;;  %v3570_v27 = vpop.f32.mrb[83].mxu1 }
 0xb9e   : > { %3675 = vrot.lane.b32.xlu1 %v3475_v41, %s6353_s29 }
 0xba0   : > { %3677 = vrot.lane.b32.xlu0 %v3477_v38, %s6353_s29 }
 0xba1   : > { %v3574_v56 = vpop.f32.mrb[84].mxu1  ;;  %v3604_v62 = vpop.permute.xlu1 %3603 }
 0xba2   : > { %3679 = vrot.lane.b32.xlu1 %v3568_v51, %s6353_s29  ;;  %v3576_v43 = vpop.f32.mrb[85].mxu1  ;;  %v3605_v21 = vsel %vm338_vm1, %v3604_v62, %v9147_v59 }
 0xba3   : > { %v3578_v48 = vpop.f32.mrb[86].mxu1  ;;  %v3607_v45 = vpop.permute.xlu0 %3606 }
 0xba4   : > { %3681 = vrot.lane.b32.xlu0 %v3570_v27, %s6353_s29  ;;  %v3580_v33 = vpop.f32.mrb[87].mxu1  ;;  %v3608_v8 = vsel %vm338_vm1, %v3607_v45, %v3550_v1 }
 0xba6   : > { %3743 = vrot.lane.b32.xlu1 %v3491_v13, %s6349_s10 }
 0xba8   : > { %3773 = vrot.lane.b32.xlu0 %v3493_v53, %s6354_s30 }
 0xba9   : > { %v3584_v17 = vpop.f32.mrb[88].mxu1 }
 0xbaa   : > { %3771 = vrot.lane.b32.xlu1 %v3491_v13, %s6354_s30  ;;  %v3586_v31 = vpop.f32.mrb[89].mxu1 }
 0xbab   : > { %v3588_v52 = vpop.f32.mrb[90].mxu1 }
 0xbac   : > { %3745 = vrot.lane.b32.xlu0 %v3495_v2, %s6349_s10  ;;  %v9170_v6 = vpop.f32.mrb[91].mxu1 }
 0xbae   : > { %3747 = vrot.lane.b32.xlu1 %v9142_v63, %s6349_s10 }
 0xbb0   : > { %3749 = vrot.lane.b32.xlu0 %v9144_v18, %s6349_s10 }
 0xbb1   : > { %v3594_v23 = vpop.f32.mrb[92].mxu1 }
 0xbb2   : > { %3779 = vrot.lane.b32.xlu1 %v3495_v2, %s6354_s30  ;;  %v9177_v28 = vpop.f32.mrb[93].mxu1 }
 0xbb3   : > { %v3598_v12 = vpop.f32.mrb[94].mxu1 }
 0xbb4   : > { %3781 = vrot.lane.b32.xlu0 %v3497_v15, %s6354_s30  ;;  %v9180_v32 = vpop.f32.mrb[95].mxu1 }
 0xbb6   : > { %3775 = vrot.lane.b32.xlu1 %v3584_v17, %s6354_s30 }
 0xbb8   : > { %3621 = vrot.lane.b32.xlu0 %v9136_v16, %s6349_s10 }
 0xbba   : > { %3783 = vrot.lane.b32.xlu1 %v3588_v52, %s6354_s30 }
 0xbbc   : > { %3685 = vrot.lane.b32.xlu0 %v3483_v0, %s6353_s29 }
 0xbbe   : > { %3619 = vrot.lane.b32.xlu1 %v9134_v44, %s6349_s10 }
 0xbc0   : > { %3693 = vrot.lane.b32.xlu0 %v3487_v26, %s6353_s29 }
 0xbc2   : > { %3683 = vrot.lane.b32.xlu1 %v9138_v49, %s6353_s29 }
 0xbc4   : > { %3629 = vrot.lane.b32.xlu0 %v3558_v5, %s6349_s10 }
 0xbc6   : > { %3691 = vrot.lane.b32.xlu1 %v9140_v34, %s6353_s29 }
 0xbc8   : > { %3689 = vrot.lane.b32.xlu0 %v3576_v43, %s6353_s29 }
 0xbca   : > { %3627 = vrot.lane.b32.xlu1 %v3554_v11, %s6349_s10 }
 0xbcc   : > { %3697 = vrot.lane.b32.xlu0 %v3580_v33, %s6353_s29 }
 0xbce   : > { %3687 = vrot.lane.b32.xlu1 %v3574_v56, %s6353_s29 }
 0xbd0   : > { %3789 = vrot.lane.b32.xlu0 %v3503_v24, %s6354_s30 }
 0xbd2   : > { %3695 = vrot.lane.b32.xlu1 %v3578_v48, %s6353_s29 }
 0xbd4   : > { %3797 = vrot.lane.b32.xlu0 %v3507_v58, %s6354_s30 }
 0xbd6   : > { %3787 = vrot.lane.b32.xlu1 %v9142_v63, %s6354_s30 }
 0xbd8   : > { %3633 = vrot.lane.b32.xlu0 %v3608_v8, %s6349_s10 }
 0xbda   : > { %3791 = vrot.lane.b32.xlu1 %v3594_v23, %s6354_s30 }
 0xbde   : > { %3795 = vrot.lane.b32.xlu1 %v9144_v18, %s6354_s30 }
 0xbe2   : > { %3631 = vrot.lane.b32.xlu1 %v3605_v21, %s6349_s10 }
 0xbfc   : > { %v9212_v7 = vpop.permute.xlu1 %3623 }
 0xbfe   : > { %v9214_v9 = vpop.permute.xlu0 %3625 }
 0xc00   : > { %v9216_v46 = vpop.permute.xlu1 %3615 }
 0xc01   : > { %v3639_v41 = vsel %vm338_vm1, %v9216_v46, %v3604_v62 }
 0xc02   : > { %v9218_v10 = vpop.permute.xlu0 %3617 }
 0xc03   : > { %v3640_v1 = vsel %vm338_vm1, %v9218_v10, %v3607_v45 }
 0xc04   : > { %v9220_v55 = vpop.permute.xlu1 %3609 }
 0xc05   : > { %v9225_v19 = vsel %vm338_vm1, %v9220_v55, %v9153_v42 }
 0xc06   : > { %v9227_v57 = vpop.permute.xlu0 %3612  ;;  %3635 = vrot.lane.b32.xlu1 %v9225_v19, %s6349_s10 }
 0xc07   : > { %v9234_v60 = vsel %vm338_vm1, %v9227_v57, %v9156_v47 }
 0xc08   : > { %3637 = vrot.lane.b32.xlu0 %v9234_v60, %s6349_s10  ;;  %v3668_v30 = vpop.permute.xlu1 %3667 }
 0xc09   : > { %v3727_v38 = vadd.f32 %v3668_v30, %v3605_v21  ;;  %v10252_v21 = vld [vmem:[#allocation4_spill] sm:$0xff] }
 0xc0a   : > { %v9238_v50 = vpop.permute.xlu0 %3669  ;;  %3799 = vrot.lane.b32.xlu1 %v3598_v12, %s6354_s30 }
 0xc0b   : > { %v3699_v16 = vsel %vm787_vm6, %v3668_v30, %v9238_v50 }
 0xc0c   : > { %v9241_v39 = vpop.permute.xlu1 %3671  ;;  %v3728_v49 = vadd.f32 %v3699_v16, %v3639_v41 }
 0xc0e   : > { %v9243_v3 = vpop.permute.xlu0 %3673 }
 0xc10   : > { %v3676_v35 = vpop.permute.xlu1 %3675 }
 0xc11   : > { %v3731_v58 = vadd.f32 %v3676_v35, %v3608_v8  ;;  %v10251_v8 = vld [vmem:[#allocation3_spill] sm:$0xff] }
 0xc12   : > { %v9245_v14 = vpop.permute.xlu0 %3677 }
 0xc13   : > { %v3702_v54 = vsel %vm787_vm6, %v3676_v35, %v9245_v14 }
 0xc14   : > { %v9247_v61 = vpop.permute.xlu1 %3679  ;;  %v3732_v42 = vadd.f32 %v3702_v54, %v3640_v1 }
 0xc16   : > { %v9249_v44 = vpop.permute.xlu0 %3681 }
 0xc18   : > { %v3744_v20 = vpop.permute.xlu1 %3743 }
 0xc19   : > { %v3751_v36 = vsel %vm338_vm1, %v3744_v20, %v3586_v31 }
 0xc1a   : > { %v9254_v40 = vpop.permute.xlu0 %3773  ;;  %3777 = vrot.lane.b32.xlu0 %v3751_v36, %s6354_s30 }
 0xc1c   : > { %v3772_v0 = vpop.permute.xlu1 %3771 }
 0xc1d   : > { %v3803_v34 = vsel %vm892_vm7, %v3772_v0, %v9254_v40  ;;  %v3831_v26 = vadd.f32 %v3772_v0, %v3727_v38 }
 0xc1e   : > { %v3832_v13 = vadd.f32 %v3803_v34, %v3728_v49  ;;  %v3746_v53 = vpop.permute.xlu0 %3745 }
 0xc1f   : > { %v3863_v2 = vmul.f32 0.70710677, %v3831_v26  ;;  %v3752_v15 = vsel %vm338_vm1, %v3746_v53, %v9170_v6  ;;  %v3847_v17 = vmul.f32 0.5, %v3831_v26 }
 0xc20   : > { %v3864_v63 = vmul.f32 0.70710677, %v3832_v13  ;;  %3785 = vrot.lane.b32.xlu0 %v3752_v15, %s6354_s30  ;;  %v3748_v24 = vpop.permute.xlu1 %3747  ;;  %v3848_v6 = vmul.f32 0.5, %v3832_v13 }
 0xc21   : > { %6244 = verf.f32 %v3863_v2  ;;  %v3753_v59 = vsel %vm338_vm1, %v3748_v24, %v9177_v28 }
 0xc22   : > { %6246 = verf.f32 %v3864_v63  ;;  %v3750_v18 = vpop.permute.xlu0 %3749 }
 0xc23   : > { %v3754_v47 = vsel %vm338_vm1, %v3750_v18, %v9180_v32 }
 0xc24   : > { %3793 = vrot.lane.b32.xlu0 %v3753_v59, %s6354_s30  ;;  %v3780_v4 = vpop.permute.xlu1 %3779 }
 0xc25   : > { %v3835_v11 = vadd.f32 %v3780_v4, %v3731_v58 }
 0xc26   : > { %v9271_v5 = vpop.permute.xlu0 %3781 }
 0xc27   : > { %v3867_v22 = vmul.f32 0.70710677, %v3835_v11  ;;  %v3806_v29 = vsel %vm892_vm7, %v3780_v4, %v9271_v5  ;;  %v3851_v38 = vmul.f32 0.5, %v3835_v11 }
 0xc28   : > { %v3836_v51 = vadd.f32 %v3806_v29, %v3732_v42  ;;  %3801 = vrot.lane.b32.xlu0 %v3754_v47, %s6354_s30  ;;  %v9278_v27 = vpop.permute.xlu1 %3775 }
 0xc29   : > { %6248 = verf.f32 %v3867_v22 }
 0xc2a   : > { %v3868_v56 = vmul.f32 0.70710677, %v3836_v51  ;;  %v9280_v43 = vpop.permute.xlu0 %3621  ;;  %v3852_v26 = vmul.f32 0.5, %v3836_v51 }
 0xc2b   : > { %v6245_v48 = vpop.eup %6244 }
 0xc2c   : > { %v6247_v33 = vpop.eup %6246  ;;  %v3895_v31 = vadd.f32 1.0, %v6245_v48  ;;  %6250 = verf.f32 %v3868_v56  ;;  %v9282_v52 = vpop.permute.xlu1 %3783 }
 0xc2d   : > { %v3896_v23 = vadd.f32 1.0, %v6247_v33 }
 0xc2e   : > { %v3911_v28 = vmul.f32 %v3895_v31, %v3847_v17  ;;  %v9284_v12 = vpop.permute.xlu0 %3685 }
 0xc2f   : > { %v3912_v32 = vmul.f32 %v3896_v23, %v3848_v6 }
 0xc30   : > { %v9286_v45 = vpop.permute.xlu1 %3619  ;;  %v3927_v62 = vmul.f32 %v3911_v28, %v10251_v8 }
 0xc31   : > { %v3928_v30 = vmul.f32 %v3912_v32, %v10252_v21  ;;  %v3641_v11 = vsel %vm338_vm1, %v9286_v45, %v9220_v55  ;;  %v3642_v55 = vsel %vm338_vm1, %v9280_v43, %v9227_v57 }
 0xc32   : > { %v9290_v35 = vpop.permute.xlu0 %3693 }
 0xc33   : > { %v6249_v20 = vpop.eup %6248  ;;  %v9292_v16 = vpack.i.bf16 %v3928_v30, %v3927_v62 }
 0xc34   : > { %v3899_v36 = vadd.f32 1.0, %v6249_v20  ;;  %v3684_v41 = vpop.permute.xlu1 %3683 }
 0xc35   : > { %5935 = vrot.lane.b32.xlu1 %v9292_v16, %s6355_s13  ;;  %v3705_v1 = vsel %vm787_vm6, %v3684_v41, %v9284_v12  ;;  %v3735_v42 = vadd.f32 %v3684_v41, %v9225_v19 }
 0xc36   : > { %v6251_v49 = vpop.eup %6250  ;;  %v9296_v0 = vpop.permute.xlu0 %3629  ;;  %v3915_v34 = vmul.f32 %v3899_v36, %v3851_v38  ;;  %v3736_v47 = vadd.f32 %v3705_v1, %v3641_v11 }
 0xc37   : > { %v3900_v13 = vadd.f32 1.0, %v6251_v49 }
 0xc38   : > { %v3692_v53 = vpop.permute.xlu1 %3691  ;;  %v9299_v15 = vmul.f32 %v3915_v34, %v10251_v8 }
 0xc39   : > { %v3916_v2 = vmul.f32 %v3900_v13, %v3852_v26  ;;  %v3708_v6 = vsel %vm787_vm6, %v3692_v53, %v9290_v35  ;;  %v3739_v19 = vadd.f32 %v3692_v53, %v9234_v60 }
 0xc3a   : > { %v9304_v24 = vpop.permute.xlu0 %3689  ;;  %v3740_v23 = vadd.f32 %v3708_v6, %v3642_v55 }
 0xc3b   : > { %v9302_v63 = vmul.f32 %v3916_v2, %v10252_v21 }
 0xc3c   : > { %v9306_v18 = vpop.permute.xlu1 %3627 }
 0xc3d   : > { %v5939_v58 = vpack.i.bf16 %v9302_v63, %v9299_v15 }
 0xc3e   : > { %v9313_v59 = vpop.permute.xlu0 %3697 }
 0xc3f   : > { %5940 = vrot.lane.b32.xlu0 %v5939_v58, %s6355_s13 }
 0xc40   : > { %v9311_v54 = vpop.permute.xlu1 %3687 }
 0xc42   : > { %v9323_v22 = vpop.permute.xlu0 %3789 }
 0xc44   : > { %v9315_v4 = vpop.permute.xlu1 %3695 }
 0xc46   : > { %v3798_v28 = vpop.permute.xlu0 %3797 }
 0xc48   : > { %v3788_v29 = vpop.permute.xlu1 %3787 }
 0xc49   : > { %v3809_v51 = vsel %vm892_vm7, %v3788_v29, %v9323_v22  ;;  %v3839_v56 = vadd.f32 %v3788_v29, %v3735_v42 }
 0xc4a   : > { %v3840_v48 = vadd.f32 %v3809_v51, %v3736_v47 }
 0xc4b   : > { %v3871_v33 = vmul.f32 0.70710677, %v3839_v56  ;;  %v3855_v34 = vmul.f32 0.5, %v3839_v56 }
 0xc4c   : > { %v3872_v17 = vmul.f32 0.70710677, %v3840_v48  ;;  %v9327_v31 = vpop.permute.xlu1 %3791  ;;  %v3856_v13 = vmul.f32 0.5, %v3840_v48 }
 0xc4d   : > { %6252 = verf.f32 %v3871_v33 }
 0xc4e   : > { %6254 = verf.f32 %v3872_v17 }
 0xc50   : > { %v3796_v32 = vpop.permute.xlu1 %3795 }
 0xc51   : > { %v3812_v62 = vsel %vm892_vm7, %v3796_v32, %v3798_v28  ;;  %v3843_v30 = vadd.f32 %v3796_v32, %v3739_v19  ;;  %v3709_v32 = vsel %vm787_vm6, %v9290_v35, %v9315_v4  ;;  %v3643_v35 = vsel %vm338_vm1, %v9212_v7, %v9216_v46 }
 0xc52   : > { %v3844_v20 = vadd.f32 %v3812_v62, %v3740_v23  ;;  %v3646_v62 = vsel %vm338_vm1, %v9296_v0, %v9280_v43  ;;  %v3804_v43 = vsel %vm892_vm7, %v9254_v40, %v9278_v27  ;;  %v3807_v46 = vsel %vm892_vm7, %v9271_v5, %v9282_v52 }
 0xc53   : > { %v3875_v36 = vmul.f32 0.70710677, %v3843_v30  ;;  %v3859_v47 = vmul.f32 0.5, %v3843_v30  ;;  %v3810_v5 = vsel %vm892_vm7, %v9323_v22, %v9327_v31  ;;  %v3704_v22 = vsel %vm787_vm6, %v9247_v61, %v9249_v44 }
 0xc54   : > { %v3876_v41 = vmul.f32 0.70710677, %v3844_v20  ;;  %v3860_v51 = vmul.f32 0.5, %v3844_v20  ;;  %v3632_v19 = vpop.permute.xlu1 %3631 }
 0xc55   : > { %6256 = verf.f32 %v3875_v36  ;;  %v3700_v36 = vsel %vm787_vm6, %v9238_v50, %v9241_v39  ;;  %v3644_v50 = vsel %vm338_vm1, %v9214_v9, %v9218_v10  ;;  %v3645_v10 = vsel %vm338_vm1, %v9306_v18, %v9286_v45 }
 0xc56   : > { %6258 = verf.f32 %v3876_v41 }
 0xc57   : > { %v6253_v38 = vpop.eup %6252 }
 0xc58   : > { %v6255_v49 = vpop.eup %6254  ;;  %v3903_v26 = vadd.f32 1.0, %v6253_v38  ;;  %v3729_v38 = vadd.f32 %v3700_v36, %v3643_v35 }
 0xc59   : > { %v3904_v2 = vadd.f32 1.0, %v6255_v49 }
 0xc5a   : > { %v3919_v57 = vmul.f32 %v3903_v26, %v3855_v34  ;;  %v3833_v49 = vadd.f32 %v3804_v43, %v3729_v38  ;;  %v3634_v34 = vpop.permute.xlu0 %3633 }
 0xc5b   : > { %v3920_v58 = vmul.f32 %v3904_v2, %v3856_v13  ;;  %v3648_v45 = vsel %vm338_vm1, %v3634_v34, %v9214_v9 }
 0xc5c   : > { %v3935_v60 = vmul.f32 %v3919_v57, %v10251_v8  ;;  %v3865_v13 = vmul.f32 0.70710677, %v3833_v49  ;;  %v3706_v57 = vsel %vm787_vm6, %v9284_v12, %v9311_v54  ;;  %v3849_v38 = vmul.f32 0.5, %v3833_v49 }
 0xc5d   : > { %v3936_v53 = vmul.f32 %v3920_v58, %v10252_v21  ;;  %v3701_v58 = vsel %vm787_vm6, %v9241_v39, %v9243_v3 }
 0xc5f   : > { %v6257_v1 = vpop.eup %6256  ;;  %v9338_v11 = vpack.i.bf16 %v3936_v53, %v3935_v60  ;;  %v3737_v53 = vadd.f32 %v3706_v57, %v3645_v10 }
 0xc60   : > { %v6259_v42 = vpop.eup %6258  ;;  %v3907_v29 = vadd.f32 1.0, %v6257_v1 }
 0xc61   : > { %v3908_v33 = vadd.f32 1.0, %v6259_v42  ;;  %5945 = vrot.lane.b32.xlu1 %v9338_v11, %s6355_s13  ;;  %v3841_v39 = vadd.f32 %v3810_v5, %v3737_v53 }
 0xc62   : > { %v3923_v56 = vmul.f32 %v3907_v29, %v3859_v47 }
 0xc63   : > { %v3924_v48 = vmul.f32 %v3908_v33, %v3860_v51  ;;  %v3857_v53 = vmul.f32 0.5, %v3841_v39 }
 0xc64   : > { %v9343_v17 = vmul.f32 %v3923_v56, %v10251_v8  ;;  %v3741_v8 = vadd.f32 %v3709_v32, %v3646_v62 }
 0xc65   : > { %v9346_v6 = vmul.f32 %v3924_v48, %v10252_v21  ;;  %v3734_v48 = vadd.f32 %v3704_v22, %v3648_v45 }
 0xc67   : > { %v5949_v55 = vpack.i.bf16 %v9346_v6, %v9343_v17 }
 0xc69   : > { %5950 = vrot.lane.b32.xlu0 %v5949_v55, %s6355_s13  ;;  %v3873_v55 = vmul.f32 0.70710677, %v3841_v39 }
 0xc78   : > { %v3636_v23 = vpop.permute.xlu1 %3635 }
 0xc7a   : > { %v3638_v2 = vpop.permute.xlu0 %3637 }
 0xc7b   : > { %v3650_v36 = vsel %vm338_vm1, %v3638_v2, %v9296_v0 }
 0xc7c   : > { %v9357_v30 = vpop.permute.xlu1 %3799 }
 0xc7d   : > { %v3813_v21 = vsel %vm892_vm7, %v3798_v28, %v9357_v30  ;;  %v3703_v28 = vsel %vm787_vm6, %v9245_v14, %v9247_v61  ;;  %v3647_v14 = vsel %vm338_vm1, %v3632_v19, %v9212_v7  ;;  %v3707_v61 = vsel %vm787_vm6, %v9311_v54, %v9304_v24 }
 0xc7e   : > { %v3845_v20 = vadd.f32 %v3813_v21, %v3741_v8  ;;  %v3733_v26 = vadd.f32 %v3703_v28, %v3644_v50  ;;  %v3730_v1 = vadd.f32 %v3701_v58, %v3647_v14 }
 0xc80   : > { %v3877_v41 = vmul.f32 0.70710677, %v3845_v20  ;;  %v3837_v40 = vadd.f32 %v3807_v46, %v3733_v26  ;;  %v3861_v47 = vmul.f32 0.5, %v3845_v20 }
 0xc82   : > { %6260 = verf.f32 %v3877_v41  ;;  %v3869_v42 = vmul.f32 0.70710677, %v3837_v40  ;;  %v3710_v41 = vsel %vm787_vm6, %v9315_v4, %v9313_v59  ;;  %v3853_v14 = vmul.f32 0.5, %v3837_v40 }
 0xc83   : > { %6262 = verf.f32 %v3865_v13  ;;  %v3742_v35 = vadd.f32 %v3710_v41, %v3650_v36 }
 0xc84   : > { %6264 = verf.f32 %v3869_v42 }
 0xc8c   : > { %v6261_v60 = vpop.eup %6260  ;;  %v3778_v12 = vpop.permute.xlu0 %3777 }
 0xc8d   : > { %v3909_v7 = vadd.f32 1.0, %v6261_v60  ;;  %v3805_v29 = vsel %vm892_vm7, %v9278_v27, %v3778_v12  ;;  %v3649_v27 = vsel %vm338_vm1, %v3636_v23, %v9306_v18  ;;  %v6263_v44 = vpop.eup %6262 }
 0xc8e   : > { %v3834_v3 = vadd.f32 %v3805_v29, %v3730_v1  ;;  %v3738_v8 = vadd.f32 %v3707_v61, %v3649_v27  ;;  %v3897_v23 = vadd.f32 1.0, %v6263_v44  ;;  %v6265_v43 = vpop.eup %6264 }
 0xc8f   : > { %v3925_v51 = vmul.f32 %v3909_v7, %v3861_v47  ;;  %v3901_v26 = vadd.f32 1.0, %v6265_v43 }
 0xc90   : > { %v3866_v33 = vmul.f32 0.70710677, %v3834_v3  ;;  %v3913_v50 = vmul.f32 %v3897_v23, %v3849_v38 }
 0xc91   : > { %v9401_v56 = vmul.f32 %v3925_v51, %v10198_v37 }
 0xc92   : > { %6266 = verf.f32 %v3866_v33  ;;  %v3786_v19 = vpop.permute.xlu0 %3785  ;;  %v9425_v4 = vmul.f32 %v3913_v50, %v10198_v37 }
 0xc93   : > { %v3808_v9 = vsel %vm892_vm7, %v9282_v52, %v3786_v19  ;;  %v6029_v32 = vpack.i.bf16 %v9401_v56, %v9346_v6  ;;  %6268 = verf.f32 %v3873_v55 }
 0xc94   : > { %v3838_v62 = vadd.f32 %v3808_v9, %v3734_v48 }
 0xc96   : > { %v3870_v21 = vmul.f32 0.70710677, %v3838_v62  ;;  %v3794_v20 = vpop.permute.xlu0 %3793  ;;  %v3854_v10 = vmul.f32 0.5, %v3838_v62 }
 0xc97   : > { %v3811_v18 = vsel %vm892_vm7, %v9327_v31, %v3794_v20  ;;  %v3850_v31 = vmul.f32 0.5, %v3834_v3 }
 0xc98   : > { %6270 = verf.f32 %v3870_v21  ;;  %v3842_v52 = vadd.f32 %v3811_v18, %v3738_v8 }
 0xc9a   : > { %v3874_v24 = vmul.f32 0.70710677, %v3842_v52  ;;  %v3802_v54 = vpop.permute.xlu0 %3801  ;;  %v3858_v7 = vmul.f32 0.5, %v3842_v52 }
 0xc9b   : > { %v3814_v28 = vsel %vm892_vm7, %v9357_v30, %v3802_v54  ;;  %v3917_v30 = vmul.f32 %v3901_v26, %v3853_v14 }
 0xc9c   : > { %v6267_v34 = vpop.eup %6266  ;;  %6272 = verf.f32 %v3874_v24  ;;  %v3846_v0 = vadd.f32 %v3814_v28, %v3742_v35 }
 0xc9d   : > { %v3898_v46 = vadd.f32 1.0, %v6267_v34  ;;  %v6269_v57 = vpop.eup %6268  ;;  %v9431_v12 = vmul.f32 %v3917_v30, %v10198_v37 }
 0xc9e   : > { %v3878_v13 = vmul.f32 0.70710677, %v3846_v0  ;;  %v3905_v58 = vadd.f32 1.0, %v6269_v57  ;;  %v3862_v22 = vmul.f32 0.5, %v3846_v0 }
 0xc9f   : > { %v3914_v2 = vmul.f32 %v3898_v46, %v3850_v31 }
 0xca0   : > { %6274 = verf.f32 %v3878_v13  ;;  %v3921_v42 = vmul.f32 %v3905_v58, %v3857_v53 }
 0xca1   : > { %v9422_v59 = vmul.f32 %v3914_v2, %v10200_v25 }
 0xca2   : > { %v6271_v49 = vpop.eup %6270  ;;  %v9445_v55 = vmul.f32 %v3921_v42, %v10198_v37 }
 0xca3   : > { %v3902_v5 = vadd.f32 1.0, %v6271_v49  ;;  %v5954_v60 = vpack.i.bf16 %v9422_v59, %v9425_v4 }
 0xca5   : > { %v3918_v1 = vmul.f32 %v3902_v5, %v3854_v10  ;;  %5955 = vrot.lane.b32.xlu1 %v5954_v60, %s6355_s13 }
 0xca6   : > { %v6273_v40 = vpop.eup %6272 }
 0xca7   : > { %v9434_v47 = vmul.f32 %v3918_v1, %v10200_v25  ;;  %v3906_v29 = vadd.f32 1.0, %v6273_v40  ;;  %v5936_v27 = vpop.permute.xlu1 %5935 }
 0xca8   : > { %v5938_v61 = vunpack.i.h.bf16 %v5936_v27  ;;  %v5937_v44 = vunpack.i.l.bf16 %v5936_v27 }
 0xca9   : > { %v3922_v3 = vmul.f32 %v3906_v29, %v3858_v7  ;;  %v5959_v45 = vpack.i.bf16 %v9434_v47, %v9431_v12  ;;  %v6074_v39 = vpack.i.bf16 %v9434_v47, %v9422_v59 }
 0xcaa   : > { %v6275_v51 = vpop.eup %6274  ;;  %v3991_v18 = vsel %vm1113_vm8, %v5937_v44, %v5938_v61 }
 0xcab   : > { %v9441_v33 = vmul.f32 %v3922_v3, %v10200_v25  ;;  %v3910_v48 = vadd.f32 1.0, %v6275_v51  ;;  %5960 = vrot.lane.b32.xlu0 %v5959_v45, %s6355_s13 }
 0xcad   : > { %v3926_v19 = vmul.f32 %v3910_v48, %v3862_v22  ;;  %v5964_v9 = vpack.i.bf16 %v9441_v33, %v9445_v55 }
 0xcaf   : > { %v9450_v62 = vmul.f32 %v3926_v19, %v10200_v25  ;;  %5965 = vrot.lane.b32.xlu1 %v5964_v9, %s6355_s13 }
 0xcb1   : > { %v5941_v8 = vpop.permute.xlu0 %5940  ;;  %v5969_v21 = vpack.i.bf16 %v9450_v62, %v9401_v56  ;;  %v6079_v37 = vpack.i.bf16 %v9450_v62, %v9441_v33 }
 0xcb2   : > { %v5943_v20 = vunpack.i.h.bf16 %v5941_v8  ;;  %v5942_v36 = vunpack.i.l.bf16 %v5941_v8  ;;  %v6014_v8 = vpack.i.bf16 %v9431_v12, %v9302_v63 }
 0xcb3   : > { %5970 = vrot.lane.b32.xlu0 %v5969_v21, %s6355_s13  ;;  %v6024_v21 = vpack.i.bf16 %v9343_v17, %v9445_v55 }
 0xcb4   : > { %v3994_v25 = vsel %vm1113_vm8, %v5942_v36, %v5943_v20 }
 0xcb5   : > { %v5974_v52 = vpack.i.bf16 %v3994_v25, %v3991_v18 }
 0xcb7   : > { %5975 = vrot.lane.b32.xlu1 %v5974_v52, %s6349_s10 }
 0xcd3   : > { %v5946_v23 = vpop.permute.xlu1 %5945 }
 0xcd4   : > { %v5948_v50 = vunpack.i.h.bf16 %v5946_v23  ;;  %v5947_v31 = vunpack.i.l.bf16 %v5946_v23 }
 0xcd6   : > { %v3997_v58 = vsel %vm1113_vm8, %v5947_v31, %v5948_v50 }
 0xcdb   : > { %v5951_v41 = vpop.permute.xlu0 %5950 }
 0xcdc   : > { %v5953_v38 = vunpack.i.h.bf16 %v5951_v41  ;;  %v5952_v28 = vunpack.i.l.bf16 %v5951_v41 }
 0xcde   : > { %v4000_v30 = vsel %vm1113_vm8, %v5952_v28, %v5953_v38 }
 0xcdf   : > { %v5984_v53 = vpack.i.bf16 %v4000_v30, %v3997_v58 }
 0xd17   : > { %v5956_v35 = vpop.permute.xlu1 %5955 }
 0xd18   : > { %v5958_v24 = vunpack.i.h.bf16 %v5956_v35  ;;  %v5957_v54 = vunpack.i.l.bf16 %v5956_v35 }
 0xd1a   : > { %v3992_v46 = vsel %vm1113_vm8, %v5938_v61, %v5957_v54  ;;  %v3993_v26 = vsel %vm1113_vm8, %v5957_v54, %v5958_v24  ;;  %v6009_v61 = vpack.i.bf16 %v9299_v15, %v9425_v4 }
 0xd1b   : > { %v6039_v15 = vpack.i.bf16 %v3994_v25, %v3993_v26 }
 0xd1d   : > { %v5961_v43 = vpop.permute.xlu0 %5960 }
 0xd1e   : > { %v5963_v34 = vunpack.i.h.bf16 %v5961_v43  ;;  %v5962_v0 = vunpack.i.l.bf16 %v5961_v43 }
 0xd20   : > { %v3995_v13 = vsel %vm1113_vm8, %v5943_v20, %v5962_v0  ;;  %v3996_v2 = vsel %vm1113_vm8, %v5962_v0, %v5963_v34 }
 0xd21   : > { %v9465_v57 = vpop.permute.xlu1 %5965  ;;  %v5979_v14 = vpack.i.bf16 %v3995_v13, %v3992_v46  ;;  %v5989_v49 = vpack.i.bf16 %v3996_v2, %v3993_v26 }
 0xd22   : > { %v5968_v10 = vunpack.i.h.bf16 %v9465_v57  ;;  %v5967_v5 = vunpack.i.l.bf16 %v9465_v57 }
 0xd23   : > { %5980 = vrot.lane.b32.xlu0 %v5979_v14, %s6349_s10  ;;  %5990 = vrot.lane.b32.xlu1 %v5989_v49, %s6349_s10 }
 0xd24   : > { %v3998_v42 = vsel %vm1113_vm8, %v5948_v50, %v5967_v5  ;;  %v3999_v7 = vsel %vm1113_vm8, %v5967_v5, %v5968_v10 }
 0xd25   : > { %v5971_v60 = vpop.permute.xlu0 %5970  ;;  %v6049_v63 = vpack.i.bf16 %v3998_v42, %v3997_v58  ;;  %v6054_v4 = vpack.i.bf16 %v4000_v30, %v3999_v7 }
 0xd26   : > { %v5973_v1 = vunpack.i.h.bf16 %v5971_v60  ;;  %v5972_v40 = vunpack.i.l.bf16 %v5971_v60 }
 0xd27   : > { %5985 = vrot.lane.b32.xlu0 %v5984_v53, %s6349_s10 }
 0xd28   : > { %v4001_v29 = vsel %vm1113_vm8, %v5953_v38, %v5972_v40  ;;  %v4002_v3 = vsel %vm1113_vm8, %v5972_v40, %v5973_v1 }
 0xd29   : > { %v5976_v45 = vpop.permute.xlu1 %5975  ;;  %v5999_v51 = vpack.i.bf16 %v4002_v3, %v3999_v7  ;;  %v5994_v22 = vpack.i.bf16 %v4001_v29, %v3998_v42  ;;  %v6059_v17 = vpack.i.bf16 %v4002_v3, %v4001_v29 }
 0xd2a   : > { %v5978_v48 = vunpack.i.h.bf16 %v5976_v45  ;;  %v5977_v19 = vunpack.i.l.bf16 %v5976_v45 }
 0xd2b   : > { %6000 = vrot.lane.b32.xlu0 %v5999_v51, %s6349_s10  ;;  %5995 = vrot.lane.b32.xlu1 %v5994_v22, %s6349_s10 }
 0xd2c   : > { %v4024_v27 = vsel %vm338_vm1, %v5978_v48, %v5963_v34  ;;  %v4021_v9 = vsel %vm338_vm1, %v5977_v19, %v5958_v24 }
 0xd2d   : > { %v9486_v44 = vpack.i.bf16 %v4024_v27, %v4021_v9  ;;  %v4191_v6 = vpack.c.bf16 %v4024_v27, %v4021_v9 }
 0xd2f   : > { %6010 = vrot.lane.b32.xlu0 %v6009_v61, %s6356_s14  ;;  %6005 = vrot.lane.b32.xlu1 %v9292_v16, %s6356_s14  ;;  %v6034_v16 = vpack.i.bf16 %v3992_v46, %v3991_v18 }
 0xd33   : > { %6020 = vrot.lane.b32.xlu0 %v9338_v11, %s6356_s14  ;;  %6015 = vrot.lane.b32.xlu1 %v6014_v8, %s6356_s14  ;;  %v6044_v11 = vpack.i.bf16 %v3996_v2, %v3995_v13 }
 0xd37   : > { %6030 = vrot.lane.b32.xlu0 %v6029_v32, %s6356_s14  ;;  %6025 = vrot.lane.b32.xlu1 %v6024_v21, %s6356_s14 }
 0xd3b   : > { %6040 = vrot.lane.b32.xlu0 %v6039_v15, %s6350_s11  ;;  %6035 = vrot.lane.b32.xlu1 %v6034_v16, %s6350_s11 }
 0xd3f   : > { %6050 = vrot.lane.b32.xlu0 %v6049_v63, %s6350_s11  ;;  %6045 = vrot.lane.b32.xlu1 %v6044_v11, %s6350_s11 }
 0xd43   : > { %6060 = vrot.lane.b32.xlu0 %v6059_v17, %s6350_s11  ;;  %6055 = vrot.lane.b32.xlu1 %v6054_v4, %s6350_s11 }
 0xd47   : > { %6065 = vrot.lane.b32.xlu1 %v9486_v44, %s6349_s10 }
 0xd4b   : > { %4305 = vrot.lane.b32.xlu1 %v4191_v6, %s6351_s12 }
 0xd95   : > { %v5981_v56 = vpop.permute.xlu0 %5980  ;;  %v9512_v32 = vpop.permute.xlu1 %5990 }
 0xd96   : > { %v5983_v12 = vunpack.i.h.bf16 %v5981_v56  ;;  %v5982_v55 = vunpack.i.l.bf16 %v5981_v56  ;;  %v5993_v20 = vunpack.i.h.bf16 %v9512_v32  ;;  %v5992_v36 = vunpack.i.l.bf16 %v9512_v32 }
 0xd98   : > { %v4055_v18 = vsel %vm338_vm1, %v5982_v55, %v5977_v19  ;;  %v4056_v25 = vsel %vm338_vm1, %v5983_v12, %v5978_v48  ;;  %v4060_v52 = vsel %vm338_vm1, %v5993_v20, %v5983_v12  ;;  %v4059_v23 = vsel %vm338_vm1, %v5992_v36, %v5982_v55 }
 0xd99   : > { %v5986_v41 = vpop.permute.xlu0 %5985  ;;  %v4192_v35 = vpack.c.bf16 %v4056_v25, %v4055_v18  ;;  %v4193_v24 = vpack.c.bf16 %v4060_v52, %v4059_v23 }
 0xd9a   : > { %v5988_v54 = vunpack.i.h.bf16 %v5986_v41  ;;  %v5987_v43 = vunpack.i.l.bf16 %v5986_v41 }
 0xd9b   : > { %4307 = vrot.lane.b32.xlu0 %v4192_v35, %s6351_s12  ;;  %4309 = vrot.lane.b32.xlu1 %v4193_v24, %s6351_s12 }
 0xd9c   : > { %v4030_v38 = vsel %vm338_vm1, %v5988_v54, %v5973_v1  ;;  %v4027_v28 = vsel %vm338_vm1, %v5987_v43, %v5968_v10 }
 0xd9d   : > { %v9530_v34 = vpop.permute.xlu0 %6000  ;;  %v5996_v0 = vpop.permute.xlu1 %5995  ;;  %v9532_v50 = vpack.i.bf16 %v4030_v38, %v4027_v28  ;;  %v4195_v7 = vpack.c.bf16 %v4030_v38, %v4027_v28 }
 0xd9e   : > { %v6003_v31 = vunpack.i.h.bf16 %v9530_v34  ;;  %v6002_v46 = vunpack.i.l.bf16 %v9530_v34  ;;  %v5998_v26 = vunpack.i.h.bf16 %v5996_v0  ;;  %v5997_v13 = vunpack.i.l.bf16 %v5996_v0 }
 0xd9f   : > { %6070 = vrot.lane.b32.xlu0 %v9532_v50, %s6349_s10 }
 0xda0   : > { %v4058_v2 = vsel %vm338_vm1, %v5998_v26, %v5988_v54  ;;  %v4062_v57 = vsel %vm338_vm1, %v6003_v31, %v5998_v26  ;;  %v4057_v14 = vsel %vm338_vm1, %v5997_v13, %v5987_v43  ;;  %v4061_v49 = vsel %vm338_vm1, %v6002_v46, %v5997_v13 }
 0xda1   : > { %v9546_v30 = vpop.permute.xlu0 %6010  ;;  %v6006_v58 = vpop.permute.xlu1 %6005  ;;  %v4196_v10 = vpack.c.bf16 %v4058_v2, %v4057_v14  ;;  %v4197_v5 = vpack.c.bf16 %v4062_v57, %v4061_v49 }
 0xda2   : > { %v6012_v60 = vunpack.i.l.bf16 %v9546_v30  ;;  %v6008_v53 = vunpack.i.h.bf16 %v6006_v58  ;;  %v6007_v1 = vunpack.i.l.bf16 %v6006_v58  ;;  %v6013_v29 = vunpack.i.h.bf16 %v9546_v30 }
 0xda3   : > { %4315 = vrot.lane.b32.xlu0 %v4196_v10, %s6351_s12  ;;  %4317 = vrot.lane.b32.xlu1 %v4197_v5, %s6351_s12 }
 0xda4   : > { %v4100_v51 = vsel %vm1222_vm9, %v6008_v53, %v6012_v60  ;;  %v4099_v22 = vsel %vm1222_vm9, %v6007_v1, %v6008_v53  ;;  %v4199_v63 = vpack.c.bf16 %v6013_v29, %v6007_v1 }
 0xda5   : > { %v6021_v40 = vpop.permute.xlu0 %6020  ;;  %v9551_v42 = vpop.permute.xlu1 %6015 }
 0xda6   : > { %v6018_v3 = vunpack.i.h.bf16 %v9551_v42  ;;  %v6017_v45 = vunpack.i.l.bf16 %v9551_v42  ;;  %v6023_v15 = vunpack.i.h.bf16 %v6021_v40  ;;  %v6022_v16 = vunpack.i.l.bf16 %v6021_v40 }
 0xda7   : > { %4313 = vrot.lane.b32.xlu0 %v4195_v7, %s6351_s12  ;;  %6075 = vrot.lane.b32.xlu1 %v6074_v39, %s6356_s14 }
 0xda8   : > { %v4102_v48 = vsel %vm1222_vm9, %v6013_v29, %v6017_v45  ;;  %v4103_v19 = vsel %vm1222_vm9, %v6017_v45, %v6018_v3  ;;  %v4105_v12 = vsel %vm1222_vm9, %v6022_v16, %v6023_v15 }
 0xda9   : > { %v9569_v27 = vpop.permute.xlu0 %6030  ;;  %v9571_v9 = vpop.permute.xlu1 %6025  ;;  %v4200_v61 = vpack.c.bf16 %v4102_v48, %v4099_v22  ;;  %v4201_v8 = vpack.c.bf16 %v4103_v19, %v4100_v51 }
 0xdaa   : > { %v6033_v59 = vunpack.i.h.bf16 %v9569_v27  ;;  %v6032_v47 = vunpack.i.l.bf16 %v9569_v27  ;;  %v6028_v39 = vunpack.i.h.bf16 %v9571_v9  ;;  %v6027_v21 = vunpack.i.l.bf16 %v9571_v9 }
 0xdab   : > { %4323 = vrot.lane.b32.xlu0 %v4200_v61, %s6351_s12  ;;  %4325 = vrot.lane.b32.xlu1 %v4201_v8, %s6351_s12 }
 0xdac   : > { %v4109_v4 = vsel %vm1222_vm9, %v6032_v47, %v6033_v59  ;;  %v4108_v6 = vsel %vm1222_vm9, %v6028_v39, %v6032_v47  ;;  %v4106_v56 = vsel %vm1222_vm9, %v6023_v15, %v6027_v21  ;;  %v4203_v24 = vpack.c.bf16 %v6028_v39, %v6022_v16 }
 0xdad   : > { %v9579_v11 = vpop.permute.xlu0 %6040  ;;  %v6036_v17 = vpop.permute.xlu1 %6035  ;;  %v4204_v55 = vpack.c.bf16 %v4108_v6, %v4105_v12  ;;  %v4205_v18 = vpack.c.bf16 %v4109_v4, %v4106_v56 }
 0xdae   : > { %v6043_v33 = vunpack.i.h.bf16 %v9579_v11  ;;  %v6042_v62 = vunpack.i.l.bf16 %v9579_v11  ;;  %v6037_v35 = vunpack.i.l.bf16 %v6036_v17 }
 0xdaf   : > { %6080 = vrot.lane.b32.xlu0 %v6079_v37, %s6356_s14  ;;  %4321 = vrot.lane.b32.xlu1 %v4199_v63, %s6351_s12  ;;  %v6038_v37 = vunpack.i.h.bf16 %v6036_v17 }
 0xdb0   : > { %v4207_v53 = vpack.c.bf16 %v6043_v33, %v6037_v35 }
 0xdb1   : > { %v6051_v25 = vpop.permute.xlu0 %6050  ;;  %v9594_v52 = vpop.permute.xlu1 %6045  ;;  %v4164_v0 = vsel %vm380_vm2, %v6038_v37, %v6042_v62  ;;  %v4163_v26 = vsel %vm380_vm2, %v6037_v35, %v6038_v37  ;;  %v10253_v35 = vld [vmem:[#allocation7_spill] sm:$0xff] }
 0xdb2   : > { %v6048_v23 = vunpack.i.h.bf16 %v9594_v52  ;;  %v6047_v41 = vunpack.i.l.bf16 %v9594_v52  ;;  %v6052_v5 = vunpack.i.l.bf16 %v6051_v25 }
 0xdb3   : > { %4331 = vrot.lane.b32.xlu0 %v4204_v55, %s6351_s12  ;;  %4333 = vrot.lane.b32.xlu1 %v4205_v18, %s6351_s12 }
 0xdb4   : > { %v4166_v43 = vsel %vm380_vm2, %v6043_v33, %v6047_v41  ;;  %v4167_v38 = vsel %vm380_vm2, %v6047_v41, %v6048_v23 }
 0xdb5   : > { %v9602_v54 = vpop.permute.xlu1 %6055  ;;  %v9608_v28 = vpop.permute.xlu0 %6060  ;;  %v4208_v13 = vpack.c.bf16 %v4166_v43, %v4163_v26  ;;  %v4209_v2 = vpack.c.bf16 %v4167_v38, %v4164_v0  ;;  %v10254_v0 = vld [vmem:[#allocation8_spill] sm:$0xff]  ;;  %v10255_v26 = vld [vmem:[#allocation9_spill] sm:$0xff] }
 0xdb6   : > { %v6063_v57 = vunpack.i.h.bf16 %v9608_v28  ;;  %v6062_v14 = vunpack.i.l.bf16 %v9608_v28  ;;  %v6058_v49 = vunpack.i.h.bf16 %v9602_v54  ;;  %v6057_v58 = vunpack.i.l.bf16 %v9602_v54 }
 0xdb7   : > { %4329 = vrot.lane.b32.xlu0 %v4203_v24, %s6351_s12  ;;  %6085 = vrot.lane.b32.xlu1 %v9486_v44, %s6350_s11  ;;  %v6053_v44 = vunpack.i.h.bf16 %v6051_v25 }
 0xdb8   : > { %v4173_v1 = vsel %vm380_vm2, %v6062_v14, %v6063_v57  ;;  %v4172_v40 = vsel %vm380_vm2, %v6058_v49, %v6062_v14  ;;  %v4211_v8 = vpack.c.bf16 %v6058_v49, %v6052_v5  ;;  %v10256_v14 = vld [vmem:[#allocation10_spill] sm:$0xff] }
 0xdb9   : > { %v6066_v10 = vpop.permute.xlu1 %6065  ;;  %v4170_v7 = vsel %vm380_vm2, %v6053_v44, %v6057_v58  ;;  %v4169_v51 = vsel %vm380_vm2, %v6052_v5, %v6053_v44 }
 0xdba   : > { %v6068_v29 = vunpack.i.h.bf16 %v6066_v10  ;;  %v6067_v45 = vunpack.i.l.bf16 %v6066_v10  ;;  %v4212_v22 = vpack.c.bf16 %v4172_v40, %v4169_v51  ;;  %v4213_v48 = vpack.c.bf16 %v4173_v1, %v4170_v7 }
 0xdbb   : > { %4339 = vrot.lane.b32.xlu0 %v4208_v13, %s6351_s12  ;;  %4341 = vrot.lane.b32.xlu1 %v4209_v2, %s6351_s12 }
 0xdbc   : > { %v4064_v19 = vsel %vm338_vm1, %v6068_v29, %v5993_v20  ;;  %v4063_v61 = vsel %vm338_vm1, %v6067_v45, %v5992_v36  ;;  %v10257_v45 = vld [vmem:[#allocation11_spill] sm:$0xff] }
 0xdbd   : > { %v4194_v47 = vpack.c.bf16 %v4064_v19, %v4063_v61  ;;  %v4306_v32 = vpop.permute.xlu1 %4305  ;;  %v10258_v19 = vld [vmem:[#allocation12_spill] sm:$0xff]  ;;  %v10259_v61 = vld [vmem:[#allocation13_spill] sm:$0xff] }
 0xdbf   : > { %6090 = vrot.lane.b32.xlu0 %v9532_v50, %s6350_s11  ;;  %4337 = vrot.lane.b32.xlu1 %v4207_v53, %s6351_s12  ;;  %v6132_v50 = vld [vmem:[%s10055_s5 + $0x4] ss:$8 sps:$4 sm:$0xff]  }
 0xdc0   : > { %5388 = vmatprep.mubr.msk.bf16.mxu0 %vm3398_vm11, %v6132_v50  ;;  %5394 = vmatprep.mubr.msk.bf16.mxu1 %vm3398_vm11, %v6132_v50 }
 0xdc3   : > { %4347 = vrot.lane.b32.xlu0 %v4212_v22, %s6351_s12  ;;  %4349 = vrot.lane.b32.xlu1 %v4213_v48, %s6351_s12 }
 0xdc7   : > { %4345 = vrot.lane.b32.xlu0 %v4211_v8, %s6351_s12  ;;  %4311 = vrot.lane.b32.xlu1 %v4194_v47, %s6351_s12  ;;  %v10260_v47 = vld [vmem:[#allocation14_spill] sm:$0xff] }
 0xe0d   : > { %v4308_v20 = vpop.permute.xlu0 %4307  ;;  %v9649_v36 = vpop.permute.xlu1 %4309 }
 0xe0e   : > { %v4353_v39 = vsel %vm462_vm3, %v4306_v32, %v4308_v20  ;;  %v4354_v15 = vsel %vm462_vm3, %v4308_v20, %v9649_v36 }
 0xe0f   : > { %4413 = vmatprep.subr.bf16.mxu0 %v4354_v15 }
 0xe10   : > { %4414 = vmatpush1.bf16.msra.mxu0 %v4353_v39 }
 0xe11   : > { %v6071_v16 = vpop.permute.xlu0 %6070 }
 0xe12   : > { %v6073_v63 = vunpack.i.h.bf16 %v6071_v16  ;;  %v6072_v17 = vunpack.i.l.bf16 %v6071_v16 }
 0xe14   : > { %v4066_v4 = vsel %vm338_vm1, %v6073_v63, %v6003_v31  ;;  %v4065_v6 = vsel %vm338_vm1, %v6072_v17, %v6002_v46  ;;  %v10261_v17 = vld [vmem:[#allocation15_spill] sm:$0xff] }
 0xe15   : > { %v4198_v56 = vpack.c.bf16 %v4066_v4, %v4065_v6  ;;  %v4316_v12 = vpop.permute.xlu0 %4315  ;;  %v9660_v55 = vpop.permute.xlu1 %4317  ;;  %v10262_v4 = vld [vmem:[#allocation16_spill] sm:$0xff]  ;;  %v10263_v6 = vld [vmem:[#allocation17_spill] sm:$0xff] }
 0xe16   : > { %v4357_v18 = vsel %vm462_vm3, %v4316_v12, %v9660_v55 }
 0xe17   : > { %4319 = vrot.lane.b32.xlu0 %v4198_v56, %s6351_s12  ;;  %4415 = vmatprep.subr.bf16.mxu0 %v4357_v18  ;;  %v6130_v56 = vld [vmem:[%s10055_s5] ss:$8 sps:$4 sm:$0xff]   ;;  %v6133_v18 = vld [vmem:[%s10055_s5 + $0x14] ss:$8 sps:$4 sm:$0xff]  }
 0xe19   : > { %v4314_v25 = vpop.permute.xlu0 %4313  ;;  %v6076_v41 = vpop.permute.xlu1 %6075 }
 0xe1a   : > { %v4356_v33 = vsel %vm462_vm3, %v4314_v25, %v4316_v12  ;;  %v6078_v37 = vunpack.i.h.bf16 %v6076_v41  ;;  %v6077_v31 = vunpack.i.l.bf16 %v6076_v41  ;;  %v10264_v12 = vld [vmem:[#allocation18_spill] sm:$0xff] }
 0xe1b   : > { %4416 = vmatpush1.bf16.msra.mxu0 %v4356_v33  ;;  %v6136_v25 = vld [vmem:[%s10055_s5 + $0x24] ss:$8 sps:$4 sm:$0xff]   ;;  %v6138_v41 = vld [vmem:[%s10055_s5 + $0x20] ss:$8 sps:$4 sm:$0xff]   ;;  %v6139_v33 = vld [vmem:[%s10055_s5 + $0x34] ss:$8 sps:$4 sm:$0xff]  }
 0xe1c   : > { %v4104_v34 = vsel %vm1222_vm9, %v6018_v3, %v6078_v37  ;;  %v4101_v46 = vsel %vm1222_vm9, %v6012_v60, %v6077_v31  ;;  %4417 = vmatprep.subr.bf16.mxu0 %v10253_v35  ;;  %v6141_v37 = vld [vmem:[%s10055_s5 + $0x30] ss:$8 sps:$4 sm:$0xff]   ;;  %v6142_v31 = vld [vmem:[%s10055_s5 + $0x44] ss:$8 sps:$4 sm:$0xff]  }
 0xe1d   : > { %v4202_v24 = vpack.c.bf16 %v4104_v34, %v4101_v46  ;;  %v4324_v43 = vpop.permute.xlu0 %4323  ;;  %v9673_v38 = vpop.permute.xlu1 %4325  ;;  %v6144_v34 = vld [vmem:[%s10055_s5 + $0x40] ss:$8 sps:$4 sm:$0xff]   ;;  %v6145_v46 = vld [vmem:[%s10055_s5 + $0x54] ss:$8 sps:$4 sm:$0xff]   ;;  %v6147_v35 = vld [vmem:[%s10055_s5 + $0x50] ss:$8 sps:$4 sm:$0xff]  }
 0xe1e   : > { %v4360_v30 = vsel %vm462_vm3, %v4324_v43, %v9673_v38 }
 0xe1f   : > { %4418 = vmatpush1.bf16.msra.mxu0 %v10254_v0  ;;  %4327 = vrot.lane.b32.xlu1 %v4202_v24, %s6351_s12  ;;  %v10265_v24 = vmov 0  }
 0xe20   : > { %4419 = vmatprep.subr.bf16.mxu0 %v10255_v26  ;;  %v10266_v26 = vld [vmem:[#allocation19_spill] sm:$0xff] }
 0xe21   : > { %v6081_v13 = vpop.permute.xlu0 %6080  ;;  %v4322_v42 = vpop.permute.xlu1 %4321 }
 0xe22   : > { %v6083_v2 = vunpack.i.h.bf16 %v6081_v13  ;;  %v6082_v3 = vunpack.i.l.bf16 %v6081_v13  ;;  %v4359_v53 = vsel %vm462_vm3, %v4322_v42, %v4324_v43  ;;  %v10267_v13 = vld [vmem:[#allocation20_spill] sm:$0xff]  ;;  %v10268_v42 = vld [vmem:[#allocation21_spill] sm:$0xff] }
 0xe23   : > { %4420 = vmatpush1.bf16.msra.mxu0 %v10256_v14 }
 0xe24   : > { %v4110_v60 = vsel %vm1222_vm9, %v6033_v59, %v6083_v2  ;;  %v4107_v49 = vsel %vm1222_vm9, %v6027_v21, %v6082_v3  ;;  %4421 = vmatprep.subr.bf16.mxu0 %v4360_v30  ;;  %v10269_v3 = vld [vmem:[#allocation22_spill] sm:$0xff] }
 0xe25   : > { %v4206_v10 = vpack.c.bf16 %v4110_v60, %v4107_v49  ;;  %v4332_v44 = vpop.permute.xlu0 %4331  ;;  %v9687_v5 = vpop.permute.xlu1 %4333  ;;  %v10270_v60 = vld [vmem:[#allocation23_spill] sm:$0xff]  ;;  %v10271_v49 = vld [vmem:[#allocation24_spill] sm:$0xff] }
 0xe26   : > { %v4363_v1 = vsel %vm462_vm3, %v4332_v44, %v9687_v5 }
 0xe27   : > { %4335 = vrot.lane.b32.xlu0 %v4206_v10, %s6351_s12  ;;  %4422 = vmatpush1.bf16.msra.mxu0 %v4359_v53  ;;  %v10272_v10 = vld [vmem:[#allocation25_spill] sm:$0xff]  ;;  %v10273_v53 = vld [vmem:[#allocation26_spill] sm:$0xff] }
 0xe28   : > { %4423 = vmatprep.subr.bf16.mxu0 %v4363_v1 }
 0xe29   : > { %v4330_v27 = vpop.permute.xlu0 %4329  ;;  %v6086_v59 = vpop.permute.xlu1 %6085 }
 0xe2a   : > { %v4362_v9 = vsel %vm462_vm3, %v4330_v27, %v4332_v44  ;;  %v6088_v40 = vunpack.i.h.bf16 %v6086_v59  ;;  %v6087_v21 = vunpack.i.l.bf16 %v6086_v59  ;;  %v10274_v27 = vld [vmem:[#allocation27_spill] sm:$0xff]  ;;  %v10275_v59 = vld [vmem:[#allocation28_spill] sm:$0xff] }
 0xe2b   : > { %4424 = vmatpush1.bf16.msra.mxu0 %v4362_v9  ;;  %v10276_v9 = vld [vmem:[#allocation29_spill] sm:$0xff] }
 0xe2c   : > { %v4168_v7 = vsel %vm380_vm2, %v6048_v23, %v6088_v40  ;;  %v4165_v29 = vsel %vm380_vm2, %v6042_v62, %v6087_v21  ;;  %4425 = vmatprep.subr.bf16.mxu0 %v10257_v45  ;;  %v10277_v40 = vld [vmem:[#allocation30_spill] sm:$0xff] }
 0xe2d   : > { %v4210_v51 = vpack.c.bf16 %v4168_v7, %v4165_v29  ;;  %v4340_v22 = vpop.permute.xlu0 %4339  ;;  %v9701_v48 = vpop.permute.xlu1 %4341 }
 0xe2e   : > { %v4366_v11 = vsel %vm462_vm3, %v4340_v22, %v9701_v48 }
 0xe2f   : > { %4426 = vmatpush1.bf16.msra.mxu0 %v10258_v19  ;;  %4343 = vrot.lane.b32.xlu1 %v4210_v51, %s6351_s12 }
 0xe30   : > { %4427 = vmatprep.subr.bf16.mxu0 %v10259_v61 }
 0xe31   : > { %v6091_v50 = vpop.permute.xlu0 %6090  ;;  %v4338_v52 = vpop.permute.xlu1 %4337 }
 0xe32   : > { %v6093_v8 = vunpack.i.h.bf16 %v6091_v50  ;;  %v6092_v23 = vunpack.i.l.bf16 %v6091_v50  ;;  %v4365_v16 = vsel %vm462_vm3, %v4338_v52, %v4340_v22 }
 0xe33   : > { %4428 = vmatpush1.bf16.msra.mxu0 %v10260_v47 }
 0xe34   : > { %v4174_v62 = vsel %vm380_vm2, %v6063_v57, %v6093_v8  ;;  %v4171_v32 = vsel %vm380_vm2, %v6057_v58, %v6092_v23  ;;  %4429 = vmatprep.subr.bf16.mxu0 %v4366_v11 }
 0xe35   : > { %v4214_v20 = vpack.c.bf16 %v4174_v62, %v4171_v32  ;;  %v4348_v39 = vpop.permute.xlu0 %4347  ;;  %v9715_v15 = vpop.permute.xlu1 %4349 }
 0xe36   : > { %v4369_v63 = vsel %vm462_vm3, %v4348_v39, %v9715_v15 }
 0xe37   : > { %4351 = vrot.lane.b32.xlu0 %v4214_v20, %s6351_s12  ;;  %4430 = vmatpush1.bf16.msra.mxu0 %v4365_v16 }
 0xe38   : > { %4431 = vmatprep.subr.bf16.mxu0 %v4369_v63 }
 0xe39   : > { %v4346_v28 = vpop.permute.xlu0 %4345  ;;  %v4312_v57 = vpop.permute.xlu1 %4311 }
 0xe3a   : > { %v4368_v54 = vsel %vm462_vm3, %v4346_v28, %v4348_v39  ;;  %v4355_v58 = vsel %vm462_vm3, %v9649_v36, %v4312_v57  ;;  %4506 = vmatprep.subr.bf16.mxu1 %v4312_v57  ;;  %v6135_v36 = vld [vmem:[%s10055_s5 + $0x10] ss:$8 sps:$4 sm:$0xff]  }
 0xe3b   : > { %4432 = vmatpush1.bf16.msra.mxu0 %v4368_v54  ;;  %4507 = vmatpush1.bf16.msra.mxu1 %v4355_v58 }
 0xe3c   : > { %4433 = vmatprep.subr.bf16.mxu0 %v10261_v17 }
 0xe3f   : > { %4434 = vmatpush1.bf16.msra.mxu0 %v10262_v4 }
 0xe40   : > { %4435 = vmatprep.subr.bf16.mxu0 %v10263_v6 }
 0xe43   : > { %4436 = vmatpush1.bf16.msra.mxu0 %v10264_v12 }
 0xe46   : > { %4446 = vmatmul.mubr.bf16.vlgmr.msra.gmra.mrb[96].mxu0 %v6130_v56 }
 0xe47   : > { %5389 = vmatprep.mubr.msk.bf16.mxu0 %vm3398_vm11, %v6133_v18 }
 0xe4e   : > { %4456 = vmatmul.mubr.bf16.gmra.mrb[100].mxu0 %v6135_v36 }
 0xe4f   : > { %5390 = vmatprep.mubr.msk.bf16.mxu0 %vm3398_vm11, %v6136_v25 }
 0xe56   : > { %4466 = vmatmul.mubr.bf16.gmra.mrb[104].mxu0 %v6138_v41 }
 0xe57   : > { %5391 = vmatprep.mubr.msk.bf16.mxu0 %vm3398_vm11, %v6139_v33 }
 0xe5e   : > { %4476 = vmatmul.mubr.bf16.gmra.mrb[108].mxu0 %v6141_v37 }
 0xe5f   : > { %5392 = vmatprep.mubr.msk.bf16.mxu0 %vm3398_vm11, %v6142_v31 }
 0xe66   : > { %4486 = vmatmul.mubr.bf16.gmra.mrb[112].mxu0 %v6144_v34 }
 0xe67   : > { %5393 = vmatprep.mubr.msk.bf16.mxu0 %vm3398_vm11, %v6145_v46 }
 0xe6e   : > { %4496 = vmatmul.mubr.bf16.gmra.mrb[116].mxu0 %v6147_v35 }
 0xe6f   : > { %5007 = vmatprep.mubr.bf16.mxu0 %v10265_v24 }
 0xe89   : > { %v4320_v43 = vpop.permute.xlu0 %4319 }
 0xe8a   : > { %v4358_v0 = vsel %vm462_vm3, %v9660_v55, %v4320_v43  ;;  %4508 = vmatprep.subr.bf16.mxu1 %v4320_v43 }
 0xe8b   : > { %4509 = vmatpush1.bf16.msra.mxu1 %v4358_v0 }
 0xe8c   : > { %4510 = vmatprep.subr.bf16.mxu1 %v10266_v26 }
 0xe8f   : > { %4511 = vmatpush1.bf16.msra.mxu1 %v10267_v13 }
 0xe90   : > { %4512 = vmatprep.subr.bf16.mxu1 %v10268_v42 }
 0xe91   : > { %v4328_v2 = vpop.permute.xlu1 %4327 }
 0xe92   : > { %v4361_v14 = vsel %vm462_vm3, %v9673_v38, %v4328_v2 }
 0xe93   : > { %4513 = vmatpush1.bf16.msra.mxu1 %v10269_v3 }
 0xe94   : > { %4514 = vmatprep.subr.bf16.mxu1 %v4328_v2 }
 0xe97   : > { %4515 = vmatpush1.bf16.msra.mxu1 %v4361_v14 }
 0xe99   : > { %v4336_v30 = vpop.permute.xlu0 %4335 }
 0xe9a   : > { %v4364_v55 = vsel %vm462_vm3, %v9687_v5, %v4336_v30  ;;  %4516 = vmatprep.subr.bf16.mxu1 %v4336_v30 }
 0xe9b   : > { %4517 = vmatpush1.bf16.msra.mxu1 %v4364_v55 }
 0xe9c   : > { %4518 = vmatprep.subr.bf16.mxu1 %v10270_v60 }
 0xe9f   : > { %4519 = vmatpush1.bf16.msra.mxu1 %v10271_v49 }
 0xea0   : > { %4520 = vmatprep.subr.bf16.mxu1 %v10272_v10 }
 0xea1   : > { %v4344_v44 = vpop.permute.xlu1 %4343 }
 0xea2   : > { %v4367_v38 = vsel %vm462_vm3, %v9701_v48, %v4344_v44 }
 0xea3   : > { %4521 = vmatpush1.bf16.msra.mxu1 %v10273_v53 }
 0xea4   : > { %4522 = vmatprep.subr.bf16.mxu1 %v4344_v44 }
 0xea7   : > { %4523 = vmatpush1.bf16.msra.mxu1 %v4367_v38 }
 0xea9   : > { %v4352_v1 = vpop.permute.xlu0 %4351 }
 0xeaa   : > { %v4370_v5 = vsel %vm462_vm3, %v9715_v15, %v4352_v1  ;;  %4524 = vmatprep.subr.bf16.mxu1 %v4352_v1 }
 0xeab   : > { %4525 = vmatpush1.bf16.msra.mxu1 %v4370_v5 }
 0xeac   : > { %4526 = vmatprep.subr.bf16.mxu1 %v10274_v27 }
 0xeaf   : > { %4527 = vmatpush1.bf16.msra.mxu1 %v10275_v59 }
 0xeb0   : > { %4528 = vmatprep.subr.bf16.mxu1 %v10276_v9 }
 0xeb3   : > { %4529 = vmatpush1.bf16.msra.mxu1 %v10277_v40 }
 0xeb6   : > { %4539 = vmatmul.mubr.bf16.vlgmr.msra.gmra.mrb[96].mxu1 %v6130_v56 }
 0xeb7   : > { %5395 = vmatprep.mubr.msk.bf16.mxu1 %vm3398_vm11, %v6133_v18 }
 0xebe   : > { %4549 = vmatmul.mubr.bf16.gmra.mrb[100].mxu1 %v6135_v36 }
 0xebf   : > { %5396 = vmatprep.mubr.msk.bf16.mxu1 %vm3398_vm11, %v6136_v25 }
 0xec6   : > { %4559 = vmatmul.mubr.bf16.gmra.mrb[104].mxu1 %v6138_v41 }
 0xec7   : > { %5397 = vmatprep.mubr.msk.bf16.mxu1 %vm3398_vm11, %v6139_v33 }
 0xece   : > { %4569 = vmatmul.mubr.bf16.gmra.mrb[108].mxu1 %v6141_v37 }
 0xecf   : > { %5398 = vmatprep.mubr.msk.bf16.mxu1 %vm3398_vm11, %v6142_v31 }
 0xed6   : > { %4579 = vmatmul.mubr.bf16.gmra.mrb[112].mxu1 %v6144_v34 }
 0xed7   : > { %5399 = vmatprep.mubr.msk.bf16.mxu1 %vm3398_vm11, %v6145_v46 }
 0xede   : > { %4589 = vmatmul.mubr.bf16.gmra.mrb[116].mxu1 %v6147_v35 }
 0xedf   : > { %5048 = vmatprep.mubr.bf16.mxu1 %v10265_v24 }
 0xf19   : > { %v4447_v21 = vpop.f32.mrb[96].mxu0 }
 0xf1a   : > { %v4449_v7 = vpop.f32.mrb[97].mxu0  ;;  %4599 = vrot.lane.b32.xlu1 %v4447_v21, %s6349_s10 }
 0xf1b   : > { %v4451_v29 = vpop.f32.mrb[98].mxu0 }
 0xf1c   : > { %4602 = vrot.lane.b32.xlu0 %v4451_v29, %s6349_s10  ;;  %v4453_v45 = vpop.f32.mrb[99].mxu0 }
 0xf21   : > { %v4457_v51 = vpop.f32.mrb[100].mxu0 }
 0xf22   : > { %v9797_v22 = vpop.f32.mrb[101].mxu0 }
 0xf23   : > { %v4461_v48 = vpop.f32.mrb[102].mxu0 }
 0xf24   : > { %v9799_v19 = vpop.f32.mrb[103].mxu0 }
 0xf29   : > { %v4467_v61 = vpop.f32.mrb[104].mxu0 }
 0xf2a   : > { %v4469_v50 = vpop.f32.mrb[105].mxu0 }
 0xf2b   : > { %v4471_v52 = vpop.f32.mrb[106].mxu0 }
 0xf2c   : > { %v4473_v8 = vpop.f32.mrb[107].mxu0 }
 0xf31   : > { %v9801_v23 = vpop.f32.mrb[108].mxu0 }
 0xf32   : > { %v9803_v47 = vpop.f32.mrb[109].mxu0 }
 0xf33   : > { %v9805_v11 = vpop.f32.mrb[110].mxu0 }
 0xf34   : > { %v9807_v62 = vpop.f32.mrb[111].mxu0 }
 0xf39   : > { %v4487_v32 = vpop.f32.mrb[112].mxu0 }
 0xf3a   : > { %v4489_v20 = vpop.f32.mrb[113].mxu0 }
 0xf3b   : > { %v4491_v39 = vpop.f32.mrb[114].mxu0 }
 0xf3c   : > { %v4493_v15 = vpop.f32.mrb[115].mxu0 }
 0xf41   : > { %v9809_v16 = vpop.f32.mrb[116].mxu0 }
 0xf42   : > { %v9811_v63 = vpop.f32.mrb[117].mxu0 }
 0xf43   : > { %v9813_v28 = vpop.f32.mrb[118].mxu0 }
 0xf44   : > { %v9815_v57 = vpop.f32.mrb[119].mxu0 }
 0xf89   : > { %v4540_v54 = vpop.f32.mrb[96].mxu1 }
 0xf8a   : > { %4619 = vrot.lane.b32.xlu1 %v4540_v54, %s6349_s10  ;;  %v9818_v58 = vpop.f32.mrb[97].mxu1 }
 0xf8b   : > { %v4544_v17 = vpop.f32.mrb[98].mxu1 }
 0xf8c   : > { %4621 = vrot.lane.b32.xlu0 %v4544_v17, %s6349_s10  ;;  %v9821_v4 = vpop.f32.mrb[99].mxu1  ;;  %v4600_v3 = vpop.permute.xlu1 %4599 }
 0xf8d   : > { %v4601_v30 = vsel %vm338_vm1, %v4600_v3, %v9818_v58 }
 0xf8e   : > { %4611 = vrot.lane.b32.xlu1 %v4449_v7, %s6349_s10  ;;  %v4603_v14 = vpop.permute.xlu0 %4602 }
 0xf8f   : > { %v4604_v55 = vsel %vm338_vm1, %v4603_v14, %v9821_v4 }
 0xf90   : > { %4613 = vrot.lane.b32.xlu0 %v4453_v45, %s6349_s10 }
 0xf91   : > { %v4550_v6 = vpop.f32.mrb[100].mxu1 }
 0xf92   : > { %4605 = vrot.lane.b32.xlu1 %v4457_v51, %s6349_s10  ;;  %v9826_v56 = vpop.f32.mrb[101].mxu1 }
 0xf93   : > { %v4554_v12 = vpop.f32.mrb[102].mxu1 }
 0xf94   : > { %4608 = vrot.lane.b32.xlu0 %v4461_v48, %s6349_s10  ;;  %v9829_v18 = vpop.f32.mrb[103].mxu1 }
 0xf96   : > { %4663 = vrot.lane.b32.xlu1 %v4467_v61, %s6353_s29 }
 0xf98   : > { %4665 = vrot.lane.b32.xlu0 %v4469_v50, %s6353_s29 }
 0xf99   : > { %v4560_v36 = vpop.f32.mrb[104].mxu1 }
 0xf9a   : > { %4667 = vrot.lane.b32.xlu1 %v4560_v36, %s6353_s29  ;;  %v4562_v25 = vpop.f32.mrb[105].mxu1 }
 0xf9b   : > { %v4564_v41 = vpop.f32.mrb[106].mxu1 }
 0xf9c   : > { %4671 = vrot.lane.b32.xlu0 %v4471_v52, %s6353_s29  ;;  %v4566_v33 = vpop.f32.mrb[107].mxu1 }
 0xf9e   : > { %4669 = vrot.lane.b32.xlu1 %v4562_v25, %s6353_s29 }
 0xfa0   : > { %4675 = vrot.lane.b32.xlu0 %v4564_v41, %s6353_s29 }
 0xfa1   : > { %v4570_v37 = vpop.f32.mrb[108].mxu1 }
 0xfa2   : > { %4673 = vrot.lane.b32.xlu1 %v4473_v8, %s6353_s29  ;;  %v4572_v31 = vpop.f32.mrb[109].mxu1 }
 0xfa3   : > { %v4574_v34 = vpop.f32.mrb[110].mxu1 }
 0xfa4   : > { %4677 = vrot.lane.b32.xlu0 %v4566_v33, %s6353_s29  ;;  %v4576_v46 = vpop.f32.mrb[111].mxu1 }
 0xfa6   : > { %4739 = vrot.lane.b32.xlu1 %v4487_v32, %s6349_s10 }
 0xfa8   : > { %4769 = vrot.lane.b32.xlu0 %v4489_v20, %s6354_s30 }
 0xfa9   : > { %v4580_v35 = vpop.f32.mrb[112].mxu1 }
 0xfaa   : > { %4767 = vrot.lane.b32.xlu1 %v4487_v32, %s6354_s30  ;;  %v4582_v24 = vpop.f32.mrb[113].mxu1 }
 0xfab   : > { %v4584_v43 = vpop.f32.mrb[114].mxu1 }
 0xfac   : > { %4741 = vrot.lane.b32.xlu0 %v4491_v39, %s6349_s10  ;;  %v9843_v0 = vpop.f32.mrb[115].mxu1 }
 0xfae   : > { %4743 = vrot.lane.b32.xlu1 %v9809_v16, %s6349_s10 }
 0xfb0   : > { %4745 = vrot.lane.b32.xlu0 %v9813_v28, %s6349_s10 }
 0xfb1   : > { %v4590_v26 = vpop.f32.mrb[116].mxu1 }
 0xfb2   : > { %4771 = vrot.lane.b32.xlu1 %v4580_v35, %s6354_s30  ;;  %v9850_v13 = vpop.f32.mrb[117].mxu1 }
 0xfb3   : > { %v4594_v42 = vpop.f32.mrb[118].mxu1 }
 0xfb4   : > { %4775 = vrot.lane.b32.xlu0 %v4491_v39, %s6354_s30  ;;  %v9853_v2 = vpop.f32.mrb[119].mxu1 }
 0xfb6   : > { %4777 = vrot.lane.b32.xlu1 %v4493_v15, %s6354_s30 }
 0xfb8   : > { %4779 = vrot.lane.b32.xlu0 %v4584_v43, %s6354_s30 }
 0xfba   : > { %4615 = vrot.lane.b32.xlu1 %v9797_v22, %s6349_s10 }
 0xfbc   : > { %4617 = vrot.lane.b32.xlu0 %v9799_v19, %s6349_s10 }
 0xfbe   : > { %4623 = vrot.lane.b32.xlu1 %v4550_v6, %s6349_s10 }
 0xfc0   : > { %4625 = vrot.lane.b32.xlu0 %v4554_v12, %s6349_s10 }
 0xfc2   : > { %4679 = vrot.lane.b32.xlu1 %v9801_v23, %s6353_s29 }
 0xfc4   : > { %4681 = vrot.lane.b32.xlu0 %v9803_v47, %s6353_s29 }
 0xfc6   : > { %4683 = vrot.lane.b32.xlu1 %v4570_v37, %s6353_s29 }
 0xfc8   : > { %4687 = vrot.lane.b32.xlu0 %v9805_v11, %s6353_s29 }
 0xfca   : > { %4689 = vrot.lane.b32.xlu1 %v9807_v62, %s6353_s29 }
 0xfcc   : > { %4691 = vrot.lane.b32.xlu0 %v4574_v34, %s6353_s29 }
 0xfce   : > { %4685 = vrot.lane.b32.xlu1 %v4572_v31, %s6353_s29 }
 0xfd0   : > { %4693 = vrot.lane.b32.xlu0 %v4576_v46, %s6353_s29 }
 0xfd2   : > { %4783 = vrot.lane.b32.xlu1 %v9809_v16, %s6354_s30 }
 0xfd4   : > { %4785 = vrot.lane.b32.xlu0 %v9811_v63, %s6354_s30 }
 0xfd6   : > { %4787 = vrot.lane.b32.xlu1 %v4590_v26, %s6354_s30 }
 0xfd8   : > { %4791 = vrot.lane.b32.xlu0 %v9813_v28, %s6354_s30 }
 0xfda   : > { %4793 = vrot.lane.b32.xlu1 %v9815_v57, %s6354_s30 }
 0xfdc   : > { %4795 = vrot.lane.b32.xlu0 %v4594_v42, %s6354_s30 }
 0xfde   : > { %4627 = vrot.lane.b32.xlu1 %v4601_v30, %s6349_s10 }
 0xfe0   : > { %4629 = vrot.lane.b32.xlu0 %v4604_v55, %s6349_s10 }
 0xffc   : > { %v9891_v60 = vpop.permute.xlu1 %4619 }
 0xffe   : > { %v9893_v49 = vpop.permute.xlu0 %4621 }
0x1000   : > { %v4612_v10 = vpop.permute.xlu1 %4611 }
0x1001   : > { %v4635_v47 = vsel %vm338_vm1, %v4612_v10, %v4600_v3  ;;  %v4639_v57 = vsel %vm338_vm1, %v9891_v60, %v4612_v10 }
0x1002   : > { %v4614_v44 = vpop.permute.xlu0 %4613 }
0x1003   : > { %v4636_v41 = vsel %vm338_vm1, %v4614_v44, %v4603_v14  ;;  %v4640_v35 = vsel %vm338_vm1, %v9893_v49, %v4614_v44 }
0x1004   : > { %v9895_v53 = vpop.permute.xlu1 %4605 }
0x1005   : > { %v9900_v38 = vsel %vm338_vm1, %v9895_v53, %v9826_v56 }
0x1006   : > { %v9902_v1 = vpop.permute.xlu0 %4608  ;;  %4631 = vrot.lane.b32.xlu1 %v9900_v38, %s6349_s10 }
0x1007   : > { %v9909_v5 = vsel %vm338_vm1, %v9902_v1, %v9829_v18 }
0x1008   : > { %4633 = vrot.lane.b32.xlu0 %v9909_v5, %s6349_s10  ;;  %v4664_v27 = vpop.permute.xlu1 %4663 }
0x1009   : > { %v4723_v52 = vadd.f32 %v4664_v27, %v4601_v30 }
0x100a   : > { %v4666_v59 = vpop.permute.xlu0 %4665 }
0x100b   : > { %v4695_v8 = vsel %vm787_vm6, %v4664_v27, %v4666_v59 }
0x100c   : > { %v4668_v9 = vpop.permute.xlu1 %4667  ;;  %v4724_v20 = vadd.f32 %v4695_v8, %v4635_v47 }
0x100d   : > { %v4696_v15 = vsel %vm787_vm6, %v4666_v59, %v4668_v9 }
0x100e   : > { %v4672_v40 = vpop.permute.xlu0 %4671  ;;  %v4725_v17 = vadd.f32 %v4696_v15, %v4639_v57 }
0x100f   : > { %v4727_v6 = vadd.f32 %v4672_v40, %v4604_v55 }
0x1010   : > { %v4670_v21 = vpop.permute.xlu1 %4669 }
0x1011   : > { %v9914_v7 = vsel %vm787_vm6, %v4668_v9, %v4670_v21 }
0x1012   : > { %v4676_v29 = vpop.permute.xlu0 %4675 }
0x1014   : > { %v4674_v45 = vpop.permute.xlu1 %4673 }
0x1015   : > { %v4698_v56 = vsel %vm787_vm6, %v4672_v40, %v4674_v45  ;;  %v4699_v33 = vsel %vm787_vm6, %v4674_v45, %v4676_v29 }
0x1016   : > { %v4678_v51 = vpop.permute.xlu0 %4677  ;;  %v4728_v31 = vadd.f32 %v4698_v56, %v4636_v41 }
0x1017   : > { %v9917_v22 = vsel %vm787_vm6, %v4676_v29, %v4678_v51 }
0x1018   : > { %v4740_v48 = vpop.permute.xlu1 %4739 }
0x1019   : > { %v4747_v19 = vsel %vm338_vm1, %v4740_v48, %v4582_v24 }
0x101a   : > { %v4770_v61 = vpop.permute.xlu0 %4769  ;;  %4773 = vrot.lane.b32.xlu1 %v4747_v19, %s6354_s30 }
0x101c   : > { %v4768_v50 = vpop.permute.xlu1 %4767 }
0x101d   : > { %v4799_v11 = vsel %vm892_vm7, %v4768_v50, %v4770_v61  ;;  %v4827_v62 = vadd.f32 %v4768_v50, %v4723_v52 }
0x101e   : > { %v4742_v23 = vpop.permute.xlu0 %4741  ;;  %v4828_v63 = vadd.f32 %v4799_v11, %v4724_v20 }
0x101f   : > { %v4748_v32 = vsel %vm338_vm1, %v4742_v23, %v9843_v0  ;;  %v4859_v54 = vmul.f32 0.70710677, %v4827_v62  ;;  %v4729_v0 = vadd.f32 %v4699_v33, %v4640_v35  ;;  %v4843_v45 = vmul.f32 0.5, %v4827_v62 }
0x1020   : > { %4781 = vrot.lane.b32.xlu0 %v4748_v32, %s6354_s30  ;;  %v4744_v39 = vpop.permute.xlu1 %4743  ;;  %v4860_v18 = vmul.f32 0.70710677, %v4828_v63  ;;  %v4844_v47 = vmul.f32 0.5, %v4828_v63 }
0x1021   : > { %v4749_v16 = vsel %vm338_vm1, %v4744_v39, %v9850_v13  ;;  %6276 = verf.f32 %v4859_v54 }
0x1022   : > { %v4746_v28 = vpop.permute.xlu0 %4745  ;;  %4789 = vrot.lane.b32.xlu1 %v4749_v16, %s6354_s30  ;;  %6278 = verf.f32 %v4860_v18 }
0x1023   : > { %v4750_v58 = vsel %vm338_vm1, %v4746_v28, %v9853_v2 }
0x1024   : > { %4797 = vrot.lane.b32.xlu0 %v4750_v58, %s6354_s30  ;;  %v9936_v4 = vpop.permute.xlu1 %4771  ;;  %s5405_s30 = sshll.u32 %s10284_s24, 4 }
0x1025   : > { %v4800_v12 = vsel %vm892_vm7, %v4770_v61, %v9936_v4  ;;  %s10033_s22 = scalar_lea.vmem %s10057_s7, %s5405_s30 }
0x1026   : > { %v4829_v36 = vadd.f32 %v4800_v12, %v4725_v17  ;;  %v4776_v25 = vpop.permute.xlu0 %4775 }
0x1027   : > { %v4831_v37 = vadd.f32 %v4776_v25, %v4727_v6 }
0x1028   : > { %v4861_v34 = vmul.f32 0.70710677, %v4829_v36  ;;  %v4778_v46 = vpop.permute.xlu1 %4777  ;;  %v4845_v15 = vmul.f32 0.5, %v4829_v36 }
0x1029   : > { %v4863_v24 = vmul.f32 0.70710677, %v4831_v37  ;;  %v4802_v43 = vsel %vm892_vm7, %v4776_v25, %v4778_v46  ;;  %v4847_v51 = vmul.f32 0.5, %v4831_v37 }
0x102a   : > { %v4832_v26 = vadd.f32 %v4802_v43, %v4728_v31  ;;  %v9946_v13 = vpop.permute.xlu0 %4779 }
0x102b   : > { %6280 = verf.f32 %v4863_v24  ;;  %v4803_v42 = vsel %vm892_vm7, %v4778_v46, %v9946_v13  ;;  %v6277_v44 = vpop.eup %6276 }
0x102c   : > { %6282 = verf.f32 %v4861_v34  ;;  %v4864_v2 = vmul.f32 0.70710677, %v4832_v26  ;;  %v4833_v3 = vadd.f32 %v4803_v42, %v4729_v0  ;;  %v4616_v14 = vpop.permute.xlu1 %4615  ;;  %v6279_v59 = vpop.eup %6278  ;;  %v4891_v9 = vadd.f32 1.0, %v6277_v44 }
0x102d   : > { %v4892_v61 = vadd.f32 1.0, %v6279_v59  ;;  %v4848_v32 = vmul.f32 0.5, %v4832_v26  ;;  %v4637_v46 = vsel %vm338_vm1, %v4616_v14, %v9895_v53 }
0x102e   : > { %6284 = verf.f32 %v4864_v2  ;;  %v4865_v30 = vmul.f32 0.70710677, %v4833_v3  ;;  %v9950_v55 = vpop.permute.xlu0 %4617  ;;  %v4907_v52 = vmul.f32 %v4891_v9, %v4843_v45  ;;  %v4849_v58 = vmul.f32 0.5, %v4833_v3 }
0x102f   : > { %v4908_v57 = vmul.f32 %v4892_v61, %v4844_v47 }
0x1030   : > { %6286 = verf.f32 %v4865_v30  ;;  %v9952_v10 = vpop.permute.xlu1 %4623 }
0x1031   : > { %v4641_v26 = vsel %vm338_vm1, %v9952_v10, %v4616_v14  ;;  %v4638_v14 = vsel %vm338_vm1, %v9950_v55, %v9902_v1 }
0x1032   : > { %v9954_v27 = vpop.permute.xlu0 %4625 }
0x1034   : > { %v4680_v40 = vpop.permute.xlu1 %4679 }
0x1035   : > { %v6281_v21 = vpop.eup %6280  ;;  %v4731_v33 = vadd.f32 %v4680_v40, %v9900_v38 }
0x1036   : > { %v6283_v29 = vpop.eup %6282  ;;  %v4895_v48 = vadd.f32 1.0, %v6281_v21  ;;  %v4682_v19 = vpop.permute.xlu0 %4681 }
0x1037   : > { %v4893_v11 = vadd.f32 1.0, %v6283_v29  ;;  %v4701_v37 = vsel %vm787_vm6, %v4680_v40, %v4682_v19 }
0x1038   : > { %v6285_v50 = vpop.eup %6284  ;;  %v4911_v8 = vmul.f32 %v4895_v48, %v4847_v51  ;;  %v4684_v23 = vpop.permute.xlu1 %4683  ;;  %v4732_v43 = vadd.f32 %v4701_v37, %v4637_v46 }
0x1039   : > { %v4896_v20 = vadd.f32 1.0, %v6285_v50  ;;  %v4909_v6 = vmul.f32 %v4893_v11, %v4845_v15  ;;  %v4702_v35 = vsel %vm787_vm6, %v4682_v19, %v4684_v23 }
0x103a   : > { %v6287_v39 = vpop.eup %6286  ;;  %v4688_v16 = vpop.permute.xlu0 %4687  ;;  %v4924_v28 = vpack.c.bf16 %v4911_v8, %v4907_v52  ;;  %v4733_v2 = vadd.f32 %v4702_v35, %v4641_v26 }
0x103b   : > { %v4912_v54 = vmul.f32 %v4896_v20, %v4848_v32  ;;  %v4897_v62 = vadd.f32 1.0, %v6287_v39  ;;  %v4735_v44 = vadd.f32 %v4688_v16, %v9909_v5  ;;  %v4642_v5 = vsel %vm338_vm1, %v9954_v27, %v9950_v55 }
0x103c   : > { %4940 = vrot.lane.b32.xlu1 %v4924_v28, %s6355_s13  ;;  %v4690_v17 = vpop.permute.xlu1 %4689 }
0x103d   : > { %v4913_v56 = vmul.f32 %v4897_v62, %v4849_v58  ;;  %v4925_v12 = vpack.c.bf16 %v4912_v54, %v4908_v57  ;;  %v4704_v59 = vsel %vm787_vm6, %v4688_v16, %v4690_v17 }
0x103e   : > { %v4692_v18 = vpop.permute.xlu0 %4691  ;;  %v4736_v51 = vadd.f32 %v4704_v59, %v4638_v14 }
0x103f   : > { %v4926_v25 = vpack.c.bf16 %v4913_v56, %v4909_v6  ;;  %v4705_v29 = vsel %vm787_vm6, %v4690_v17, %v4692_v18 }
0x1040   : > { %4942 = vrot.lane.b32.xlu1 %v4925_v12, %s6355_s13  ;;  %v4686_v63 = vpop.permute.xlu1 %4685  ;;  %v4737_v52 = vadd.f32 %v4705_v29, %v4642_v5 }
0x1041   : > { %v9959_v41 = vsel %vm787_vm6, %v4684_v23, %v4686_v63  ;;  %4944 = vrot.lane.b32.xlu0 %v4926_v25, %s6355_s13 }
0x1042   : > { %v4694_v36 = vpop.permute.xlu0 %4693 }
0x1043   : > { %v9965_v31 = vsel %vm787_vm6, %v4692_v18, %v4694_v36 }
0x1044   : > { %v4784_v34 = vpop.permute.xlu1 %4783 }
0x1045   : > { %v4835_v24 = vadd.f32 %v4784_v34, %v4731_v33 }
0x1046   : > { %v4786_v0 = vpop.permute.xlu0 %4785 }
0x1047   : > { %v4867_v42 = vmul.f32 0.70710677, %v4835_v24  ;;  %v4805_v38 = vsel %vm892_vm7, %v4784_v34, %v4786_v0  ;;  %v4851_v28 = vmul.f32 0.5, %v4835_v24 }
0x1048   : > { %v4836_v3 = vadd.f32 %v4805_v38, %v4732_v43  ;;  %v9973_v30 = vpop.permute.xlu1 %4787 }
0x1049   : > { %v4806_v53 = vsel %vm892_vm7, %v4786_v0, %v9973_v30  ;;  %6288 = verf.f32 %v4867_v42 }
0x104a   : > { %v4868_v9 = vmul.f32 0.70710677, %v4836_v3  ;;  %v4837_v40 = vadd.f32 %v4806_v53, %v4733_v2  ;;  %v4792_v21 = vpop.permute.xlu0 %4791  ;;  %v4852_v56 = vmul.f32 0.5, %v4836_v3 }
0x104b   : > { %v4839_v45 = vadd.f32 %v4792_v21, %v4735_v44 }
0x104c   : > { %v4869_v48 = vmul.f32 0.70710677, %v4837_v40  ;;  %v4794_v19 = vpop.permute.xlu1 %4793  ;;  %6290 = verf.f32 %v4868_v9  ;;  %v4853_v36 = vmul.f32 0.5, %v4837_v40 }
0x104d   : > { %v4871_v61 = vmul.f32 0.70710677, %v4839_v45  ;;  %v4808_v50 = vsel %vm892_vm7, %v4792_v21, %v4794_v19  ;;  %v4855_v57 = vmul.f32 0.5, %v4839_v45 }
0x104e   : > { %v4840_v8 = vadd.f32 %v4808_v50, %v4736_v51  ;;  %v9987_v23 = vpop.permute.xlu0 %4795 }
0x104f   : > { %6292 = verf.f32 %v4871_v61  ;;  %v4809_v1 = vsel %vm892_vm7, %v4794_v19, %v9987_v23 }
0x1050   : > { %6294 = verf.f32 %v4869_v48  ;;  %v4872_v47 = vmul.f32 0.70710677, %v4840_v8  ;;  %v4841_v11 = vadd.f32 %v4809_v1, %v4737_v52  ;;  %v4856_v18 = vmul.f32 0.5, %v4840_v8  ;;  %v4628_v42 = vpop.permute.xlu1 %4627 }
0x1051   : > { %v4643_v2 = vsel %vm338_vm1, %v4628_v42, %v9891_v60 }
0x1052   : > { %6296 = verf.f32 %v4872_v47  ;;  %v4873_v32 = vmul.f32 0.70710677, %v4841_v11  ;;  %v4857_v46 = vmul.f32 0.5, %v4841_v11  ;;  %v4630_v3 = vpop.permute.xlu0 %4629  ;;  %v4726_v44 = vadd.f32 %v9914_v7, %v4643_v2 }
0x1053   : > { %v6289_v20 = vpop.eup %6288  ;;  %v4644_v21 = vsel %vm338_vm1, %v4630_v3, %v9893_v49 }
0x1054   : > { %6298 = verf.f32 %v4873_v32  ;;  %v4899_v39 = vadd.f32 1.0, %v6289_v20  ;;  %v4730_v45 = vadd.f32 %v9917_v22, %v4644_v21  ;;  %v10278_v21 = vld [vmem:[#allocation2_spill] sm:$0xff] }
0x1056   : > { %v6291_v55 = vpop.eup %6290  ;;  %v4915_v17 = vmul.f32 %v4899_v39, %v4851_v28 }
0x1057   : > { %v4900_v58 = vadd.f32 1.0, %v6291_v55 }
0x1059   : > { %v6293_v15 = vpop.eup %6292  ;;  %v4916_v37 = vmul.f32 %v4900_v58, %v4852_v56 }
0x105a   : > { %v6295_v16 = vpop.eup %6294  ;;  %v4903_v54 = vadd.f32 1.0, %v6293_v15 }
0x105b   : > { %v4901_v12 = vadd.f32 1.0, %v6295_v16 }
0x105c   : > { %v6297_v62 = vpop.eup %6296  ;;  %v4919_v6 = vmul.f32 %v4903_v54, %v4855_v57 }
0x105d   : > { %v4904_v25 = vadd.f32 1.0, %v6297_v62  ;;  %v4917_v43 = vmul.f32 %v4901_v12, %v4853_v36 }
0x105e   : > { %v6299_v63 = vpop.eup %6298  ;;  %v4928_v33 = vpack.c.bf16 %v4919_v6, %v4915_v17 }
0x105f   : > { %v4920_v34 = vmul.f32 %v4904_v25, %v4856_v18  ;;  %v4905_v35 = vadd.f32 1.0, %v6299_v63 }
0x1061   : > { %v4921_v0 = vmul.f32 %v4905_v35, %v4857_v46  ;;  %v4929_v24 = vpack.c.bf16 %v4920_v34, %v4916_v37  ;;  %v4923_v37 = vld [vmem:[%s10056_s6] sm:$0x3] }
0x1063   : > { %4950 = vrot.lane.b32.xlu1 %v4929_v24, %s6355_s13  ;;  %v4930_v26 = vpack.c.bf16 %v4921_v0, %v4917_v43 }
0x1065   : > { %4952 = vrot.lane.b32.xlu0 %v4930_v26, %s6355_s13 }
0x1067   : > { %4948 = vrot.lane.b32.xlu1 %v4928_v33, %s6355_s13 }
0x1078   : > { %v4632_v38 = vpop.permute.xlu1 %4631 }
0x1079   : > { %v4645_v29 = vsel %vm338_vm1, %v4632_v38, %v9952_v10 }
0x107a   : > { %v4634_v9 = vpop.permute.xlu0 %4633 }
0x107b   : > { %v4646_v60 = vsel %vm338_vm1, %v4634_v9, %v9954_v27 }
0x107c   : > { %v4738_v5 = vadd.f32 %v9965_v31, %v4646_v60 }
0x108c   : > { %v4774_v59 = vpop.permute.xlu1 %4773 }
0x108d   : > { %v4801_v53 = vsel %vm892_vm7, %v9936_v4, %v4774_v59  ;;  %v4734_v4 = vadd.f32 %v9959_v41, %v4645_v29 }
0x108e   : > { %v4830_v40 = vadd.f32 %v4801_v53, %v4726_v44 }
0x1090   : > { %v4862_v14 = vmul.f32 0.70710677, %v4830_v40  ;;  %v4846_v47 = vmul.f32 0.5, %v4830_v40 }
0x1092   : > { %v4782_v51 = vpop.permute.xlu0 %4781  ;;  %6300 = verf.f32 %v4862_v14 }
0x1093   : > { %v4804_v7 = vsel %vm892_vm7, %v9946_v13, %v4782_v51 }
0x1094   : > { %v4834_v48 = vadd.f32 %v4804_v7, %v4730_v45  ;;  %v4790_v19 = vpop.permute.xlu1 %4789 }
0x1095   : > { %v4807_v49 = vsel %vm892_vm7, %v9973_v30, %v4790_v19 }
0x1096   : > { %v4866_v10 = vmul.f32 0.70710677, %v4834_v48  ;;  %v4838_v61 = vadd.f32 %v4807_v49, %v4734_v4  ;;  %v4798_v22 = vpop.permute.xlu0 %4797  ;;  %v4850_v11 = vmul.f32 0.5, %v4834_v48 }
0x1097   : > { %v4810_v50 = vsel %vm892_vm7, %v9987_v23, %v4798_v22 }
0x1098   : > { %6302 = verf.f32 %v4866_v10  ;;  %v4870_v27 = vmul.f32 0.70710677, %v4838_v61  ;;  %v4842_v52 = vadd.f32 %v4810_v50, %v4738_v5  ;;  %v4854_v15 = vmul.f32 0.5, %v4838_v61 }
0x109a   : > { %6304 = verf.f32 %v4870_v27  ;;  %v4874_v13 = vmul.f32 0.70710677, %v4842_v52  ;;  %v4858_v16 = vmul.f32 0.5, %v4842_v52 }
0x109c   : > { %6306 = verf.f32 %v4874_v13  ;;  %v6301_v41 = vpop.eup %6300 }
0x109d   : > { %v4894_v8 = vadd.f32 1.0, %v6301_v41 }
0x109f   : > { %v4910_v31 = vmul.f32 %v4894_v8, %v4846_v47 }
0x10a2   : > { %v6303_v1 = vpop.eup %6302 }
0x10a3   : > { %v4898_v30 = vadd.f32 1.0, %v6303_v1 }
0x10a4   : > { %v6305_v32 = vpop.eup %6304 }
0x10a5   : > { %v4914_v20 = vmul.f32 %v4898_v30, %v4850_v11  ;;  %v4902_v55 = vadd.f32 1.0, %v6305_v32 }
0x10a6   : > { %v6307_v39 = vpop.eup %6306 }
0x10a7   : > { %v4906_v23 = vadd.f32 1.0, %v6307_v39  ;;  %v4927_v28 = vpack.c.bf16 %v4914_v20, %v4910_v31  ;;  %v4918_v57 = vmul.f32 %v4902_v55, %v4854_v15 }
0x10a9   : > { %v4922_v54 = vmul.f32 %v4906_v23, %v4858_v16  ;;  %4946 = vrot.lane.b32.xlu0 %v4927_v28, %s6355_s13 }
0x10ab   : > { %v4931_v58 = vpack.c.bf16 %v4922_v54, %v4918_v57 }
0x10ad   : > { %4954 = vrot.lane.b32.xlu0 %v4931_v58, %s6355_s13 }
0x10ae   : > { %v4941_v62 = vpop.permute.xlu1 %4940 }
0x10b2   : > { %v4943_v17 = vpop.permute.xlu1 %4942 }
0x10b3   : > { %v4945_v6 = vpop.permute.xlu0 %4944  ;;  %v4957_v12 = vsel %vm1113_vm8, %v4941_v62, %v4943_v17 }
0x10b4   : > { %v4958_v56 = vsel %vm1113_vm8, %v4943_v17, %v4945_v6 }
0x10b5   : > { %4975 = vmatprep.subr.bf16.mxu0 %v4958_v56 }
0x10b6   : > { %4976 = vmatpush1.bf16.msra.mxu0 %v4957_v12 }
0x10d5   : > { %v4951_v18 = vpop.permute.xlu1 %4950 }
0x10d7   : > { %v4953_v25 = vpop.permute.xlu0 %4952 }
0x10d8   : > { %v4961_v63 = vsel %vm1113_vm8, %v4951_v18, %v4953_v25 }
0x10d9   : > { %4977 = vmatprep.subr.bf16.mxu0 %v4961_v63  ;;  %v4949_v36 = vpop.permute.xlu1 %4948 }
0x10da   : > { %v4960_v33 = vsel %vm1113_vm8, %v4949_v36, %v4951_v18 }
0x10db   : > { %4978 = vmatpush1.bf16.msra.mxu0 %v4960_v33 }
0x10de   : > { %5400 = vmatmul.mubr.msk.bf16.vlgmr.msra.gmra.mrb[120].mxu0 %vm4971_vm12, %v4923_v37 }
0x111b   : > { %v4947_v34 = vpop.permute.xlu0 %4946 }
0x111c   : > { %v4959_v46 = vsel %vm1113_vm8, %v4945_v6, %v4947_v34  ;;  %5016 = vmatprep.subr.bf16.mxu1 %v4947_v34 }
0x111d   : > { %5017 = vmatpush1.bf16.msra.mxu1 %v4959_v46 }
0x111f   : > { %v4955_v35 = vpop.permute.xlu0 %4954 }
0x1120   : > { %v4962_v43 = vsel %vm1113_vm8, %v4953_v25, %v4955_v35  ;;  %5018 = vmatprep.subr.bf16.mxu1 %v4955_v35 }
0x1121   : > { %5019 = vmatpush1.bf16.msra.mxu1 %v4962_v43 }
0x1124   : > { %5401 = vmatmul.mubr.msk.bf16.vlgmr.msra.gmra.mrb[120].mxu1 %vm4971_vm12, %v4923_v37 }
0x11b1   : > { %v5009_v0 = vpop.f32.mrb[120].mxu0 }
0x11b2   : > { %v5061_v24 = vrot.slane %v5009_v0, 1  ;;  %v5073_v26 = vrot.slane %v5009_v0, 2  ;;  %v5011_v42 = vpop.f32.mrb[121].mxu0 }
0x11b3   : > { %v5062_v38 = vrot.slane %v5011_v42, 1  ;;  %v5074_v2 = vrot.slane %v5011_v42, 2  ;;  %v5013_v3 = vpop.f32.mrb[122].mxu0 }
0x11b4   : > { %v5069_v44 = vmax.f32 %v5009_v0, %v5061_v24  ;;  %v5014_v59 = vpop.f32.mrb[123].mxu0 }
0x11b5   : > { %v5070_v53 = vmax.f32 %v5011_v42, %v5062_v38 }
0x11b6   : > { %v5081_v9 = vmax.f32 %v5069_v44, %v5073_v26 }
0x11b7   : > { %v5082_v40 = vmax.f32 %v5070_v53, %v5074_v2 }
0x11b8   : > { %v5088_v14 = vrot.slane %v5081_v9, %v10278_v21 }
0x11b9   : > { %v5092_v29 = vrot.slane %v5082_v40, %v10278_v21 }
0x11ba   : > { %v5101_v45 = vsub.f32 %v5009_v0, %v5088_v14 }
0x11bb   : > { %v5102_v51 = vsub.f32 %v5011_v42, %v5092_v29 }
0x11bc   : > { %v5105_v60 = vmul.f32 1.442695, %v5101_v45 }
0x11bd   : > { %v5107_v7 = vmul.f32 1.442695, %v5102_v51 }
0x11be   : > { %6308 = vpow2.f32 %v5105_v60 }
0x11bf   : > { %6310 = vpow2.f32 %v5107_v7 }
0x11c8   : > { %v6309_v4 = vpop.eup %6308 }
0x11c9   : > { %v6311_v48 = vpop.eup %6310  ;;  %v5117_v19 = vrot.slane %v6309_v4, 1  ;;  %v5129_v49 = vrot.slane %v6309_v4, 2 }
0x11ca   : > { %v5118_v5 = vrot.slane %v6311_v48, 1  ;;  %v5130_v10 = vrot.slane %v6311_v48, 2 }
0x11cb   : > { %v5125_v61 = vadd.f32 %v6309_v4, %v5117_v19 }
0x11cc   : > { %v5126_v22 = vadd.f32 %v6311_v48, %v5118_v5 }
0x11cd   : > { %v5137_v50 = vadd.f32 %v5129_v49, %v5125_v61 }
0x11ce   : > { %v5138_v27 = vadd.f32 %v5130_v10, %v5126_v22 }
0x11cf   : > { %6312 = vrcp.f32 %v5137_v50 }
0x11d0   : > { %6314 = vrcp.f32 %v5138_v27 }
0x11d9   : > { %v6313_v52 = vpop.eup %6312 }
0x11da   : > { %v6315_v13 = vpop.eup %6314  ;;  %v5148_v41 = vrot.slane %v6313_v52, %v10278_v21 }
0x11db   : > { %v5152_v8 = vrot.slane %v6315_v13, %v10278_v21 }
0x11dc   : > { %v5161_v1 = vmul.f32 %v6309_v4, %v5148_v41 }
0x11dd   : > { %v5162_v47 = vmul.f32 %v6311_v48, %v5152_v8 }
0x11df   : > { %v5169_v11 = vcombine.low %v5161_v1, %v5162_v47 }
0x11e1   : > { %5173 = vst [vmem:[%s10033_s22] sm:$0x77] %v5169_v11 }
0x11f7   : > { %v5050_v30 = vpop.f32.mrb[120].mxu1 }
0x11f8   : > { %v5063_v32 = vrot.slane %v5050_v30, 1  ;;  %v5052_v31 = vpop.f32.mrb[121].mxu1  ;;  %v5075_v15 = vrot.slane %v5050_v30, 2 }
0x11f9   : > { %v5064_v20 = vrot.slane %v5052_v31, 1  ;;  %v5054_v55 = vpop.f32.mrb[122].mxu1  ;;  %v5076_v28 = vrot.slane %v5052_v31, 2 }
0x11fa   : > { %v5071_v39 = vmax.f32 %v5050_v30, %v5063_v32  ;;  %v5055_v16 = vpop.f32.mrb[123].mxu1 }
0x11fb   : > { %v5072_v23 = vmax.f32 %v5052_v31, %v5064_v20 }
0x11fc   : > { %v5083_v57 = vmax.f32 %v5071_v39, %v5075_v15 }
0x11fd   : > { %v5084_v54 = vmax.f32 %v5072_v23, %v5076_v28 }
0x11fe   : > { %v5096_v58 = vrot.slane %v5083_v57, %v10278_v21 }
0x11ff   : > { %v5100_v62 = vrot.slane %v5084_v54, %v10278_v21 }
0x1200   : > { %v5103_v17 = vsub.f32 %v5050_v30, %v5096_v58 }
0x1201   : > { %v5104_v6 = vsub.f32 %v5052_v31, %v5100_v62 }
0x1202   : > { %v5109_v56 = vmul.f32 1.442695, %v5103_v17 }
0x1203   : > { %v5111_v12 = vmul.f32 1.442695, %v5104_v6 }
0x1204   : > { %6316 = vpow2.f32 %v5109_v56 }
0x1205   : > { %6318 = vpow2.f32 %v5111_v12 }
0x120e   : > { %v6317_v18 = vpop.eup %6316 }
0x120f   : > { %v6319_v25 = vpop.eup %6318  ;;  %v5119_v63 = vrot.slane %v6317_v18, 1  ;;  %v5131_v37 = vrot.slane %v6317_v18, 2 }
0x1210   : > { %v5120_v36 = vrot.slane %v6319_v25, 1  ;;  %v5132_v46 = vrot.slane %v6319_v25, 2 }
0x1211   : > { %v5127_v33 = vadd.f32 %v6317_v18, %v5119_v63 }
0x1212   : > { %v5128_v34 = vadd.f32 %v6319_v25, %v5120_v36 }
0x1213   : > { %v5139_v35 = vadd.f32 %v5131_v37, %v5127_v33 }
0x1214   : > { %v5140_v43 = vadd.f32 %v5132_v46, %v5128_v34 }
0x1215   : > { %6320 = vrcp.f32 %v5139_v35 }
0x1216   : > { %6322 = vrcp.f32 %v5140_v43 }
0x121f   : > { %v6321_v0 = vpop.eup %6320 }
0x1220   : > { %v6323_v24 = vpop.eup %6322  ;;  %v5156_v26 = vrot.slane %v6321_v0, %v10278_v21 }
0x1221   : > { %v5160_v42 = vrot.slane %v6323_v24, %v10278_v21 }
0x1222   : > { %v5163_v38 = vmul.f32 %v6317_v18, %v5156_v26 }
0x1223   : > { %v5164_v2 = vmul.f32 %v6319_v25, %v5160_v42 }
0x1225   : > { %v5170_v3 = vcombine.low %v5163_v38, %v5164_v2 }
0x1227   : > { %5177 = vst.msk [vmem:[%s10033_s22 + $0x8] sm:$0x77] %vm5176_vm15, %v5170_v3 }
0x1228 PF: > { %s17_s26 = sadd.s32 1, %s6346_s26   ;;  %s10279_s24 = smov %s6342_s25 }
0x1229   : > { %p14_p5 = scmp.ge.s32.totalorder %s17_s26, 4   ;;  %s10280_s25 = smov %s10282_s27 }
0x122b   :  { %16 = sbr.rel (!%p14_p5) target bundleno = 2 (0x2), region = 81 }

</bundles_post_ra>
